<compile_context>
chip_gen: v5e
topology: v5e:2x2
jax: 0.10.0
libtpu: 0.0.40
codegen_flags: <defaults>
</compile_context>

<pallas_src>
import functools

import jax
import jax.numpy as jnp
from jax import lax
from jax.experimental import pallas as pl
from jax.experimental.pallas import tpu as pltpu


BN_EPS = 1e-5


# ----------------------------------------------------------------------------
# Pass 1: streaming BatchNorm1d batch statistics over the (B, N-tile) grid.
# ----------------------------------------------------------------------------
def mlp1d_stats_kernel(x_ref, w1_ref, g_ref, b_ref,       # inputs
                       scale_ref, shift_ref,               # outputs (resident)
                       sum_acc, sq_acc,                     # VMEM scratch
                       *, m_total):
    """Emits scale = gamma * rstd and shift = beta - scale * mean so pass 2
    only needs one fused multiply-add per element."""
    bi = pl.program_id(0)
    ni = pl.program_id(1)
    is_first = jnp.logical_and(bi == 0, ni == 0)
    is_last = jnp.logical_and(bi == pl.num_programs(0) - 1,
                              ni == pl.num_programs(1) - 1)

    @pl.when(is_first)
    def _():
        sum_acc[...] = jnp.zeros_like(sum_acc)
        sq_acc[...] = jnp.zeros_like(sq_acc)

    # bf16 x bf16 MXU matmul, f32 accumulation.  x is cast in-kernel so the
    # wrapper never materializes a bf16 copy of x in HBM.
    x = x_ref[...].astype(jnp.bfloat16)
    h = jnp.dot(w1_ref[...], x, preferred_element_type=jnp.float32)
    sum_acc[...] += jnp.sum(h, axis=1, keepdims=True)
    sq_acc[...] += jnp.sum(h * h, axis=1, keepdims=True)

    @pl.when(is_last)
    def _():
        inv_m = 1.0 / m_total
        mean = sum_acc[...] * inv_m
        # Biased (training-mode) variance, as nn.BatchNorm1d uses in forward.
        var = jnp.maximum(sq_acc[...] * inv_m - mean * mean, 0.0)
        rstd = lax.rsqrt(var + BN_EPS)
        scale = g_ref[...] * rstd
        scale_ref[...] = scale
        shift_ref[...] = b_ref[...] - scale * mean


# ----------------------------------------------------------------------------
# Pass 2: fused conv1 -> BN(affine, precomputed stats) -> ReLU -> conv2.
# ----------------------------------------------------------------------------
def mlp1d_main_kernel(x_ref, w1_ref, w2_ref, scale_ref, shift_ref, o_ref):
    x = x_ref[...].astype(jnp.bfloat16)
    h = jnp.dot(w1_ref[...], x, preferred_element_type=jnp.float32)
    ha = jnp.maximum(h * scale_ref[...] + shift_ref[...], 0.0)
    o_ref[...] = jnp.dot(w2_ref[...], ha.astype(w2_ref.dtype),
                         preferred_element_type=jnp.float32).astype(o_ref.dtype)


# ----------------------------------------------------------------------------
# Wrapper: (B, C_in, N) -> (B, C_out, N), matching MLP1D.forward
# ----------------------------------------------------------------------------
def mlp1d_forward(x, params, *, tile_n=None):
    b, c_in, n = x.shape
    hid = params["w1"].shape[0]
    c_out = params["w2"].shape[0]

    if tile_n is None:
        tile_n = next((t for t in (512, 256, 128) if n % t == 0), n)
    assert n % tile_n == 0, "example keeps N a multiple of the tile size"

    # Weights are tiny: cast once in the wrapper, keep VMEM-resident in-kernel.
    w1 = params["w1"].astype(jnp.bfloat16)
    w2 = params["w2"].astype(jnp.bfloat16)
    gamma = params["gamma"].astype(jnp.float32)
    beta = params["beta"].astype(jnp.float32)

    grid = (b, n // tile_n)
    x_spec = pl.BlockSpec((pl.Squeezed(), c_in, tile_n),
                          lambda bb, i: (bb, 0, i))
    o_spec = pl.BlockSpec((pl.Squeezed(), c_out, tile_n),
                          lambda bb, i: (bb, 0, i))
    w1_spec = pl.BlockSpec((hid, c_in), lambda bb, i: (0, 0))     # resident
    w2_spec = pl.BlockSpec((c_out, hid), lambda bb, i: (0, 0))    # resident
    vec_spec = pl.BlockSpec((hid, 1), lambda bb, i: (0, 0))       # resident

    # Pass 1: global BN statistics (reduction over the whole grid -> arbitrary).
    scale, shift = pl.pallas_call(
        functools.partial(mlp1d_stats_kernel, m_total=float(b * n)),
        out_shape=(jax.ShapeDtypeStruct((hid, 1), jnp.float32),
                   jax.ShapeDtypeStruct((hid, 1), jnp.float32)),
        grid=grid,
        in_specs=[x_spec, w1_spec, vec_spec, vec_spec],
        out_specs=(vec_spec, vec_spec),
        scratch_shapes=[pltpu.VMEM((hid, 1), jnp.float32),
                        pltpu.VMEM((hid, 1), jnp.float32)],
        compiler_params=pltpu.CompilerParams(
            dimension_semantics=("arbitrary", "arbitrary")),
    )(x, w1, gamma, beta)

    # Pass 2: independent (batch, N-tile) blocks -> fully parallel.
    out = pl.pallas_call(
        mlp1d_main_kernel,
        out_shape=jax.ShapeDtypeStruct((b, c_out, n), jnp.float32),
        grid=grid,
        in_specs=[x_spec, w1_spec, w2_spec, vec_spec, vec_spec],
        out_specs=o_spec,
        compiler_params=pltpu.CompilerParams(
            dimension_semantics=("parallel", "parallel")),
    )(x, w1, w2, scale, shift)

    return out


# ----------------------------------------------------------------------------
# Pure-JAX reference (same bf16 matmul / f32 accumulate convention)
# ----------------------------------------------------------------------------
def mlp1d_reference(x, params):
    xs = x.astype(jnp.bfloat16)
    w1 = params["w1"].astype(jnp.bfloat16)
    w2 = params["w2"].astype(jnp.bfloat16)
    gamma = params["gamma"].reshape(1, -1, 1)
    beta = params["beta"].reshape(1, -1, 1)

    h = jnp.einsum("hc,bcn->bhn", w1, xs, preferred_element_type=jnp.float32)
    mean = jnp.mean(h, axis=(0, 2), keepdims=True)
    var = jnp.mean(jnp.square(h - mean), axis=(0, 2), keepdims=True)  # biased
    hn = (h - mean) * lax.rsqrt(var + BN_EPS) * gamma + beta
    ha = jnp.maximum(hn, 0.0)
    out = jnp.einsum("oh,bhn->bon", w2, ha.astype(jnp.bfloat16),
                     preferred_element_type=jnp.float32)
    return out


# ----------------------------------------------------------------------------
# main
# ----------------------------------------------------------------------------
if __name__ == "__main__":
    key = jax.random.PRNGKey(0)
    k_x, k_w1, k_w2, k_g, k_b = jax.random.split(key, 5)

    # Small but MXU/lane-friendly shapes (channels multiples of 128).
    B, C_IN, N = 2, 128, 512        # grid = (2, 1) with tile_n = 512
    HID, C_OUT = 256, 128

    params = dict(
        w1=0.05 * jax.random.normal(k_w1, (HID, C_IN), dtype=jnp.float32),
        gamma=1.0 + 0.1 * jax.random.normal(k_g, (HID, 1), dtype=jnp.float32),
        beta=0.1 * jax.random.normal(k_b, (HID, 1), dtype=jnp.float32),
        w2=0.05 * jax.random.normal(k_w2, (C_OUT, HID), dtype=jnp.float32),
    )
    x = jax.random.normal(k_x, (B, C_IN, N), dtype=jnp.float32)

    fwd = jax.jit(mlp1d_forward)
    out = fwd(x, params)
    jax.block_until_ready(out)

    ref = mlp1d_reference(x, params)
    jax.block_until_ready(ref)

    assert out.shape == (B, C_OUT, N)
    assert bool(jnp.all(jnp.isfinite(out))), "non-finite output"
    assert bool(jnp.allclose(out, ref, rtol=2e-2, atol=2e-2)), (
        "mismatch vs reference: max abs diff = "
        f"{float(jnp.max(jnp.abs(out - ref)))}")

    print("KERNEL_OK")
</pallas_src>

<mosaic_0001>
module attributes {stable_mosaic.version = 11 : i64} {
  func.func @mlp1d_stats_kernel(%arg0: i32, %arg1: i32, %arg2: memref<1x128x512xf32, #tpu.memory_space<vmem>>, %arg3: memref<256x128xbf16, #tpu.memory_space<vmem>>, %arg4: memref<256x1xf32, #tpu.memory_space<vmem>>, %arg5: memref<256x1xf32, #tpu.memory_space<vmem>>, %arg6: memref<256x1xf32, #tpu.memory_space<vmem>>, %arg7: memref<256x1xf32, #tpu.memory_space<vmem>>, %arg8: memref<256x1xf32, #tpu.memory_space<vmem>>, %arg9: memref<256x1xf32, #tpu.memory_space<vmem>>) attributes {dimension_semantics = [#tpu.dimension_semantics<arbitrary>, #tpu.dimension_semantics<arbitrary>], iteration_bounds = array<i64: 2, 1>, scalar_prefetch = 0 : i64, scratch_operands = 2 : i64, tpu.core_type = #tpu.core_type<tc>, window_params = [{transform_indices = @transform_0, window_bounds = array<i64: 1, 128, 512>}, {pipeline_mode = #tpu.pipeline_mode<synchronous>, transform_indices = @transform_1, window_bounds = array<i64: 256, 128>}, {pipeline_mode = #tpu.pipeline_mode<synchronous>, transform_indices = @transform_2, window_bounds = array<i64: 256, 1>}, {pipeline_mode = #tpu.pipeline_mode<synchronous>, transform_indices = @transform_3, window_bounds = array<i64: 256, 1>}, {pipeline_mode = #tpu.pipeline_mode<synchronous>, transform_indices = @transform_4, window_bounds = array<i64: 256, 1>}, {pipeline_mode = #tpu.pipeline_mode<synchronous>, transform_indices = @transform_5, window_bounds = array<i64: 256, 1>}]} {
    %c0_i32 = arith.constant 0 : i32
    %0 = arith.cmpi eq, %arg0, %c0_i32 : i32
    %c0_i32_0 = arith.constant 0 : i32
    %1 = arith.cmpi eq, %arg1, %c0_i32_0 : i32
    %2 = arith.andi %0, %1 : i1
    %c1_i32 = arith.constant 1 : i32
    %3 = arith.cmpi eq, %arg0, %c1_i32 : i32
    %c0_i32_1 = arith.constant 0 : i32
    %4 = arith.cmpi eq, %arg1, %c0_i32_1 : i32
    %5 = arith.andi %3, %4 : i1
    %6 = arith.extui %2 : i1 to i32
    %c0_i32_2 = arith.constant 0 : i32
    %7 = arith.cmpi ne, %6, %c0_i32_2 : i32
    scf.if %7 {
      %cst_18 = arith.constant 0.000000e+00 : f32
      %26 = vector.broadcast %cst_18 : f32 to vector<256x1xf32>
      %c0_19 = arith.constant 0 : index
      %c0_20 = arith.constant 0 : index
      %27 = vector.load %arg8[%c0_19, %c0_20] : memref<256x1xf32, #tpu.memory_space<vmem>>, vector<256x1xf32>
      tpu.vector_store %arg8[%c0_19, %c0_20], %26 {strides = array<i32>} : memref<256x1xf32, #tpu.memory_space<vmem>>, vector<256x1xf32>,
      %cst_21 = arith.constant 0.000000e+00 : f32
      %28 = vector.broadcast %cst_21 : f32 to vector<256x1xf32>
      %c0_22 = arith.constant 0 : index
      %c0_23 = arith.constant 0 : index
      %29 = vector.load %arg9[%c0_22, %c0_23] : memref<256x1xf32, #tpu.memory_space<vmem>>, vector<256x1xf32>
      tpu.vector_store %arg9[%c0_22, %c0_23], %28 {strides = array<i32>} : memref<256x1xf32, #tpu.memory_space<vmem>>, vector<256x1xf32>,
    } else {
    }
    %c0 = arith.constant 0 : index
    %c0_3 = arith.constant 0 : index
    %c0_4 = arith.constant 0 : index
    %8 = vector.load %arg2[%c0, %c0_3, %c0_4] : memref<1x128x512xf32, #tpu.memory_space<vmem>>, vector<1x128x512xf32>
    %9 = vector.shape_cast %8 : vector<1x128x512xf32> to vector<128x512xf32>
    %10 = arith.truncf %9 : vector<128x512xf32> to vector<128x512xbf16>
    %c0_5 = arith.constant 0 : index
    %c0_6 = arith.constant 0 : index
    %11 = vector.load %arg3[%c0_5, %c0_6] : memref<256x128xbf16, #tpu.memory_space<vmem>>, vector<256x128xbf16>
    %cst = arith.constant dense<0.000000e+00> : vector<256x512xf32>
    %12 = tpu.matmul %11, %10, %cst {dimension_numbers = #tpu.dot_dimension_numbers<[1], [0], [0], [1], [0, 0, 1, 1], [], []>} : vector<256x128xbf16>, vector<128x512xbf16>, vector<256x512xf32> -> vector<256x512xf32>
    %c0_7 = arith.constant 0 : index
    %c0_8 = arith.constant 0 : index
    %13 = vector.load %arg8[%c0_7, %c0_8] : memref<256x1xf32, #tpu.memory_space<vmem>>, vector<256x1xf32>
    %cst_9 = arith.constant dense<0.000000e+00> : vector<256xf32>
    %14 = vector.multi_reduction <add>, %12, %cst_9 [1] : vector<256x512xf32> to vector<256xf32>
    %15 = vector.shape_cast %14 : vector<256xf32> to vector<256x1xf32>
    %16 = arith.addf %13, %15 : vector<256x1xf32>
    %c0_10 = arith.constant 0 : index
    %c0_11 = arith.constant 0 : index
    %17 = vector.load %arg8[%c0_10, %c0_11] : memref<256x1xf32, #tpu.memory_space<vmem>>, vector<256x1xf32>
    tpu.vector_store %arg8[%c0_10, %c0_11], %16 {strides = array<i32>} : memref<256x1xf32, #tpu.memory_space<vmem>>, vector<256x1xf32>,
    %c0_12 = arith.constant 0 : index
    %c0_13 = arith.constant 0 : index
    %18 = vector.load %arg9[%c0_12, %c0_13] : memref<256x1xf32, #tpu.memory_space<vmem>>, vector<256x1xf32>
    %19 = arith.mulf %12, %12 : vector<256x512xf32>
    %cst_14 = arith.constant dense<0.000000e+00> : vector<256xf32>
    %20 = vector.multi_reduction <add>, %19, %cst_14 [1] : vector<256x512xf32> to vector<256xf32>
    %21 = vector.shape_cast %20 : vector<256xf32> to vector<256x1xf32>
    %22 = arith.addf %18, %21 : vector<256x1xf32>
    %c0_15 = arith.constant 0 : index
    %c0_16 = arith.constant 0 : index
    %23 = vector.load %arg9[%c0_15, %c0_16] : memref<256x1xf32, #tpu.memory_space<vmem>>, vector<256x1xf32>
    tpu.vector_store %arg9[%c0_15, %c0_16], %22 {strides = array<i32>} : memref<256x1xf32, #tpu.memory_space<vmem>>, vector<256x1xf32>,
    %24 = arith.extui %5 : i1 to i32
    %c0_i32_17 = arith.constant 0 : i32
    %25 = arith.cmpi ne, %24, %c0_i32_17 : i32
    scf.if %25 {
      %c0_18 = arith.constant 0 : index
      %c0_19 = arith.constant 0 : index
      %26 = vector.load %arg8[%c0_18, %c0_19] : memref<256x1xf32, #tpu.memory_space<vmem>>, vector<256x1xf32>
      %cst_20 = arith.constant 9.765625E-4 : f32
      %27 = vector.broadcast %cst_20 : f32 to vector<256x1xf32>
      %28 = arith.mulf %26, %27 : vector<256x1xf32>
      %c0_21 = arith.constant 0 : index
      %c0_22 = arith.constant 0 : index
      %29 = vector.load %arg9[%c0_21, %c0_22] : memref<256x1xf32, #tpu.memory_space<vmem>>, vector<256x1xf32>
      %cst_23 = arith.constant 9.765625E-4 : f32
      %30 = vector.broadcast %cst_23 : f32 to vector<256x1xf32>
      %31 = arith.mulf %29, %30 : vector<256x1xf32>
      %32 = arith.mulf %28, %28 : vector<256x1xf32>
      %33 = arith.subf %31, %32 : vector<256x1xf32>
      %cst_24 = arith.constant 0.000000e+00 : f32
      %34 = vector.broadcast %cst_24 : f32 to vector<256x1xf32>
      %35 = arith.maximumf %33, %34 : vector<256x1xf32>
      %cst_25 = arith.constant 9.99999974E-6 : f32
      %36 = vector.broadcast %cst_25 : f32 to vector<256x1xf32>
      %37 = arith.addf %35, %36 : vector<256x1xf32>
      %38 = math.rsqrt %37 : vector<256x1xf32>
      %c0_26 = arith.constant 0 : index
      %c0_27 = arith.constant 0 : index
      %39 = vector.load %arg4[%c0_26, %c0_27] : memref<256x1xf32, #tpu.memory_space<vmem>>, vector<256x1xf32>
      %40 = arith.mulf %39, %38 : vector<256x1xf32>
      %c0_28 = arith.constant 0 : index
      %c0_29 = arith.constant 0 : index
      %41 = vector.load %arg6[%c0_28, %c0_29] : memref<256x1xf32, #tpu.memory_space<vmem>>, vector<256x1xf32>
      tpu.vector_store %arg6[%c0_28, %c0_29], %40 {strides = array<i32>} : memref<256x1xf32, #tpu.memory_space<vmem>>, vector<256x1xf32>,
      %c0_30 = arith.constant 0 : index
      %c0_31 = arith.constant 0 : index
      %42 = vector.load %arg5[%c0_30, %c0_31] : memref<256x1xf32, #tpu.memory_space<vmem>>, vector<256x1xf32>
      %43 = arith.mulf %40, %28 : vector<256x1xf32>
      %44 = arith.subf %42, %43 : vector<256x1xf32>
      %c0_32 = arith.constant 0 : index
      %c0_33 = arith.constant 0 : index
      %45 = vector.load %arg7[%c0_32, %c0_33] : memref<256x1xf32, #tpu.memory_space<vmem>>, vector<256x1xf32>
      tpu.vector_store %arg7[%c0_32, %c0_33], %44 {strides = array<i32>} : memref<256x1xf32, #tpu.memory_space<vmem>>, vector<256x1xf32>,
    } else {
    }
    return
  }
  func.func @transform_0(%arg0: i32, %arg1: i32) -> (i32, i32, i32) {
    %c0_i32 = arith.constant 0 : i32
    %c0_i32_0 = arith.constant 0 : i32
    return %arg0, %c0_i32, %arg1 : i32, i32, i32
  }
  func.func @transform_1(%arg0: i32, %arg1: i32) -> (i32, i32) {
    %c0_i32 = arith.constant 0 : i32
    %c0_i32_0 = arith.constant 0 : i32
    %c0_i32_1 = arith.constant 0 : i32
    return %c0_i32, %c0_i32_0 : i32, i32
  }
  func.func @transform_2(%arg0: i32, %arg1: i32) -> (i32, i32) {
    %c0_i32 = arith.constant 0 : i32
    %c0_i32_0 = arith.constant 0 : i32
    %c0_i32_1 = arith.constant 0 : i32
    return %c0_i32, %c0_i32_0 : i32, i32
  }
  func.func @transform_3(%arg0: i32, %arg1: i32) -> (i32, i32) {
    %c0_i32 = arith.constant 0 : i32
    %c0_i32_0 = arith.constant 0 : i32
    %c0_i32_1 = arith.constant 0 : i32
    return %c0_i32, %c0_i32_0 : i32, i32
  }
  func.func @transform_4(%arg0: i32, %arg1: i32) -> (i32, i32) {
    %c0_i32 = arith.constant 0 : i32
    %c0_i32_0 = arith.constant 0 : i32
    %c0_i32_1 = arith.constant 0 : i32
    return %c0_i32, %c0_i32_0 : i32, i32
  }
  func.func @transform_5(%arg0: i32, %arg1: i32) -> (i32, i32) {
    %c0_i32 = arith.constant 0 : i32
    %c0_i32_0 = arith.constant 0 : i32
    %c0_i32_1 = arith.constant 0 : i32
    return %c0_i32, %c0_i32_0 : i32, i32
  }
}

module attributes {stable_mosaic.version = 11 : i64} {
  func.func @mlp1d_main_kernel(%arg0: i32, %arg1: i32, %arg2: memref<1x128x512xf32, #tpu.memory_space<vmem>>, %arg3: memref<256x128xbf16, #tpu.memory_space<vmem>>, %arg4: memref<128x256xbf16, #tpu.memory_space<vmem>>, %arg5: memref<256x1xf32, #tpu.memory_space<vmem>>, %arg6: memref<256x1xf32, #tpu.memory_space<vmem>>, %arg7: memref<1x128x512xf32, #tpu.memory_space<vmem>>) attributes {dimension_semantics = [#tpu.dimension_semantics<parallel>, #tpu.dimension_semantics<parallel>], iteration_bounds = array<i64: 2, 1>, scalar_prefetch = 0 : i64, scratch_operands = 0 : i64, tpu.core_type = #tpu.core_type<tc>, window_params = [{transform_indices = @transform_0, window_bounds = array<i64: 1, 128, 512>}, {pipeline_mode = #tpu.pipeline_mode<synchronous>, transform_indices = @transform_1, window_bounds = array<i64: 256, 128>}, {pipeline_mode = #tpu.pipeline_mode<synchronous>, transform_indices = @transform_2, window_bounds = array<i64: 128, 256>}, {pipeline_mode = #tpu.pipeline_mode<synchronous>, transform_indices = @transform_3, window_bounds = array<i64: 256, 1>}, {pipeline_mode = #tpu.pipeline_mode<synchronous>, transform_indices = @transform_4, window_bounds = array<i64: 256, 1>}, {transform_indices = @transform_5, window_bounds = array<i64: 1, 128, 512>}]} {
    %c0 = arith.constant 0 : index
    %c0_0 = arith.constant 0 : index
    %c0_1 = arith.constant 0 : index
    %0 = vector.load %arg2[%c0, %c0_0, %c0_1] : memref<1x128x512xf32, #tpu.memory_space<vmem>>, vector<1x128x512xf32>
    %1 = vector.shape_cast %0 : vector<1x128x512xf32> to vector<128x512xf32>
    %2 = arith.truncf %1 : vector<128x512xf32> to vector<128x512xbf16>
    %c0_2 = arith.constant 0 : index
    %c0_3 = arith.constant 0 : index
    %3 = vector.load %arg3[%c0_2, %c0_3] : memref<256x128xbf16, #tpu.memory_space<vmem>>, vector<256x128xbf16>
    %cst = arith.constant dense<0.000000e+00> : vector<256x512xf32>
    %4 = tpu.matmul %3, %2, %cst {dimension_numbers = #tpu.dot_dimension_numbers<[1], [0], [0], [1], [0, 0, 1, 1], [], []>} : vector<256x128xbf16>, vector<128x512xbf16>, vector<256x512xf32> -> vector<256x512xf32>
    %c0_4 = arith.constant 0 : index
    %c0_5 = arith.constant 0 : index
    %5 = vector.load %arg5[%c0_4, %c0_5] : memref<256x1xf32, #tpu.memory_space<vmem>>, vector<256x1xf32>
    %6 = vector.broadcast %5 : vector<256x1xf32> to vector<256x512xf32>
    %7 = arith.mulf %4, %6 : vector<256x512xf32>
    %c0_6 = arith.constant 0 : index
    %c0_7 = arith.constant 0 : index
    %8 = vector.load %arg6[%c0_6, %c0_7] : memref<256x1xf32, #tpu.memory_space<vmem>>, vector<256x1xf32>
    %9 = vector.broadcast %8 : vector<256x1xf32> to vector<256x512xf32>
    %10 = arith.addf %7, %9 : vector<256x512xf32>
    %cst_8 = arith.constant 0.000000e+00 : f32
    %11 = vector.broadcast %cst_8 : f32 to vector<256x512xf32>
    %12 = arith.maximumf %10, %11 : vector<256x512xf32>
    %c0_9 = arith.constant 0 : index
    %c0_10 = arith.constant 0 : index
    %13 = vector.load %arg4[%c0_9, %c0_10] : memref<128x256xbf16, #tpu.memory_space<vmem>>, vector<128x256xbf16>
    %14 = arith.truncf %12 : vector<256x512xf32> to vector<256x512xbf16>
    %cst_11 = arith.constant dense<0.000000e+00> : vector<128x512xf32>
    %15 = tpu.matmul %13, %14, %cst_11 {dimension_numbers = #tpu.dot_dimension_numbers<[1], [0], [0], [1], [0, 0, 1, 1], [], []>} : vector<128x256xbf16>, vector<256x512xbf16>, vector<128x512xf32> -> vector<128x512xf32>
    %c0_12 = arith.constant 0 : index
    %c0_13 = arith.constant 0 : index
    %c0_14 = arith.constant 0 : index
    %16 = vector.load %arg7[%c0_12, %c0_13, %c0_14] : memref<1x128x512xf32, #tpu.memory_space<vmem>>, vector<1x128x512xf32>
    %17 = vector.shape_cast %16 : vector<1x128x512xf32> to vector<128x512xf32>
    %18 = vector.shape_cast %15 : vector<128x512xf32> to vector<1x128x512xf32>
    tpu.vector_store %arg7[%c0_12, %c0_13, %c0_14], %18 {strides = array<i32>} : memref<1x128x512xf32, #tpu.memory_space<vmem>>, vector<1x128x512xf32>,
    return
  }
  func.func @transform_0(%arg0: i32, %arg1: i32) -> (i32, i32, i32) {
    %c0_i32 = arith.constant 0 : i32
    %c0_i32_0 = arith.constant 0 : i32
    return %arg0, %c0_i32, %arg1 : i32, i32, i32
  }
  func.func @transform_1(%arg0: i32, %arg1: i32) -> (i32, i32) {
    %c0_i32 = arith.constant 0 : i32
    %c0_i32_0 = arith.constant 0 : i32
    %c0_i32_1 = arith.constant 0 : i32
    return %c0_i32, %c0_i32_0 : i32, i32
  }
  func.func @transform_2(%arg0: i32, %arg1: i32) -> (i32, i32) {
    %c0_i32 = arith.constant 0 : i32
    %c0_i32_0 = arith.constant 0 : i32
    %c0_i32_1 = arith.constant 0 : i32
    return %c0_i32, %c0_i32_0 : i32, i32
  }
  func.func @transform_3(%arg0: i32, %arg1: i32) -> (i32, i32) {
    %c0_i32 = arith.constant 0 : i32
    %c0_i32_0 = arith.constant 0 : i32
    %c0_i32_1 = arith.constant 0 : i32
    return %c0_i32, %c0_i32_0 : i32, i32
  }
  func.func @transform_4(%arg0: i32, %arg1: i32) -> (i32, i32) {
    %c0_i32 = arith.constant 0 : i32
    %c0_i32_0 = arith.constant 0 : i32
    %c0_i32_1 = arith.constant 0 : i32
    return %c0_i32, %c0_i32_0 : i32, i32
  }
  func.func @transform_5(%arg0: i32, %arg1: i32) -> (i32, i32, i32) {
    %c0_i32 = arith.constant 0 : i32
    %c0_i32_0 = arith.constant 0 : i32
    return %arg0, %c0_i32, %arg1 : i32, i32, i32
  }
}

</mosaic_0001>

<bundles_post_ra>
// kernel: mlp1d_forward.2
= control target key start
LH: loop header
LB: loop body
LE: loop exit
PB: predicated region body
PF: predicated region fallthrough
CT: control target
= control target key end

     0   :  { %11 = vsyncpa [#allocation5], 0  ;;  %s4550_s0 = inlined_call_operand.hbm [shape: f32[2,128,512], index: 0, kind: input, shape index: {}]   ;;  %s4551_s1 = inlined_call_operand.vmem [shape: bf16[256,128], index: 1, kind: input, shape index: {}]   ;;  %s4552_s2 = inlined_call_operand.vmem [shape: f32[256,1], index: 2, kind: input, shape index: {}]   ;;  %s4553_s3 = inlined_call_operand.vmem [shape: f32[256,1], index: 3, kind: input, shape index: {}]   ;;  %s4554_s4 = inlined_call_operand.vmem [shape: f32[256,1], index: 4, kind: output, shape index: {0}]   ;;  %s4555_s5 = inlined_call_operand.vmem [shape: f32[256,1], index: 5, kind: output, shape index: {1}]  }
   0x1   :  { %13 = vsyncpa [#allocation5 + $0x1], 0  ;;  %s2733_s18 = smov 0   ;;  %s2735_s19 = smov 0  }
   0x2   :  { %s2737_s20 = smov 0   ;;  %s2739_s21 = smov 0  }
   0x3   :  { %s2741_s22 = smov 0   ;;  %s2743_s23 = smov 0  }
   0x4 LB: > { %s2401_s24 = sadd.s32 4294967295, %s2698_s23   ;;  %s31_s25 = sadd.s32 1, %s2694_s22  ;;  %s2698_s23 = sphi %s2743_s23, %s19_s23   ;;  %s2694_s22 = sphi %s2741_s22, %s4683_s22   ;;  %s2690_s21 = sphi %s2739_s21, %s4682_s21   ;;  %s2686_s20 = sphi %s2737_s20, %s4681_s20   ;;  %s2682_s19 = sphi %s2735_s19, %s4680_s19   ;;  %s2678_s18 = sphi %s2733_s18, %s4679_s18  }
   0x5   : > { %p33_p0 = scmp.ge.s32.totalorder %s31_s25, 2  ;;  %s40_s26 = sadd.s32 1, %s2686_s20 }
   0x6   : > { %p47_p1 = scmp.ne.s32.totalorder %s2686_s20, %s2682_s19  ;;  %p48_p2 = scmp.eq.s32.totalorder %s2698_s23, 0 }
   0x7   : > { %s4685_s25 = smov (%p33_p0, %s31_s25), 0  ;;  %p53_p4 = scmp.ne.s32.totalorder %s2682_s19, %s2678_s18 }
   0x8   : > { %p2769_p3 = por %p48_p2, %p47_p1  ;;  %s35_s28 = ssub.s32 %s2694_s22, %s4685_s25 }
   0x9   : > { %p54_p5 = scmp.eq.s32.totalorder %s2401_s24, 0  ;;  %p38_p6 = scmp.eq.s32.totalorder %s35_s28, 0 }
   0xa   : > { %p2502_p8 = scmp.lt.s32.totalorder %s2698_s23, 2  ;;  %s191_s6 = sand.u32 1, %s2686_s20  }
   0xb   : > { %p2776_p7 = por %p54_p5, %p53_p4  ;;  %s2477_s7 = sshll.u32 %s2694_s22, 9 }
   0xc   : > { %s2782_s30 = scalar_select %p38_p6, %s2686_s20, %s40_s26  }
   0xd   : > { %s2404_s8 = sshll.u32 %s191_s6, 9  ;;  %s202_s11 = scalar_lea.hbm %s4550_s0, %s2477_s7 }
   0xe   : > { %s203_s12 = sshll.u32 %s202_s11, 4  ;;  %s195_s13 = scalar_lea.vmem [#allocation4], %s2404_s8  ;;  %s204_s12 = int_to_ptr.hbm [resolvable:$true] %s203_s12 }
   0xf   : > { %s205_s14 = sshll.u32 %s195_s13, 4  ;;  %p2499_p9 = pnand %p2502_p8, %p2769_p3  ;;  %s206_s14 = int_to_ptr.vmem [resolvable:$true] %s205_s14 }
  0x10   : > { %p2407_p10 = scmp.ge.s32.totalorder %s2698_s23, 1  ;;  %p213_p11 = scmp.lt.s32.totalorder %s2698_s23, 3 }
  0x11   : > { %s192_s15 = scalar_lea.sflag [#allocation5], %s191_s6  ;;  %s2700_s16 = smov 512  }
  0x12   : > { %s2701_s17 = smov 32   ;;  %p214_p12 = pnand %p2407_p10, %p213_p11 }
  0x13   : > { %2501 = dma.hbm_to_vmem [thread:$0]  (!%p2499_p9), %s204_s12, 8192, %s206_s14, %s192_s15, %s2700_s16, %s2700_s16, %s2701_s17  }
  0x14   : > { %217 = sbr.rel (%p214_p12) target bundleno = 800 (0x320), region = 36  ;;  %s219_s18 = sand.u32 (!%p214_p12), 1, %s2682_s19  }
  0x15   : > { %s2408_s24 = sshll.u32 (!%p214_p12), %s219_s18, 9  ;;  %s220_s26 = scalar_lea.sflag (!%p214_p12), [#allocation5], %s219_s18 }
  0x16   : > { %s2794_s28 = scalar_lea.vmem (!%p214_p12), [#allocation4], %s2408_s24 }
  0x19   : > { %2673 = dma.done.wait (%p2776_p7), %s220_s26, 8192  }
  0x1a   : > { %2675 = vsyncadd (%p2776_p7), %s220_s26, 4294959104  ;;  %p247_p13 = scmp.eq.s32.totalorder %s2690_s21, 0  ;;  %p251_p0 = scmp.eq.s32.totalorder %s2690_s21, 1 }
  0x1b   : > { %vm256_vm0 = vcmask (%p247_p13), 7168   ;;  %v2702_v0 = vmov (%p247_p13), 0.0  }
  0x1c   : > { %255 = sbr.rel (!%p247_p13) target bundleno = 92 (0x5c), region = 44  ;;  %257 = vst.msk [vmem:[#allocation2] sm:$0xff] (%p247_p13), %vm256_vm0, %v2702_v0 }
  0x1d   : > { %258 = vst.msk [vmem:[#allocation2 + $0x8] sm:$0xff] (%p247_p13), %vm256_vm0, %v2702_v0 }
  0x1e   : > { %259 = vst.msk [vmem:[#allocation2 + $0x10] sm:$0xff] (%p247_p13), %vm256_vm0, %v2702_v0 }
  0x1f   : > { %260 = vst.msk [vmem:[#allocation2 + $0x18] sm:$0xff] (%p247_p13), %vm256_vm0, %v2702_v0 }
  0x20   : > { %261 = vst.msk [vmem:[#allocation2 + $0x20] sm:$0xff] (%p247_p13), %vm256_vm0, %v2702_v0 }
  0x21   : > { %262 = vst.msk [vmem:[#allocation2 + $0x28] sm:$0xff] %vm256_vm0, %v2702_v0 }
  0x22   : > { %263 = vst.msk [vmem:[#allocation2 + $0x30] sm:$0xff] %vm256_vm0, %v2702_v0 }
  0x23   : > { %264 = vst.msk [vmem:[#allocation2 + $0x38] sm:$0xff] %vm256_vm0, %v2702_v0 }
  0x24   : > { %265 = vst.msk [vmem:[#allocation2 + $0x40] sm:$0xff] %vm256_vm0, %v2702_v0 }
  0x25   : > { %266 = vst.msk [vmem:[#allocation2 + $0x48] sm:$0xff] %vm256_vm0, %v2702_v0 }
  0x26   : > { %267 = vst.msk [vmem:[#allocation2 + $0x50] sm:$0xff] %vm256_vm0, %v2702_v0 }
  0x27   : > { %268 = vst.msk [vmem:[#allocation2 + $0x58] sm:$0xff] %vm256_vm0, %v2702_v0 }
  0x28   : > { %269 = vst.msk [vmem:[#allocation2 + $0x60] sm:$0xff] %vm256_vm0, %v2702_v0 }
  0x29   : > { %270 = vst.msk [vmem:[#allocation2 + $0x68] sm:$0xff] %vm256_vm0, %v2702_v0 }
  0x2a   : > { %271 = vst.msk [vmem:[#allocation2 + $0x70] sm:$0xff] %vm256_vm0, %v2702_v0 }
  0x2b   : > { %272 = vst.msk [vmem:[#allocation2 + $0x78] sm:$0xff] %vm256_vm0, %v2702_v0 }
  0x2c   : > { %273 = vst.msk [vmem:[#allocation2 + $0x80] sm:$0xff] %vm256_vm0, %v2702_v0 }
  0x2d   : > { %274 = vst.msk [vmem:[#allocation2 + $0x88] sm:$0xff] %vm256_vm0, %v2702_v0 }
  0x2e   : > { %275 = vst.msk [vmem:[#allocation2 + $0x90] sm:$0xff] %vm256_vm0, %v2702_v0 }
  0x2f   : > { %276 = vst.msk [vmem:[#allocation2 + $0x98] sm:$0xff] %vm256_vm0, %v2702_v0 }
  0x30   : > { %277 = vst.msk [vmem:[#allocation2 + $0xa0] sm:$0xff] %vm256_vm0, %v2702_v0 }
  0x31   : > { %278 = vst.msk [vmem:[#allocation2 + $0xa8] sm:$0xff] %vm256_vm0, %v2702_v0 }
  0x32   : > { %279 = vst.msk [vmem:[#allocation2 + $0xb0] sm:$0xff] %vm256_vm0, %v2702_v0 }
  0x33   : > { %280 = vst.msk [vmem:[#allocation2 + $0xb8] sm:$0xff] %vm256_vm0, %v2702_v0 }
  0x34   : > { %281 = vst.msk [vmem:[#allocation2 + $0xc0] sm:$0xff] %vm256_vm0, %v2702_v0 }
  0x35   : > { %282 = vst.msk [vmem:[#allocation2 + $0xc8] sm:$0xff] %vm256_vm0, %v2702_v0 }
  0x36   : > { %283 = vst.msk [vmem:[#allocation2 + $0xd0] sm:$0xff] %vm256_vm0, %v2702_v0 }
  0x37   : > { %284 = vst.msk [vmem:[#allocation2 + $0xd8] sm:$0xff] %vm256_vm0, %v2702_v0 }
  0x38   : > { %285 = vst.msk [vmem:[#allocation2 + $0xe0] sm:$0xff] %vm256_vm0, %v2702_v0 }
  0x39   : > { %286 = vst.msk [vmem:[#allocation2 + $0xe8] sm:$0xff] %vm256_vm0, %v2702_v0 }
  0x3a   : > { %287 = vst.msk [vmem:[#allocation2 + $0xf0] sm:$0xff] %vm256_vm0, %v2702_v0 }
  0x3b   : > { %288 = vst.msk [vmem:[#allocation2 + $0xf8] sm:$0xff] %vm256_vm0, %v2702_v0 }
  0x3c   : > { %289 = vst.msk [vmem:[#allocation3] sm:$0xff] %vm256_vm0, %v2702_v0 }
  0x3d   : > { %290 = vst.msk [vmem:[#allocation3 + $0x8] sm:$0xff] %vm256_vm0, %v2702_v0 }
  0x3e   : > { %291 = vst.msk [vmem:[#allocation3 + $0x10] sm:$0xff] %vm256_vm0, %v2702_v0 }
  0x3f   : > { %292 = vst.msk [vmem:[#allocation3 + $0x18] sm:$0xff] %vm256_vm0, %v2702_v0 }
  0x40   : > { %293 = vst.msk [vmem:[#allocation3 + $0x20] sm:$0xff] %vm256_vm0, %v2702_v0 }
  0x41   : > { %294 = vst.msk [vmem:[#allocation3 + $0x28] sm:$0xff] %vm256_vm0, %v2702_v0 }
  0x42   : > { %295 = vst.msk [vmem:[#allocation3 + $0x30] sm:$0xff] %vm256_vm0, %v2702_v0 }
  0x43   : > { %296 = vst.msk [vmem:[#allocation3 + $0x38] sm:$0xff] %vm256_vm0, %v2702_v0 }
  0x44   : > { %297 = vst.msk [vmem:[#allocation3 + $0x40] sm:$0xff] %vm256_vm0, %v2702_v0 }
  0x45   : > { %298 = vst.msk [vmem:[#allocation3 + $0x48] sm:$0xff] %vm256_vm0, %v2702_v0 }
  0x46   : > { %299 = vst.msk [vmem:[#allocation3 + $0x50] sm:$0xff] %vm256_vm0, %v2702_v0 }
  0x47   : > { %300 = vst.msk [vmem:[#allocation3 + $0x58] sm:$0xff] %vm256_vm0, %v2702_v0 }
  0x48   : > { %301 = vst.msk [vmem:[#allocation3 + $0x60] sm:$0xff] %vm256_vm0, %v2702_v0 }
  0x49   : > { %302 = vst.msk [vmem:[#allocation3 + $0x68] sm:$0xff] %vm256_vm0, %v2702_v0 }
  0x4a   : > { %303 = vst.msk [vmem:[#allocation3 + $0x70] sm:$0xff] %vm256_vm0, %v2702_v0 }
  0x4b   : > { %304 = vst.msk [vmem:[#allocation3 + $0x78] sm:$0xff] %vm256_vm0, %v2702_v0 }
  0x4c   : > { %305 = vst.msk [vmem:[#allocation3 + $0x80] sm:$0xff] %vm256_vm0, %v2702_v0 }
  0x4d   : > { %306 = vst.msk [vmem:[#allocation3 + $0x88] sm:$0xff] %vm256_vm0, %v2702_v0 }
  0x4e   : > { %307 = vst.msk [vmem:[#allocation3 + $0x90] sm:$0xff] %vm256_vm0, %v2702_v0 }
  0x4f   : > { %308 = vst.msk [vmem:[#allocation3 + $0x98] sm:$0xff] %vm256_vm0, %v2702_v0 }
  0x50   : > { %309 = vst.msk [vmem:[#allocation3 + $0xa0] sm:$0xff] %vm256_vm0, %v2702_v0 }
  0x51   : > { %310 = vst.msk [vmem:[#allocation3 + $0xa8] sm:$0xff] %vm256_vm0, %v2702_v0 }
  0x52   : > { %311 = vst.msk [vmem:[#allocation3 + $0xb0] sm:$0xff] %vm256_vm0, %v2702_v0 }
  0x53   : > { %312 = vst.msk [vmem:[#allocation3 + $0xb8] sm:$0xff] %vm256_vm0, %v2702_v0 }
  0x54   : > { %313 = vst.msk [vmem:[#allocation3 + $0xc0] sm:$0xff] %vm256_vm0, %v2702_v0 }
  0x55   : > { %314 = vst.msk [vmem:[#allocation3 + $0xc8] sm:$0xff] %vm256_vm0, %v2702_v0 }
  0x56   : > { %315 = vst.msk [vmem:[#allocation3 + $0xd0] sm:$0xff] %vm256_vm0, %v2702_v0 }
  0x57   : > { %316 = vst.msk [vmem:[#allocation3 + $0xd8] sm:$0xff] %vm256_vm0, %v2702_v0 }
  0x58   : > { %317 = vst.msk [vmem:[#allocation3 + $0xe0] sm:$0xff] %vm256_vm0, %v2702_v0 }
  0x59   : > { %318 = vst.msk [vmem:[#allocation3 + $0xe8] sm:$0xff] %vm256_vm0, %v2702_v0 }
  0x5a   : > { %319 = vst.msk [vmem:[#allocation3 + $0xf0] sm:$0xff] %vm256_vm0, %v2702_v0 }
  0x5b   : > { %320 = vst.msk [vmem:[#allocation3 + $0xf8] sm:$0xff] %vm256_vm0, %v2702_v0 }
  0x5c PF: > { %v377_v1 = vld [vmem:[%s2794_s28 + $0x1c0] sm:$0xff]  ;;  %v378_v3 = vld [vmem:[%s2794_s28 + $0x1c8] sm:$0xff]  ;;  %v379_v6 = vld [vmem:[%s2794_s28 + $0x1d0] sm:$0xff]  ;;  %vm1125_vm1 = vcmask 7168  }
  0x5d   : > { %v381_v2 = vld [vmem:[%s2794_s28 + $0x1e0] sm:$0xff]  ;;  %v382_v5 = vld [vmem:[%s2794_s28 + $0x1e8] sm:$0xff]  ;;  %v383_v7 = vld [vmem:[%s2794_s28 + $0x1f0] sm:$0xff] }
  0x5e   : > { %v413_v4 = vpack.c.bf16 %v381_v2, %v377_v1  ;;  %v414_v8 = vpack.c.bf16 %v382_v5, %v378_v3  ;;  %v415_v9 = vpack.c.bf16 %v383_v7, %v379_v6  ;;  %v380_v10 = vld [vmem:[%s2794_s28 + $0x1d8] sm:$0xff]  ;;  %v369_v12 = vld [vmem:[%s2794_s28 + $0x180] sm:$0xff]  ;;  %v370_v15 = vld [vmem:[%s2794_s28 + $0x188] sm:$0xff] }
  0x5f   : > { %v384_v11 = vld [vmem:[%s2794_s28 + $0x1f8] sm:$0xff]  ;;  %v373_v14 = vld [vmem:[%s2794_s28 + $0x1a0] sm:$0xff]  ;;  %v374_v16 = vld [vmem:[%s2794_s28 + $0x1a8] sm:$0xff] }
  0x60   : > { %545 = vmatpush.bf16.msra.mxu0 %v413_v4  ;;  %v416_v13 = vpack.c.bf16 %v384_v11, %v380_v10  ;;  %634 = vmatpush.bf16.msra.mxu1 %v414_v8  ;;  %v409_v17 = vpack.c.bf16 %v373_v14, %v369_v12  ;;  %v410_v18 = vpack.c.bf16 %v374_v16, %v370_v15  ;;  %v371_v19 = vld [vmem:[%s2794_s28 + $0x190] sm:$0xff]  ;;  %v372_v21 = vld [vmem:[%s2794_s28 + $0x198] sm:$0xff]  ;;  %v361_v24 = vld [vmem:[%s2794_s28 + $0x140] sm:$0xff] }
  0x61   : > { %723 = vmatpush.bf16.msra.mxu2 %v415_v9  ;;  %v375_v20 = vld [vmem:[%s2794_s28 + $0x1b0] sm:$0xff]  ;;  %v376_v23 = vld [vmem:[%s2794_s28 + $0x1b8] sm:$0xff]  ;;  %v365_v25 = vld [vmem:[%s2794_s28 + $0x160] sm:$0xff] }
  0x62   : > { %812 = vmatpush.bf16.msra.mxu3 %v416_v13  ;;  %v411_v22 = vpack.c.bf16 %v375_v20, %v371_v19  ;;  %v412_v26 = vpack.c.bf16 %v376_v23, %v372_v21  ;;  %v362_v27 = vld [vmem:[%s2794_s28 + $0x148] sm:$0xff]  ;;  %v363_v29 = vld [vmem:[%s2794_s28 + $0x150] sm:$0xff]  ;;  %v405_v30 = vpack.c.bf16 %v365_v25, %v361_v24  ;;  %v364_v32 = vld [vmem:[%s2794_s28 + $0x158] sm:$0xff] }
  0x63   : > { %v366_v28 = vld [vmem:[%s2794_s28 + $0x168] sm:$0xff]  ;;  %v367_v31 = vld [vmem:[%s2794_s28 + $0x170] sm:$0xff]  ;;  %v368_v33 = vld [vmem:[%s2794_s28 + $0x178] sm:$0xff] }
  0x64   : > { %546 = vmatpush.bf16.msra.mxu0 %v409_v17  ;;  %635 = vmatpush.bf16.msra.mxu1 %v410_v18  ;;  %v406_v34 = vpack.c.bf16 %v366_v28, %v362_v27  ;;  %v407_v35 = vpack.c.bf16 %v367_v31, %v363_v29  ;;  %v353_v36 = vld [vmem:[%s2794_s28 + $0x100] sm:$0xff]  ;;  %v354_v38 = vld [vmem:[%s2794_s28 + $0x108] sm:$0xff]  ;;  %v408_v39 = vpack.c.bf16 %v368_v33, %v364_v32  ;;  %v355_v41 = vld [vmem:[%s2794_s28 + $0x110] sm:$0xff] }
  0x65   : > { %724 = vmatpush.bf16.msra.mxu2 %v411_v22  ;;  %v357_v37 = vld [vmem:[%s2794_s28 + $0x120] sm:$0xff]  ;;  %v358_v40 = vld [vmem:[%s2794_s28 + $0x128] sm:$0xff]  ;;  %v359_v42 = vld [vmem:[%s2794_s28 + $0x130] sm:$0xff] }
  0x66   : > { %813 = vmatpush.bf16.msra.mxu3 %v412_v26  ;;  %v356_v43 = vld [vmem:[%s2794_s28 + $0x118] sm:$0xff]  ;;  %v401_v45 = vpack.c.bf16 %v357_v37, %v353_v36  ;;  %v402_v46 = vpack.c.bf16 %v358_v40, %v354_v38  ;;  %v403_v47 = vpack.c.bf16 %v359_v42, %v355_v41  ;;  %v345_v48 = vld [vmem:[%s2794_s28 + $0xc0] sm:$0xff]  ;;  %v346_v50 = vld [vmem:[%s2794_s28 + $0xc8] sm:$0xff] }
  0x67   : > { %v360_v44 = vld [vmem:[%s2794_s28 + $0x138] sm:$0xff]  ;;  %v349_v49 = vld [vmem:[%s2794_s28 + $0xe0] sm:$0xff]  ;;  %v350_v52 = vld [vmem:[%s2794_s28 + $0xe8] sm:$0xff] }
  0x68   : > { %547 = vmatpush.bf16.msra.mxu0 %v405_v30  ;;  %636 = vmatpush.bf16.msra.mxu1 %v406_v34  ;;  %v404_v51 = vpack.c.bf16 %v360_v44, %v356_v43  ;;  %v347_v53 = vld [vmem:[%s2794_s28 + $0xd0] sm:$0xff]  ;;  %v348_v55 = vld [vmem:[%s2794_s28 + $0xd8] sm:$0xff]  ;;  %v397_v57 = vpack.c.bf16 %v349_v49, %v345_v48  ;;  %v398_v58 = vpack.c.bf16 %v350_v52, %v346_v50  ;;  %v337_v60 = vld [vmem:[%s2794_s28 + $0x80] sm:$0xff] }
  0x69   : > { %725 = vmatpush.bf16.msra.mxu2 %v407_v35  ;;  %v351_v54 = vld [vmem:[%s2794_s28 + $0xf0] sm:$0xff]  ;;  %v352_v56 = vld [vmem:[%s2794_s28 + $0xf8] sm:$0xff]  ;;  %v341_v61 = vld [vmem:[%s2794_s28 + $0xa0] sm:$0xff] }
  0x6a   : > { %814 = vmatpush.bf16.msra.mxu3 %v408_v39  ;;  %v399_v59 = vpack.c.bf16 %v351_v54, %v347_v53  ;;  %v338_v62 = vld [vmem:[%s2794_s28 + $0x88] sm:$0xff]  ;;  %v400_v63 = vpack.c.bf16 %v352_v56, %v348_v55  ;;  %v339_v1 = vld [vmem:[%s2794_s28 + $0x90] sm:$0xff]  ;;  %v340_v3 = vld [vmem:[%s2794_s28 + $0x98] sm:$0xff]  ;;  %v393_v5 = vpack.c.bf16 %v341_v61, %v337_v60 }
  0x6b   : > { %v342_v0 = vld [vmem:[%s2794_s28 + $0xa8] sm:$0xff]  ;;  %v343_v2 = vld [vmem:[%s2794_s28 + $0xb0] sm:$0xff]  ;;  %v344_v4 = vld [vmem:[%s2794_s28 + $0xb8] sm:$0xff] }
  0x6c   : > { %548 = vmatpush.bf16.msra.mxu0 %v401_v45  ;;  %637 = vmatpush.bf16.msra.mxu1 %v402_v46  ;;  %v394_v6 = vpack.c.bf16 %v342_v0, %v338_v62  ;;  %v395_v7 = vpack.c.bf16 %v343_v2, %v339_v1  ;;  %v329_v8 = vld [vmem:[%s2794_s28 + $0x40] sm:$0xff]  ;;  %v330_v10 = vld [vmem:[%s2794_s28 + $0x48] sm:$0xff]  ;;  %v396_v11 = vpack.c.bf16 %v344_v4, %v340_v3  ;;  %v331_v13 = vld [vmem:[%s2794_s28 + $0x50] sm:$0xff] }
  0x6d   : > { %726 = vmatpush.bf16.msra.mxu2 %v403_v47  ;;  %v333_v9 = vld [vmem:[%s2794_s28 + $0x60] sm:$0xff]  ;;  %v334_v12 = vld [vmem:[%s2794_s28 + $0x68] sm:$0xff]  ;;  %v335_v14 = vld [vmem:[%s2794_s28 + $0x70] sm:$0xff] }
  0x6e   : > { %815 = vmatpush.bf16.msra.mxu3 %v404_v51  ;;  %v332_v15 = vld [vmem:[%s2794_s28 + $0x58] sm:$0xff]  ;;  %v389_v17 = vpack.c.bf16 %v333_v9, %v329_v8  ;;  %v390_v18 = vpack.c.bf16 %v334_v12, %v330_v10  ;;  %v391_v19 = vpack.c.bf16 %v335_v14, %v331_v13  ;;  %v321_v20 = vld [vmem:[%s2794_s28] sm:$0xff]  ;;  %v322_v22 = vld [vmem:[%s2794_s28 + $0x8] sm:$0xff] }
  0x6f   : > { %v336_v16 = vld [vmem:[%s2794_s28 + $0x78] sm:$0xff]  ;;  %v325_v21 = vld [vmem:[%s2794_s28 + $0x20] sm:$0xff]  ;;  %v326_v24 = vld [vmem:[%s2794_s28 + $0x28] sm:$0xff] }
  0x70   : > { %549 = vmatpush.bf16.msra.mxu0 %v397_v57  ;;  %638 = vmatpush.bf16.msra.mxu1 %v398_v58  ;;  %v392_v23 = vpack.c.bf16 %v336_v16, %v332_v15  ;;  %v323_v25 = vld [vmem:[%s2794_s28 + $0x10] sm:$0xff]  ;;  %v324_v27 = vld [vmem:[%s2794_s28 + $0x18] sm:$0xff]  ;;  %v385_v29 = vpack.c.bf16 %v325_v21, %v321_v20  ;;  %v386_v30 = vpack.c.bf16 %v326_v24, %v322_v22  ;;  %v2480_v33 = vld [vmem:[%s4551_s1] sm:$0xff] }
  0x71   : > { %727 = vmatpush.bf16.msra.mxu2 %v399_v59  ;;  %v327_v26 = vld [vmem:[%s2794_s28 + $0x30] sm:$0xff]  ;;  %v328_v28 = vld [vmem:[%s2794_s28 + $0x38] sm:$0xff]  ;;  %v2481_v34 = vld [vmem:[%s4551_s1 + $0x8] sm:$0xff] }
  0x72   : > { %816 = vmatpush.bf16.msra.mxu3 %v400_v63  ;;  %v387_v31 = vpack.c.bf16 %v327_v26, %v323_v25  ;;  %v388_v32 = vpack.c.bf16 %v328_v28, %v324_v27  ;;  %v2482_v35 = vld [vmem:[%s4551_s1 + $0x10] sm:$0xff]  ;;  %v2483_v36 = vld [vmem:[%s4551_s1 + $0x18] sm:$0xff]  ;;  %v2484_v37 = vld [vmem:[%s4551_s1 + $0x20] sm:$0xff] }
  0x73   : > { %v2485_v38 = vld [vmem:[%s4551_s1 + $0x28] sm:$0xff]  ;;  %v2486_v39 = vld [vmem:[%s4551_s1 + $0x30] sm:$0xff]  ;;  %v2487_v40 = vld [vmem:[%s4551_s1 + $0x38] sm:$0xff] }
  0x74   : > { %550 = vmatpush.bf16.msra.mxu0 %v393_v5  ;;  %639 = vmatpush.bf16.msra.mxu1 %v394_v6  ;;  %v2488_v41 = vld [vmem:[%s4551_s1 + $0x40] sm:$0xff]  ;;  %v2489_v60 = vld [vmem:[%s4551_s1 + $0x48] sm:$0xff]  ;;  %v2490_v24 = vld [vmem:[%s4551_s1 + $0x50] sm:$0xff] }
  0x75   : > { %728 = vmatpush.bf16.msra.mxu2 %v395_v7 }
  0x76   : > { %817 = vmatpush.bf16.msra.mxu3 %v396_v11 }
  0x78   : > { %551 = vmatpush.bf16.msra.mxu0 %v389_v17  ;;  %640 = vmatpush.bf16.msra.mxu1 %v390_v18 }
  0x79   : > { %729 = vmatpush.bf16.msra.mxu2 %v391_v19 }
  0x7a   : > { %818 = vmatpush.bf16.msra.mxu3 %v392_v23 }
  0x7c   : > { %552 = vmatpush.bf16.msra.mxu0 %v385_v29  ;;  %641 = vmatpush.bf16.msra.mxu1 %v386_v30 }
  0x7d   : > { %730 = vmatpush.bf16.msra.mxu2 %v387_v31 }
  0x7e   : > { %819 = vmatpush.bf16.msra.mxu3 %v388_v32 }
  0x7f   : > { %553 = vmatmul.bf16.vlgmr.msra.gmra.mxu0 %v2480_v33  ;;  %642 = vmatmul.bf16.vlgmr.msra.gmra.mxu1 %v2480_v33 }
  0x80   : > { %731 = vmatmul.bf16.vlgmr.msra.gmra.mxu2 %v2480_v33 }
  0x81   : > { %820 = vmatmul.bf16.vlgmr.msra.gmra.mxu3 %v2480_v33 }
  0x8f   : > { %558 = vmatmul.bf16.gmra.mxu0 %v2481_v34  ;;  %647 = vmatmul.bf16.gmra.mxu1 %v2481_v34 }
  0x90   : > { %736 = vmatmul.bf16.gmra.mxu2 %v2481_v34 }
  0x91   : > { %825 = vmatmul.bf16.gmra.mxu3 %v2481_v34 }
  0x9f   : > { %563 = vmatmul.bf16.gmra.mxu0 %v2482_v35  ;;  %652 = vmatmul.bf16.gmra.mxu1 %v2482_v35 }
  0xa0   : > { %741 = vmatmul.bf16.gmra.mxu2 %v2482_v35 }
  0xa1   : > { %830 = vmatmul.bf16.gmra.mxu3 %v2482_v35 }
  0xaf   : > { %568 = vmatmul.bf16.gmra.mxu0 %v2483_v36  ;;  %657 = vmatmul.bf16.gmra.mxu1 %v2483_v36 }
  0xb0   : > { %746 = vmatmul.bf16.gmra.mxu2 %v2483_v36 }
  0xb1   : > { %835 = vmatmul.bf16.gmra.mxu3 %v2483_v36 }
  0xbf   : > { %573 = vmatmul.bf16.gmra.mxu0 %v2484_v37  ;;  %662 = vmatmul.bf16.gmra.mxu1 %v2484_v37 }
  0xc0   : > { %751 = vmatmul.bf16.gmra.mxu2 %v2484_v37 }
  0xc1   : > { %840 = vmatmul.bf16.gmra.mxu3 %v2484_v37 }
  0xcf   : > { %578 = vmatmul.bf16.gmra.mxu0 %v2485_v38  ;;  %667 = vmatmul.bf16.gmra.mxu1 %v2485_v38 }
  0xd0   : > { %756 = vmatmul.bf16.gmra.mxu2 %v2485_v38 }
  0xd1   : > { %845 = vmatmul.bf16.gmra.mxu3 %v2485_v38 }
  0xdf   : > { %583 = vmatmul.bf16.gmra.mxu0 %v2486_v39  ;;  %672 = vmatmul.bf16.gmra.mxu1 %v2486_v39 }
  0xe0   : > { %761 = vmatmul.bf16.gmra.mxu2 %v2486_v39 }
  0xe1   : > { %850 = vmatmul.bf16.gmra.mxu3 %v2486_v39 }
  0xef   : > { %588 = vmatmul.bf16.gmra.mxu0 %v2487_v40  ;;  %677 = vmatmul.bf16.gmra.mxu1 %v2487_v40 }
  0xf0   : > { %766 = vmatmul.bf16.gmra.mxu2 %v2487_v40 }
  0xf1   : > { %855 = vmatmul.bf16.gmra.mxu3 %v2487_v40 }
  0xfc   : > { %v554_v42 = vpop.f32.mrf.mxu0  ;;  %v643_v43 = vpop.f32.mrf.mxu1 }
  0xfd   : > { %v1190_v44 = vmul.f32 %v554_v42, %v554_v42  ;;  %v1191_v45 = vmul.f32 %v643_v43, %v643_v43  ;;  %v933_v46 = vadd.f32 %v643_v43, %v554_v42 }
  0xff   : > { %593 = vmatmul.bf16.gmra.mxu0 %v2488_v41  ;;  %682 = vmatmul.bf16.gmra.mxu1 %v2488_v41  ;;  %v1318_v47 = vadd.f32 %v1191_v45, %v1190_v44 }
 0x100   : > { %771 = vmatmul.bf16.gmra.mxu2 %v2488_v41 }
 0x101   : > { %860 = vmatmul.bf16.gmra.mxu3 %v2488_v41 }
 0x103   : > { %v732_v48 = vpop.f32.mrf.mxu2 }
 0x104   : > { %v934_v49 = vadd.f32 %v933_v46, %v732_v48  ;;  %v1192_v50 = vmul.f32 %v732_v48, %v732_v48  ;;  %v821_v51 = vpop.f32.mrf.mxu3  ;;  %v556_v52 = vpop.f32.mrf.mxu0 }
 0x105   : > { %v1193_v53 = vmul.f32 %v821_v51, %v821_v51  ;;  %v645_v54 = vpop.f32.mrf.mxu1  ;;  %v1194_v0 = vmul.f32 %v556_v52, %v556_v52 }
 0x106   : > { %v935_v55 = vadd.f32 %v934_v49, %v821_v51  ;;  %v1319_v56 = vadd.f32 %v1318_v47, %v1192_v50  ;;  %v938_v58 = vadd.f32 %v645_v54, %v556_v52  ;;  %v1195_v1 = vmul.f32 %v645_v54, %v645_v54 }
 0x108   : > { %936 = vadd.xlane.f32.xlu0 %v935_v55  ;;  %v1320_v57 = vadd.f32 %v1319_v56, %v1193_v53  ;;  %v1323_v6 = vadd.f32 %v1195_v1, %v1194_v0  ;;  %v2491_v56 = vld [vmem:[%s4551_s1 + $0x58] sm:$0xff] }
 0x10a   : > { %1321 = vadd.xlane.f32.xlu2 %v1320_v57 }
 0x10b   : > { %v734_v59 = vpop.f32.mrf.mxu2 }
 0x10c   : > { %v823_v61 = vpop.f32.mrf.mxu3  ;;  %v559_v62 = vpop.f32.mrf.mxu0  ;;  %v939_v63 = vadd.f32 %v938_v58, %v734_v59  ;;  %v1196_v4 = vmul.f32 %v734_v59, %v734_v59 }
 0x10d   : > { %v648_v2 = vpop.f32.mrf.mxu1  ;;  %v1198_v7 = vmul.f32 %v559_v62, %v559_v62  ;;  %v1197_v15 = vmul.f32 %v823_v61, %v823_v61 }
 0x10e   : > { %v940_v3 = vadd.f32 %v939_v63, %v823_v61  ;;  %v943_v5 = vadd.f32 %v648_v2, %v559_v62  ;;  %v1199_v8 = vmul.f32 %v648_v2, %v648_v2  ;;  %v1324_v10 = vadd.f32 %v1323_v6, %v1196_v4 }
 0x10f   : > { %598 = vmatmul.bf16.gmra.mxu0 %v2489_v60  ;;  %687 = vmatmul.bf16.gmra.mxu1 %v2489_v60 }
 0x110   : > { %776 = vmatmul.bf16.gmra.mxu2 %v2489_v60  ;;  %941 = vadd.xlane.f32.xlu0 %v940_v3  ;;  %v1328_v17 = vadd.f32 %v1199_v8, %v1198_v7  ;;  %v1325_v19 = vadd.f32 %v1324_v10, %v1197_v15 }
 0x111   : > { %865 = vmatmul.bf16.gmra.mxu3 %v2489_v60 }
 0x113   : > { %v737_v9 = vpop.f32.mrf.mxu2 }
 0x114   : > { %v944_v11 = vadd.f32 %v943_v5, %v737_v9  ;;  %v826_v12 = vpop.f32.mrf.mxu3  ;;  %v561_v13 = vpop.f32.mrf.mxu0  ;;  %v1200_v18 = vmul.f32 %v737_v9, %v737_v9 }
 0x115   : > { %v650_v14 = vpop.f32.mrf.mxu1  ;;  %v1202_v20 = vmul.f32 %v561_v13, %v561_v13  ;;  %v1201_v22 = vmul.f32 %v826_v12, %v826_v12 }
 0x116   : > { %v945_v16 = vadd.f32 %v944_v11, %v826_v12  ;;  %v1203_v21 = vmul.f32 %v650_v14, %v650_v14  ;;  %v1329_v25 = vadd.f32 %v1328_v17, %v1200_v18  ;;  %v948_v38 = vadd.f32 %v650_v14, %v561_v13 }
 0x118   : > { %946 = vadd.xlane.f32.xlu1 %v945_v16  ;;  %1326 = vadd.xlane.f32.xlu0 %v1325_v19  ;;  %v1333_v29 = vadd.f32 %v1203_v21, %v1202_v20  ;;  %v1330_v35 = vadd.f32 %v1329_v25, %v1201_v22  ;;  %v2492_v21 = vld [vmem:[%s4551_s1 + $0x60] sm:$0xff] }
 0x11b   : > { %v739_v23 = vpop.f32.mrf.mxu2 }
 0x11c   : > { %v1204_v26 = vmul.f32 %v739_v23, %v739_v23  ;;  %v828_v27 = vpop.f32.mrf.mxu3  ;;  %v564_v28 = vpop.f32.mrf.mxu0  ;;  %v949_v41 = vadd.f32 %v948_v38, %v739_v23 }
 0x11d   : > { %v653_v30 = vpop.f32.mrf.mxu1  ;;  %v1206_v31 = vmul.f32 %v564_v28, %v564_v28  ;;  %v1205_v33 = vmul.f32 %v828_v27, %v828_v27 }
 0x11e   : > { %v1207_v32 = vmul.f32 %v653_v30, %v653_v30  ;;  %v1334_v34 = vadd.f32 %v1333_v29, %v1204_v26  ;;  %v953_v36 = vadd.f32 %v653_v30, %v564_v28  ;;  %v950_v49 = vadd.f32 %v949_v41, %v828_v27 }
 0x11f   : > { %603 = vmatmul.bf16.gmra.mxu0 %v2490_v24  ;;  %692 = vmatmul.bf16.gmra.mxu1 %v2490_v24 }
 0x120   : > { %781 = vmatmul.bf16.gmra.mxu2 %v2490_v24  ;;  %v1335_v37 = vadd.f32 %v1334_v34, %v1205_v33  ;;  %1331 = vadd.xlane.f32.xlu1 %v1330_v35  ;;  %v1338_v39 = vadd.f32 %v1207_v32, %v1206_v31 }
 0x121   : > { %870 = vmatmul.bf16.gmra.mxu3 %v2490_v24 }
 0x122   : > { %1336 = vadd.xlane.f32.xlu2 %v1335_v37 }
 0x123   : > { %v742_v40 = vpop.f32.mrf.mxu2 }
 0x124   : > { %v954_v42 = vadd.f32 %v953_v36, %v742_v40  ;;  %v1208_v43 = vmul.f32 %v742_v40, %v742_v40  ;;  %v831_v44 = vpop.f32.mrf.mxu3  ;;  %v566_v45 = vpop.f32.mrf.mxu0 }
 0x125   : > { %v1209_v46 = vmul.f32 %v831_v44, %v831_v44  ;;  %v655_v47 = vpop.f32.mrf.mxu1  ;;  %v1210_v50 = vmul.f32 %v566_v45, %v566_v45 }
 0x126   : > { %v1339_v48 = vadd.f32 %v1338_v39, %v1208_v43  ;;  %v1211_v51 = vmul.f32 %v655_v47, %v655_v47  ;;  %v955_v53 = vadd.f32 %v954_v42, %v831_v44  ;;  %v958_v54 = vadd.f32 %v655_v47, %v566_v45 }
 0x128   : > { %v1340_v52 = vadd.f32 %v1339_v48, %v1209_v46  ;;  %951 = vadd.xlane.f32.xlu1 %v950_v49  ;;  %v1343_v60 = vadd.f32 %v1211_v51, %v1210_v50  ;;  %v2493_v50 = vld [vmem:[%s4551_s1 + $0x68] sm:$0xff] }
 0x12a   : > { %1341 = vadd.xlane.f32.xlu0 %v1340_v52  ;;  %956 = vadd.xlane.f32.xlu2 %v955_v53 }
 0x12b   : > { %v744_v55 = vpop.f32.mrf.mxu2 }
 0x12c   : > { %v1212_v57 = vmul.f32 %v744_v55, %v744_v55  ;;  %v833_v58 = vpop.f32.mrf.mxu3  ;;  %v569_v59 = vpop.f32.mrf.mxu0  ;;  %v959_v61 = vadd.f32 %v958_v54, %v744_v55 }
 0x12d   : > { %v658_v62 = vpop.f32.mrf.mxu1  ;;  %v1214_v63 = vmul.f32 %v569_v59, %v569_v59  ;;  %v1213_v1 = vmul.f32 %v833_v58, %v833_v58 }
 0x12e   : > { %v1215_v0 = vmul.f32 %v658_v62, %v658_v62  ;;  %v1344_v2 = vadd.f32 %v1343_v60, %v1212_v57  ;;  %v963_v3 = vadd.f32 %v658_v62, %v569_v59  ;;  %v960_v5 = vadd.f32 %v959_v61, %v833_v58 }
 0x12f   : > { %608 = vmatmul.bf16.gmra.mxu0 %v2491_v56  ;;  %697 = vmatmul.bf16.gmra.mxu1 %v2491_v56 }
 0x130   : > { %786 = vmatmul.bf16.gmra.mxu2 %v2491_v56  ;;  %v1345_v4 = vadd.f32 %v1344_v2, %v1213_v1  ;;  %v1348_v6 = vadd.f32 %v1215_v0, %v1214_v63 }
 0x131   : > { %875 = vmatmul.bf16.gmra.mxu3 %v2491_v56 }
 0x132   : > { %1346 = vadd.xlane.f32.xlu1 %v1345_v4  ;;  %961 = vadd.xlane.f32.xlu2 %v960_v5 }
 0x133   : > { %v747_v7 = vpop.f32.mrf.mxu2 }
 0x134   : > { %v964_v8 = vadd.f32 %v963_v3, %v747_v7  ;;  %v1216_v9 = vmul.f32 %v747_v7, %v747_v7  ;;  %v836_v10 = vpop.f32.mrf.mxu3  ;;  %v571_v11 = vpop.f32.mrf.mxu0 }
 0x135   : > { %v1217_v12 = vmul.f32 %v836_v10, %v836_v10  ;;  %v660_v13 = vpop.f32.mrf.mxu1  ;;  %v1218_v16 = vmul.f32 %v571_v11, %v571_v11 }
 0x136   : > { %v965_v14 = vadd.f32 %v964_v8, %v836_v10  ;;  %v1349_v15 = vadd.f32 %v1348_v6, %v1216_v9  ;;  %v1219_v17 = vmul.f32 %v660_v13, %v660_v13  ;;  %v968_v19 = vadd.f32 %v660_v13, %v571_v11 }
 0x138   : > { %966 = vadd.xlane.f32.xlu0 %v965_v14  ;;  %v1350_v18 = vadd.f32 %v1349_v15, %v1217_v12  ;;  %v1353_v26 = vadd.f32 %v1219_v17, %v1218_v16  ;;  %v2494_v15 = vld [vmem:[%s4551_s1 + $0x70] sm:$0xff] }
 0x13a   : > { %1351 = vadd.xlane.f32.xlu2 %v1350_v18 }
 0x13b   : > { %v749_v20 = vpop.f32.mrf.mxu2 }
 0x13c   : > { %v1220_v22 = vmul.f32 %v749_v20, %v749_v20  ;;  %v838_v23 = vpop.f32.mrf.mxu3  ;;  %v574_v24 = vpop.f32.mrf.mxu0  ;;  %v969_v25 = vadd.f32 %v968_v19, %v749_v20 }
 0x13d   : > { %v1222_v27 = vmul.f32 %v574_v24, %v574_v24  ;;  %v663_v28 = vpop.f32.mrf.mxu1  ;;  %v1221_v31 = vmul.f32 %v838_v23, %v838_v23 }
 0x13e   : > { %v1223_v29 = vmul.f32 %v663_v28, %v663_v28  ;;  %v970_v30 = vadd.f32 %v969_v25, %v838_v23  ;;  %v1354_v32 = vadd.f32 %v1353_v26, %v1220_v22  ;;  %v973_v33 = vadd.f32 %v663_v28, %v574_v24 }
 0x13f   : > { %613 = vmatmul.bf16.gmra.mxu0 %v2492_v21  ;;  %702 = vmatmul.bf16.gmra.mxu1 %v2492_v21 }
 0x140   : > { %791 = vmatmul.bf16.gmra.mxu2 %v2492_v21  ;;  %v1355_v34 = vadd.f32 %v1354_v32, %v1221_v31  ;;  %971 = vadd.xlane.f32.xlu1 %v970_v30  ;;  %v1358_v35 = vadd.f32 %v1223_v29, %v1222_v27 }
 0x141   : > { %880 = vmatmul.bf16.gmra.mxu3 %v2492_v21 }
 0x142   : > { %1356 = vadd.xlane.f32.xlu0 %v1355_v34 }
 0x143   : > { %v752_v36 = vpop.f32.mrf.mxu2 }
 0x144   : > { %v974_v37 = vadd.f32 %v973_v33, %v752_v36  ;;  %v1224_v38 = vmul.f32 %v752_v36, %v752_v36  ;;  %v841_v39 = vpop.f32.mrf.mxu3  ;;  %v576_v40 = vpop.f32.mrf.mxu0 }
 0x145   : > { %v1225_v41 = vmul.f32 %v841_v39, %v841_v39  ;;  %v665_v42 = vpop.f32.mrf.mxu1  ;;  %v1226_v45 = vmul.f32 %v576_v40, %v576_v40 }
 0x146   : > { %v975_v43 = vadd.f32 %v974_v37, %v841_v39  ;;  %v1359_v44 = vadd.f32 %v1358_v35, %v1224_v38  ;;  %v1227_v46 = vmul.f32 %v665_v42, %v665_v42  ;;  %v978_v48 = vadd.f32 %v665_v42, %v576_v40 }
 0x148   : > { %976 = vadd.xlane.f32.xlu2 %v975_v43  ;;  %v1360_v47 = vadd.f32 %v1359_v44, %v1225_v41  ;;  %v1363_v51 = vadd.f32 %v1227_v46, %v1226_v45  ;;  %v2495_v44 = vld [vmem:[%s4551_s1 + $0x78] sm:$0xff] }
 0x14a   : > { %1361 = vadd.xlane.f32.xlu1 %v1360_v47 }
 0x14b   : > { %v754_v49 = vpop.f32.mrf.mxu2 }
 0x14c   : > { %v979_v52 = vadd.f32 %v978_v48, %v754_v49  ;;  %v1228_v53 = vmul.f32 %v754_v49, %v754_v49  ;;  %v843_v54 = vpop.f32.mrf.mxu3  ;;  %v579_v55 = vpop.f32.mrf.mxu0 }
 0x14d   : > { %v1229_v56 = vmul.f32 %v843_v54, %v843_v54  ;;  %v668_v57 = vpop.f32.mrf.mxu1  ;;  %v1230_v58 = vmul.f32 %v579_v55, %v579_v55 }
 0x14e   : > { %v1231_v59 = vmul.f32 %v668_v57, %v668_v57  ;;  %v980_v60 = vadd.f32 %v979_v52, %v843_v54  ;;  %v1364_v61 = vadd.f32 %v1363_v51, %v1228_v53  ;;  %v983_v62 = vadd.f32 %v668_v57, %v579_v55 }
 0x14f   : > { %618 = vmatmul.bf16.gmra.mxu0 %v2493_v50  ;;  %707 = vmatmul.bf16.gmra.mxu1 %v2493_v50 }
 0x150   : > { %796 = vmatmul.bf16.gmra.mxu2 %v2493_v50  ;;  %v1365_v63 = vadd.f32 %v1364_v61, %v1229_v56  ;;  %981 = vadd.xlane.f32.xlu0 %v980_v60  ;;  %v1368_v0 = vadd.f32 %v1231_v59, %v1230_v58 }
 0x151   : > { %885 = vmatmul.bf16.gmra.mxu3 %v2493_v50 }
 0x152   : > { %1366 = vadd.xlane.f32.xlu2 %v1365_v63 }
 0x153   : > { %v757_v1 = vpop.f32.mrf.mxu2 }
 0x154   : > { %v984_v2 = vadd.f32 %v983_v62, %v757_v1  ;;  %v1232_v3 = vmul.f32 %v757_v1, %v757_v1  ;;  %v846_v4 = vpop.f32.mrf.mxu3  ;;  %v581_v5 = vpop.f32.mrf.mxu0 }
 0x155   : > { %v1233_v6 = vmul.f32 %v846_v4, %v846_v4  ;;  %v670_v7 = vpop.f32.mrf.mxu1  ;;  %v1234_v10 = vmul.f32 %v581_v5, %v581_v5 }
 0x156   : > { %v985_v8 = vadd.f32 %v984_v2, %v846_v4  ;;  %v1369_v9 = vadd.f32 %v1368_v0, %v1232_v3  ;;  %v1235_v11 = vmul.f32 %v670_v7, %v670_v7  ;;  %v988_v13 = vadd.f32 %v670_v7, %v581_v5  ;;  %v901_v7 = vld [vmem:[#allocation2] sm:$0xff] }
 0x158   : > { %986 = vadd.xlane.f32.xlu1 %v985_v8  ;;  %v1370_v12 = vadd.f32 %v1369_v9, %v1233_v6  ;;  %v1373_v16 = vadd.f32 %v1235_v11, %v1234_v10  ;;  %v1158_v11 = vld [vmem:[#allocation3] sm:$0xff] }
 0x15a   : > { %1371 = vadd.xlane.f32.xlu0 %v1370_v12 }
 0x15b   : > { %v759_v14 = vpop.f32.mrf.mxu2 }
 0x15c   : > { %v989_v17 = vadd.f32 %v988_v13, %v759_v14  ;;  %v1236_v18 = vmul.f32 %v759_v14, %v759_v14  ;;  %v848_v19 = vpop.f32.mrf.mxu3  ;;  %v584_v20 = vpop.f32.mrf.mxu0 }
 0x15d   : > { %v1237_v21 = vmul.f32 %v848_v19, %v848_v19  ;;  %v673_v22 = vpop.f32.mrf.mxu1  ;;  %v1238_v23 = vmul.f32 %v584_v20, %v584_v20 }
 0x15e   : > { %v1239_v24 = vmul.f32 %v673_v22, %v673_v22  ;;  %v990_v25 = vadd.f32 %v989_v17, %v848_v19  ;;  %v1374_v26 = vadd.f32 %v1373_v16, %v1236_v18  ;;  %v993_v27 = vadd.f32 %v673_v22, %v584_v20 }
 0x15f   : > { %623 = vmatmul.bf16.gmra.mxu0 %v2494_v15  ;;  %712 = vmatmul.bf16.gmra.mxu1 %v2494_v15 }
 0x160   : > { %801 = vmatmul.bf16.gmra.mxu2 %v2494_v15  ;;  %v1375_v28 = vadd.f32 %v1374_v26, %v1237_v21  ;;  %991 = vadd.xlane.f32.xlu2 %v990_v25  ;;  %v1378_v29 = vadd.f32 %v1239_v24, %v1238_v23 }
 0x161   : > { %890 = vmatmul.bf16.gmra.mxu3 %v2494_v15 }
 0x162   : > { %1376 = vadd.xlane.f32.xlu1 %v1375_v28  ;;  %v902_v28 = vld [vmem:[#allocation2 + $0x8] sm:$0xff] }
 0x163   : > { %v762_v30 = vpop.f32.mrf.mxu2 }
 0x164   : > { %v994_v31 = vadd.f32 %v993_v27, %v762_v30  ;;  %v1240_v32 = vmul.f32 %v762_v30, %v762_v30  ;;  %v851_v33 = vpop.f32.mrf.mxu3  ;;  %v586_v34 = vpop.f32.mrf.mxu0 }
 0x165   : > { %v1241_v35 = vmul.f32 %v851_v33, %v851_v33  ;;  %v675_v36 = vpop.f32.mrf.mxu1  ;;  %v1242_v39 = vmul.f32 %v586_v34, %v586_v34 }
 0x166   : > { %v995_v37 = vadd.f32 %v994_v31, %v851_v33  ;;  %v1379_v38 = vadd.f32 %v1378_v29, %v1240_v32  ;;  %v1243_v40 = vmul.f32 %v675_v36, %v675_v36  ;;  %v998_v42 = vadd.f32 %v675_v36, %v586_v34 }
 0x168   : > { %996 = vadd.xlane.f32.xlu0 %v995_v37  ;;  %v1380_v41 = vadd.f32 %v1379_v38, %v1241_v35  ;;  %v1383_v45 = vadd.f32 %v1243_v40, %v1242_v39 }
 0x16a   : > { %1381 = vadd.xlane.f32.xlu2 %v1380_v41 }
 0x16b   : > { %v764_v43 = vpop.f32.mrf.mxu2 }
 0x16c   : > { %v999_v46 = vadd.f32 %v998_v42, %v764_v43  ;;  %v1244_v47 = vmul.f32 %v764_v43, %v764_v43  ;;  %v853_v48 = vpop.f32.mrf.mxu3  ;;  %v589_v49 = vpop.f32.mrf.mxu0 }
 0x16d   : > { %v1245_v50 = vmul.f32 %v853_v48, %v853_v48  ;;  %v678_v51 = vpop.f32.mrf.mxu1  ;;  %v1246_v52 = vmul.f32 %v589_v49, %v589_v49 }
 0x16e   : > { %v1247_v53 = vmul.f32 %v678_v51, %v678_v51  ;;  %v1000_v54 = vadd.f32 %v999_v46, %v853_v48  ;;  %v1384_v55 = vadd.f32 %v1383_v45, %v1244_v47  ;;  %v1003_v56 = vadd.f32 %v678_v51, %v589_v49  ;;  %v1159_v46 = vld [vmem:[#allocation3 + $0x8] sm:$0xff] }
 0x16f   : > { %628 = vmatmul.bf16.gmra.mxu0 %v2495_v44  ;;  %717 = vmatmul.bf16.gmra.mxu1 %v2495_v44 }
 0x170   : > { %806 = vmatmul.bf16.gmra.mxu2 %v2495_v44  ;;  %v1385_v57 = vadd.f32 %v1384_v55, %v1245_v50  ;;  %1001 = vadd.xlane.f32.xlu1 %v1000_v54  ;;  %v1388_v58 = vadd.f32 %v1247_v53, %v1246_v52 }
 0x171   : > { %895 = vmatmul.bf16.gmra.mxu3 %v2495_v44  ;;  %v903_v44 = vld [vmem:[#allocation2 + $0x10] sm:$0xff] }
 0x172   : > { %1386 = vadd.xlane.f32.xlu0 %v1385_v57 }
 0x173   : > { %v767_v59 = vpop.f32.mrf.mxu2 }
 0x174   : > { %v1004_v60 = vadd.f32 %v1003_v56, %v767_v59  ;;  %v1248_v61 = vmul.f32 %v767_v59, %v767_v59  ;;  %v856_v62 = vpop.f32.mrf.mxu3  ;;  %v591_v63 = vpop.f32.mrf.mxu0 }
 0x175   : > { %v1249_v0 = vmul.f32 %v856_v62, %v856_v62  ;;  %v680_v1 = vpop.f32.mrf.mxu1  ;;  %v1250_v5 = vmul.f32 %v591_v63, %v591_v63 }
 0x176   : > { %v1005_v2 = vadd.f32 %v1004_v60, %v856_v62  ;;  %v1389_v3 = vadd.f32 %v1388_v58, %v1248_v61  ;;  %v1251_v6 = vmul.f32 %v680_v1, %v680_v1  ;;  %v1008_v8 = vadd.f32 %v680_v1, %v591_v63 }
 0x178   : > { %1006 = vadd.xlane.f32.xlu2 %v1005_v2  ;;  %v1390_v4 = vadd.f32 %v1389_v3, %v1249_v0  ;;  %v1393_v17 = vadd.f32 %v1251_v6, %v1250_v5  ;;  %v1160_v2 = vld [vmem:[#allocation3 + $0x10] sm:$0xff] }
 0x17a   : > { %1391 = vadd.xlane.f32.xlu1 %v1390_v4  ;;  %v1161_v4 = vld [vmem:[#allocation3 + $0x18] sm:$0xff] }
 0x17b   : > { %v769_v9 = vpop.f32.mrf.mxu2  ;;  %v937_v10 = vpop.xlane.xlu0 %936 }
 0x17c   : > { %v1009_v12 = vadd.f32 %v1008_v8, %v769_v9  ;;  %v1252_v13 = vmul.f32 %v769_v9, %v769_v9  ;;  %v858_v14 = vpop.f32.mrf.mxu3  ;;  %v1093_v15 = vadd.f32 %v937_v10, %v901_v7  ;;  %v594_v16 = vpop.f32.mrf.mxu0 }
 0x17d   : > { %v683_v18 = vpop.f32.mrf.mxu1  ;;  %v1322_v19 = vpop.xlane.xlu2 %1321  ;;  %v1253_v22 = vmul.f32 %v858_v14, %v858_v14  ;;  %v1254_v24 = vmul.f32 %v594_v16, %v594_v16 }
 0x17e   : > { %1126 = vst.msk [vmem:[#allocation2] sm:$0xff] %vm1125_vm1, %v1093_v15  ;;  %v1478_v20 = vadd.f32 %v1322_v19, %v1158_v11  ;;  %v1010_v21 = vadd.f32 %v1009_v12, %v858_v14  ;;  %v1255_v23 = vmul.f32 %v683_v18, %v683_v18  ;;  %v1394_v25 = vadd.f32 %v1393_v17, %v1252_v13 }
 0x17f   : > { %v1013_v26 = vadd.f32 %v683_v18, %v594_v16 }
 0x180   : > { %1510 = vst.msk [vmem:[#allocation3] sm:$0xff] %vm1125_vm1, %v1478_v20  ;;  %1011 = vadd.xlane.f32.xlu0 %v1010_v21  ;;  %v1395_v27 = vadd.f32 %v1394_v25, %v1253_v22  ;;  %v1398_v29 = vadd.f32 %v1255_v23, %v1254_v24  ;;  %v904_v21 = vld [vmem:[#allocation2 + $0x18] sm:$0xff]  ;;  %v1162_v23 = vld [vmem:[#allocation3 + $0x20] sm:$0xff] }
 0x182   : > { %1396 = vadd.xlane.f32.xlu2 %v1395_v27 }
 0x183   : > { %v772_v30 = vpop.f32.mrf.mxu2  ;;  %v942_v34 = vpop.xlane.xlu0 %941 }
 0x184   : > { %v1014_v31 = vadd.f32 %v1013_v26, %v772_v30  ;;  %v1256_v32 = vmul.f32 %v772_v30, %v772_v30  ;;  %v861_v33 = vpop.f32.mrf.mxu3  ;;  %v1094_v36 = vadd.f32 %v942_v34, %v902_v28  ;;  %v596_v37 = vpop.f32.mrf.mxu0 }
 0x185   : > { %v1257_v35 = vmul.f32 %v861_v33, %v861_v33  ;;  %v685_v38 = vpop.f32.mrf.mxu1  ;;  %v1258_v41 = vmul.f32 %v596_v37, %v596_v37 }
 0x186   : > { %v1015_v39 = vadd.f32 %v1014_v31, %v861_v33  ;;  %1127 = vst.msk [vmem:[#allocation2 + $0x8] sm:$0xff] %vm1125_vm1, %v1094_v36  ;;  %v1399_v40 = vadd.f32 %v1398_v29, %v1256_v32  ;;  %v1259_v42 = vmul.f32 %v685_v38, %v685_v38  ;;  %v1018_v45 = vadd.f32 %v685_v38, %v596_v37  ;;  %v905_v29 = vld [vmem:[#allocation2 + $0x20] sm:$0xff] }
 0x188   : > { %1016 = vadd.xlane.f32.xlu1 %v1015_v39  ;;  %v1400_v43 = vadd.f32 %v1399_v40, %v1257_v35  ;;  %v1403_v54 = vadd.f32 %v1259_v42, %v1258_v41 }
 0x18a   : > { %1401 = vadd.xlane.f32.xlu0 %v1400_v43 }
 0x18b   : > { %v774_v47 = vpop.f32.mrf.mxu2  ;;  %v947_v48 = vpop.xlane.xlu1 %946 }
 0x18c   : > { %v1019_v49 = vadd.f32 %v1018_v45, %v774_v47  ;;  %v1260_v50 = vmul.f32 %v774_v47, %v774_v47  ;;  %v863_v51 = vpop.f32.mrf.mxu3  ;;  %v1327_v52 = vpop.xlane.xlu0 %1326  ;;  %v1095_v53 = vadd.f32 %v947_v48, %v903_v44 }
 0x18d   : > { %v1479_v55 = vadd.f32 %v1327_v52, %v1159_v46  ;;  %v599_v56 = vpop.f32.mrf.mxu0  ;;  %v688_v57 = vpop.f32.mrf.mxu1  ;;  %v1261_v61 = vmul.f32 %v863_v51, %v863_v51  ;;  %v1163_v46 = vld [vmem:[#allocation3 + $0x28] sm:$0xff] }
 0x18e   : > { %1128 = vst.msk [vmem:[#allocation2 + $0x10] sm:$0xff] %vm1125_vm1, %v1095_v53  ;;  %v1262_v58 = vmul.f32 %v599_v56, %v599_v56  ;;  %v1263_v59 = vmul.f32 %v688_v57, %v688_v57  ;;  %v1020_v60 = vadd.f32 %v1019_v49, %v863_v51  ;;  %v1404_v62 = vadd.f32 %v1403_v54, %v1260_v50  ;;  %v906_v50 = vld [vmem:[#allocation2 + $0x28] sm:$0xff] }
 0x18f   : > { %1511 = vst.msk [vmem:[#allocation3 + $0x8] sm:$0xff] %vm1125_vm1, %v1479_v55  ;;  %v1023_v63 = vadd.f32 %v688_v57, %v599_v56 }
 0x190   : > { %1021 = vadd.xlane.f32.xlu2 %v1020_v60  ;;  %v1405_v0 = vadd.f32 %v1404_v62, %v1261_v61  ;;  %v1408_v1 = vadd.f32 %v1263_v59, %v1262_v58 }
 0x192   : > { %1406 = vadd.xlane.f32.xlu1 %v1405_v0 }
 0x193   : > { %v777_v3 = vpop.f32.mrf.mxu2  ;;  %v1332_v8 = vpop.xlane.xlu1 %1331 }
 0x194   : > { %v1024_v5 = vadd.f32 %v1023_v63, %v777_v3  ;;  %v1264_v6 = vmul.f32 %v777_v3, %v777_v3  ;;  %v866_v7 = vpop.f32.mrf.mxu3  ;;  %v1480_v10 = vadd.f32 %v1332_v8, %v1160_v2  ;;  %v907_v63 = vld [vmem:[#allocation2 + $0x30] sm:$0xff] }
 0x195   : > { %v1265_v9 = vmul.f32 %v866_v7, %v866_v7  ;;  %v690_v11 = vpop.f32.mrf.mxu1  ;;  %v1337_v12 = vpop.xlane.xlu2 %1336  ;;  %v1164_v8 = vld [vmem:[#allocation3 + $0x30] sm:$0xff] }
 0x196   : > { %v1481_v13 = vadd.f32 %v1337_v12, %v1161_v4  ;;  %v601_v14 = vpop.f32.mrf.mxu0  ;;  %v1025_v15 = vadd.f32 %v1024_v5, %v866_v7  ;;  %v1409_v16 = vadd.f32 %v1408_v1, %v1264_v6  ;;  %1512 = vst.msk [vmem:[#allocation3 + $0x10] sm:$0xff] %vm1125_vm1, %v1480_v10  ;;  %v1267_v17 = vmul.f32 %v690_v11, %v690_v11 }
 0x197   : > { %v1266_v18 = vmul.f32 %v601_v14, %v601_v14  ;;  %v1028_v20 = vadd.f32 %v690_v11, %v601_v14 }
 0x198   : > { %1513 = vst.msk [vmem:[#allocation3 + $0x18] sm:$0xff] %vm1125_vm1, %v1481_v13  ;;  %1026 = vadd.xlane.f32.xlu0 %v1025_v15  ;;  %v1410_v19 = vadd.f32 %v1409_v16, %v1265_v9 }
 0x199   : > { %v1413_v24 = vadd.f32 %v1267_v17, %v1266_v18 }
 0x19a   : > { %1411 = vadd.xlane.f32.xlu2 %v1410_v19 }
 0x19b   : > { %v779_v22 = vpop.f32.mrf.mxu2  ;;  %v952_v28 = vpop.xlane.xlu1 %951 }
 0x19c   : > { %v1029_v25 = vadd.f32 %v1028_v20, %v779_v22  ;;  %v1268_v26 = vmul.f32 %v779_v22, %v779_v22  ;;  %v868_v27 = vpop.f32.mrf.mxu3  ;;  %v1096_v31 = vadd.f32 %v952_v28, %v904_v21  ;;  %v908_v21 = vld [vmem:[#allocation2 + $0x38] sm:$0xff] }
 0x19d   : > { %v1269_v30 = vmul.f32 %v868_v27, %v868_v27  ;;  %v693_v32 = vpop.f32.mrf.mxu1  ;;  %v1342_v33 = vpop.xlane.xlu0 %1341 }
 0x19e   : > { %v1271_v34 = vmul.f32 %v693_v32, %v693_v32  ;;  %v1482_v35 = vadd.f32 %v1342_v33, %v1162_v23  ;;  %v957_v36 = vpop.xlane.xlu2 %956  ;;  %v604_v37 = vpop.f32.mrf.mxu0  ;;  %v1030_v38 = vadd.f32 %v1029_v25, %v868_v27  ;;  %v1414_v39 = vadd.f32 %v1413_v24, %v1268_v26  ;;  %1129 = vst.msk [vmem:[#allocation2 + $0x18] sm:$0xff] %vm1125_vm1, %v1096_v31  ;;  %v1165_v23 = vld [vmem:[#allocation3 + $0x38] sm:$0xff] }
 0x19f   : > { %v1097_v40 = vadd.f32 %v957_v36, %v905_v29  ;;  %v1270_v41 = vmul.f32 %v604_v37, %v604_v37  ;;  %v1033_v42 = vadd.f32 %v693_v32, %v604_v37 }
 0x1a0   : > { %1514 = vst.msk [vmem:[#allocation3 + $0x20] sm:$0xff] %vm1125_vm1, %v1482_v35  ;;  %1031 = vadd.xlane.f32.xlu1 %v1030_v38  ;;  %v1415_v43 = vadd.f32 %v1414_v39, %v1269_v30  ;;  %v909_v39 = vld [vmem:[#allocation2 + $0x40] sm:$0xff] }
 0x1a1   : > { %1130 = vst.msk [vmem:[#allocation2 + $0x20] sm:$0xff] %vm1125_vm1, %v1097_v40  ;;  %v1418_v44 = vadd.f32 %v1271_v34, %v1270_v41 }
 0x1a2   : > { %1416 = vadd.xlane.f32.xlu0 %v1415_v43  ;;  %v1166_v43 = vld [vmem:[#allocation3 + $0x40] sm:$0xff] }
 0x1a3   : > { %v782_v45 = vpop.f32.mrf.mxu2 }
 0x1a4   : > { %v1034_v47 = vadd.f32 %v1033_v42, %v782_v45  ;;  %v1272_v48 = vmul.f32 %v782_v45, %v782_v45  ;;  %v871_v49 = vpop.f32.mrf.mxu3 }
 0x1a5   : > { %v1273_v51 = vmul.f32 %v871_v49, %v871_v49  ;;  %v695_v52 = vpop.f32.mrf.mxu1  ;;  %v1347_v53 = vpop.xlane.xlu1 %1346 }
 0x1a6   : > { %v1483_v54 = vadd.f32 %v1347_v53, %v1163_v46  ;;  %v962_v55 = vpop.xlane.xlu2 %961  ;;  %v606_v56 = vpop.f32.mrf.mxu0  ;;  %v1035_v57 = vadd.f32 %v1034_v47, %v871_v49  ;;  %v1419_v58 = vadd.f32 %v1418_v44, %v1272_v48  ;;  %v1275_v60 = vmul.f32 %v695_v52, %v695_v52 }
 0x1a7   : > { %v1098_v59 = vadd.f32 %v962_v55, %v906_v50  ;;  %v1274_v61 = vmul.f32 %v606_v56, %v606_v56  ;;  %v1038_v0 = vadd.f32 %v695_v52, %v606_v56 }
 0x1a8   : > { %1515 = vst.msk [vmem:[#allocation3 + $0x28] sm:$0xff] %vm1125_vm1, %v1483_v54  ;;  %1036 = vadd.xlane.f32.xlu2 %v1035_v57  ;;  %v1420_v62 = vadd.f32 %v1419_v58, %v1273_v51 }
 0x1a9   : > { %1131 = vst.msk [vmem:[#allocation2 + $0x28] sm:$0xff] %vm1125_vm1, %v1098_v59  ;;  %v1423_v3 = vadd.f32 %v1275_v60, %v1274_v61  ;;  %v910_v61 = vld [vmem:[#allocation2 + $0x48] sm:$0xff] }
 0x1aa   : > { %1421 = vadd.xlane.f32.xlu1 %v1420_v62 }
 0x1ab   : > { %v784_v1 = vpop.f32.mrf.mxu2  ;;  %v967_v2 = vpop.xlane.xlu0 %966 }
 0x1ac   : > { %v1039_v4 = vadd.f32 %v1038_v0, %v784_v1  ;;  %v1276_v5 = vmul.f32 %v784_v1, %v784_v1  ;;  %v873_v6 = vpop.f32.mrf.mxu3  ;;  %v1099_v7 = vadd.f32 %v967_v2, %v907_v63  ;;  %v1167_v63 = vld [vmem:[#allocation3 + $0x48] sm:$0xff] }
 0x1ad   : > { %v698_v9 = vpop.f32.mrf.mxu1  ;;  %v1277_v10 = vmul.f32 %v873_v6, %v873_v6 }
 0x1ae   : > { %1132 = vst.msk [vmem:[#allocation2 + $0x30] sm:$0xff] %vm1125_vm1, %v1099_v7  ;;  %v1279_v11 = vmul.f32 %v698_v9, %v698_v9  ;;  %v1352_v12 = vpop.xlane.xlu2 %1351  ;;  %v609_v13 = vpop.f32.mrf.mxu0  ;;  %v1040_v14 = vadd.f32 %v1039_v4, %v873_v6  ;;  %v1424_v15 = vadd.f32 %v1423_v3, %v1276_v5 }
 0x1af   : > { %v1484_v16 = vadd.f32 %v1352_v12, %v1164_v8  ;;  %v1278_v17 = vmul.f32 %v609_v13, %v609_v13  ;;  %v1043_v18 = vadd.f32 %v698_v9, %v609_v13 }
 0x1b0   : > { %1041 = vadd.xlane.f32.xlu0 %v1040_v14  ;;  %v1425_v19 = vadd.f32 %v1424_v15, %v1277_v10  ;;  %v911_v15 = vld [vmem:[#allocation2 + $0x50] sm:$0xff] }
 0x1b1   : > { %1516 = vst.msk [vmem:[#allocation3 + $0x30] sm:$0xff] %vm1125_vm1, %v1484_v16  ;;  %v1428_v20 = vadd.f32 %v1279_v11, %v1278_v17 }
 0x1b2   : > { %1426 = vadd.xlane.f32.xlu2 %v1425_v19  ;;  %v1168_v19 = vld [vmem:[#allocation3 + $0x50] sm:$0xff] }
 0x1b3   : > { %v787_v22 = vpop.f32.mrf.mxu2  ;;  %v972_v27 = vpop.xlane.xlu1 %971 }
 0x1b4   : > { %v1044_v24 = vadd.f32 %v1043_v18, %v787_v22  ;;  %v1280_v25 = vmul.f32 %v787_v22, %v787_v22  ;;  %v876_v26 = vpop.f32.mrf.mxu3  ;;  %v1100_v29 = vadd.f32 %v972_v27, %v908_v21 }
 0x1b5   : > { %v1281_v28 = vmul.f32 %v876_v26, %v876_v26  ;;  %v700_v30 = vpop.f32.mrf.mxu1  ;;  %v1357_v31 = vpop.xlane.xlu0 %1356 }
 0x1b6   : > { %v1485_v32 = vadd.f32 %v1357_v31, %v1165_v23  ;;  %v611_v33 = vpop.f32.mrf.mxu0  ;;  %v1045_v34 = vadd.f32 %v1044_v24, %v876_v26  ;;  %v1429_v35 = vadd.f32 %v1428_v20, %v1280_v25  ;;  %1133 = vst.msk [vmem:[#allocation2 + $0x38] sm:$0xff] %vm1125_vm1, %v1100_v29  ;;  %v1283_v36 = vmul.f32 %v700_v30, %v700_v30 }
 0x1b7   : > { %v1282_v37 = vmul.f32 %v611_v33, %v611_v33  ;;  %v1048_v40 = vadd.f32 %v700_v30, %v611_v33 }
 0x1b8   : > { %1517 = vst.msk [vmem:[#allocation3 + $0x38] sm:$0xff] %vm1125_vm1, %v1485_v32  ;;  %1046 = vadd.xlane.f32.xlu1 %v1045_v34  ;;  %v1430_v38 = vadd.f32 %v1429_v35, %v1281_v28 }
 0x1b9   : > { %v1433_v44 = vadd.f32 %v1283_v36, %v1282_v37  ;;  %v912_v37 = vld [vmem:[#allocation2 + $0x58] sm:$0xff] }
 0x1ba   : > { %1431 = vadd.xlane.f32.xlu0 %v1430_v38 }
 0x1bb   : > { %v789_v41 = vpop.f32.mrf.mxu2  ;;  %v977_v42 = vpop.xlane.xlu2 %976 }
 0x1bc   : > { %v1049_v45 = vadd.f32 %v1048_v40, %v789_v41  ;;  %v1284_v46 = vmul.f32 %v789_v41, %v789_v41  ;;  %v878_v47 = vpop.f32.mrf.mxu3  ;;  %v1101_v48 = vadd.f32 %v977_v42, %v909_v39  ;;  %v1169_v39 = vld [vmem:[#allocation3 + $0x58] sm:$0xff] }
 0x1bd   : > { %v1285_v49 = vmul.f32 %v878_v47, %v878_v47  ;;  %v703_v50 = vpop.f32.mrf.mxu1  ;;  %v1362_v51 = vpop.xlane.xlu1 %1361 }
 0x1be   : > { %1134 = vst.msk [vmem:[#allocation2 + $0x40] sm:$0xff] %vm1125_vm1, %v1101_v48  ;;  %v1287_v52 = vmul.f32 %v703_v50, %v703_v50  ;;  %v1486_v53 = vadd.f32 %v1362_v51, %v1166_v43  ;;  %v614_v54 = vpop.f32.mrf.mxu0  ;;  %v1050_v55 = vadd.f32 %v1049_v45, %v878_v47  ;;  %v1434_v56 = vadd.f32 %v1433_v44, %v1284_v46 }
 0x1bf   : > { %v1286_v57 = vmul.f32 %v614_v54, %v614_v54  ;;  %v1053_v58 = vadd.f32 %v703_v50, %v614_v54 }
 0x1c0   : > { %1518 = vst.msk [vmem:[#allocation3 + $0x40] sm:$0xff] %vm1125_vm1, %v1486_v53  ;;  %1051 = vadd.xlane.f32.xlu2 %v1050_v55  ;;  %v1435_v59 = vadd.f32 %v1434_v56, %v1285_v49  ;;  %v913_v55 = vld [vmem:[#allocation2 + $0x60] sm:$0xff] }
 0x1c1   : > { %v1438_v60 = vadd.f32 %v1287_v52, %v1286_v57 }
 0x1c2   : > { %1436 = vadd.xlane.f32.xlu1 %v1435_v59  ;;  %v1170_v59 = vld [vmem:[#allocation3 + $0x60] sm:$0xff] }
 0x1c3   : > { %v792_v62 = vpop.f32.mrf.mxu2  ;;  %v982_v3 = vpop.xlane.xlu0 %981 }
 0x1c4   : > { %v1054_v0 = vadd.f32 %v1053_v58, %v792_v62  ;;  %v1288_v1 = vmul.f32 %v792_v62, %v792_v62  ;;  %v881_v2 = vpop.f32.mrf.mxu3  ;;  %v1102_v5 = vadd.f32 %v982_v3, %v910_v61 }
 0x1c5   : > { %v1289_v4 = vmul.f32 %v881_v2, %v881_v2  ;;  %v705_v6 = vpop.f32.mrf.mxu1  ;;  %v1367_v7 = vpop.xlane.xlu2 %1366 }
 0x1c6   : > { %v1487_v8 = vadd.f32 %v1367_v7, %v1167_v63  ;;  %v616_v9 = vpop.f32.mrf.mxu0  ;;  %v1055_v10 = vadd.f32 %v1054_v0, %v881_v2  ;;  %v1439_v11 = vadd.f32 %v1438_v60, %v1288_v1  ;;  %1135 = vst.msk [vmem:[#allocation2 + $0x48] sm:$0xff] %vm1125_vm1, %v1102_v5  ;;  %v1291_v12 = vmul.f32 %v705_v6, %v705_v6 }
 0x1c7   : > { %v1290_v13 = vmul.f32 %v616_v9, %v616_v9  ;;  %v1058_v16 = vadd.f32 %v705_v6, %v616_v9 }
 0x1c8   : > { %1519 = vst.msk [vmem:[#allocation3 + $0x48] sm:$0xff] %vm1125_vm1, %v1487_v8  ;;  %1056 = vadd.xlane.f32.xlu0 %v1055_v10  ;;  %v1440_v14 = vadd.f32 %v1439_v11, %v1289_v4 }
 0x1c9   : > { %v1443_v20 = vadd.f32 %v1291_v12, %v1290_v13  ;;  %v914_v13 = vld [vmem:[#allocation2 + $0x68] sm:$0xff] }
 0x1ca   : > { %1441 = vadd.xlane.f32.xlu2 %v1440_v14 }
 0x1cb   : > { %v794_v17 = vpop.f32.mrf.mxu2  ;;  %v987_v18 = vpop.xlane.xlu1 %986 }
 0x1cc   : > { %v1059_v21 = vadd.f32 %v1058_v16, %v794_v17  ;;  %v1292_v22 = vmul.f32 %v794_v17, %v794_v17  ;;  %v883_v23 = vpop.f32.mrf.mxu3  ;;  %v1103_v24 = vadd.f32 %v987_v18, %v911_v15  ;;  %v1171_v15 = vld [vmem:[#allocation3 + $0x68] sm:$0xff] }
 0x1cd   : > { %v1293_v25 = vmul.f32 %v883_v23, %v883_v23  ;;  %v708_v26 = vpop.f32.mrf.mxu1  ;;  %v1372_v27 = vpop.xlane.xlu0 %1371 }
 0x1ce   : > { %1136 = vst.msk [vmem:[#allocation2 + $0x50] sm:$0xff] %vm1125_vm1, %v1103_v24  ;;  %v1295_v28 = vmul.f32 %v708_v26, %v708_v26  ;;  %v1488_v29 = vadd.f32 %v1372_v27, %v1168_v19  ;;  %v619_v30 = vpop.f32.mrf.mxu0  ;;  %v1060_v31 = vadd.f32 %v1059_v21, %v883_v23  ;;  %v1444_v32 = vadd.f32 %v1443_v20, %v1292_v22 }
 0x1cf   : > { %v1294_v33 = vmul.f32 %v619_v30, %v619_v30  ;;  %v1063_v34 = vadd.f32 %v708_v26, %v619_v30 }
 0x1d0   : > { %1520 = vst.msk [vmem:[#allocation3 + $0x50] sm:$0xff] %vm1125_vm1, %v1488_v29  ;;  %1061 = vadd.xlane.f32.xlu1 %v1060_v31  ;;  %v1445_v35 = vadd.f32 %v1444_v32, %v1293_v25  ;;  %v915_v29 = vld [vmem:[#allocation2 + $0x70] sm:$0xff] }
 0x1d1   : > { %v1448_v36 = vadd.f32 %v1295_v28, %v1294_v33  ;;  %v1172_v33 = vld [vmem:[#allocation3 + $0x70] sm:$0xff] }
 0x1d2   : > { %1446 = vadd.xlane.f32.xlu0 %v1445_v35 }
 0x1d3   : > { %v797_v38 = vpop.f32.mrf.mxu2  ;;  %v992_v43 = vpop.xlane.xlu2 %991 }
 0x1d4   : > { %v1064_v40 = vadd.f32 %v1063_v34, %v797_v38  ;;  %v1296_v41 = vmul.f32 %v797_v38, %v797_v38  ;;  %v886_v42 = vpop.f32.mrf.mxu3  ;;  %v1104_v45 = vadd.f32 %v992_v43, %v912_v37 }
 0x1d5   : > { %v1297_v44 = vmul.f32 %v886_v42, %v886_v42  ;;  %v710_v46 = vpop.f32.mrf.mxu1  ;;  %v1377_v47 = vpop.xlane.xlu1 %1376 }
 0x1d6   : > { %v1489_v48 = vadd.f32 %v1377_v47, %v1169_v39  ;;  %v621_v49 = vpop.f32.mrf.mxu0  ;;  %v1065_v50 = vadd.f32 %v1064_v40, %v886_v42  ;;  %v1449_v51 = vadd.f32 %v1448_v36, %v1296_v41  ;;  %1137 = vst.msk [vmem:[#allocation2 + $0x58] sm:$0xff] %vm1125_vm1, %v1104_v45  ;;  %v1299_v52 = vmul.f32 %v710_v46, %v710_v46  ;;  %v916_v45 = vld [vmem:[#allocation2 + $0x78] sm:$0xff] }
 0x1d7   : > { %v1298_v53 = vmul.f32 %v621_v49, %v621_v49  ;;  %v1068_v56 = vadd.f32 %v710_v46, %v621_v49 }
 0x1d8   : > { %1521 = vst.msk [vmem:[#allocation3 + $0x58] sm:$0xff] %vm1125_vm1, %v1489_v48  ;;  %1066 = vadd.xlane.f32.xlu2 %v1065_v50  ;;  %v1450_v54 = vadd.f32 %v1449_v51, %v1297_v44 }
 0x1d9   : > { %v1453_v60 = vadd.f32 %v1299_v52, %v1298_v53  ;;  %v1173_v53 = vld [vmem:[#allocation3 + $0x78] sm:$0xff] }
 0x1da   : > { %1451 = vadd.xlane.f32.xlu1 %v1450_v54 }
 0x1db   : > { %v799_v57 = vpop.f32.mrf.mxu2  ;;  %v997_v58 = vpop.xlane.xlu0 %996 }
 0x1dc   : > { %v1069_v61 = vadd.f32 %v1068_v56, %v799_v57  ;;  %v1300_v62 = vmul.f32 %v799_v57, %v799_v57  ;;  %v888_v63 = vpop.f32.mrf.mxu3  ;;  %v1105_v0 = vadd.f32 %v997_v58, %v913_v55 }
 0x1dd   : > { %v1301_v1 = vmul.f32 %v888_v63, %v888_v63  ;;  %v713_v2 = vpop.f32.mrf.mxu1  ;;  %v1382_v3 = vpop.xlane.xlu2 %1381 }
 0x1de   : > { %1138 = vst.msk [vmem:[#allocation2 + $0x60] sm:$0xff] %vm1125_vm1, %v1105_v0  ;;  %v1303_v4 = vmul.f32 %v713_v2, %v713_v2  ;;  %v1490_v5 = vadd.f32 %v1382_v3, %v1170_v59  ;;  %v624_v6 = vpop.f32.mrf.mxu0  ;;  %v1070_v7 = vadd.f32 %v1069_v61, %v888_v63  ;;  %v1454_v8 = vadd.f32 %v1453_v60, %v1300_v62  ;;  %v917_v0 = vld [vmem:[#allocation2 + $0x80] sm:$0xff] }
 0x1df   : > { %v1302_v9 = vmul.f32 %v624_v6, %v624_v6  ;;  %v1073_v10 = vadd.f32 %v713_v2, %v624_v6 }
 0x1e0   : > { %1522 = vst.msk [vmem:[#allocation3 + $0x60] sm:$0xff] %vm1125_vm1, %v1490_v5  ;;  %1071 = vadd.xlane.f32.xlu0 %v1070_v7  ;;  %v1455_v11 = vadd.f32 %v1454_v8, %v1301_v1 }
 0x1e1   : > { %v1458_v12 = vadd.f32 %v1303_v4, %v1302_v9 }
 0x1e2   : > { %1456 = vadd.xlane.f32.xlu2 %v1455_v11  ;;  %v1174_v11 = vld [vmem:[#allocation3 + $0x80] sm:$0xff] }
 0x1e3   : > { %v802_v14 = vpop.f32.mrf.mxu2  ;;  %v1002_v19 = vpop.xlane.xlu1 %1001 }
 0x1e4   : > { %v1074_v16 = vadd.f32 %v1073_v10, %v802_v14  ;;  %v1304_v17 = vmul.f32 %v802_v14, %v802_v14  ;;  %v891_v18 = vpop.f32.mrf.mxu3  ;;  %v1106_v21 = vadd.f32 %v1002_v19, %v914_v13 }
 0x1e5   : > { %v1305_v20 = vmul.f32 %v891_v18, %v891_v18  ;;  %v715_v22 = vpop.f32.mrf.mxu1  ;;  %v1387_v23 = vpop.xlane.xlu0 %1386 }
 0x1e6   : > { %v1491_v24 = vadd.f32 %v1387_v23, %v1171_v15  ;;  %v626_v25 = vpop.f32.mrf.mxu0  ;;  %v1075_v26 = vadd.f32 %v1074_v16, %v891_v18  ;;  %v1459_v27 = vadd.f32 %v1458_v12, %v1304_v17  ;;  %1139 = vst.msk [vmem:[#allocation2 + $0x68] sm:$0xff] %vm1125_vm1, %v1106_v21  ;;  %v1307_v2 = vmul.f32 %v715_v22, %v715_v22 }
 0x1e7   : > { %v1078_v30 = vadd.f32 %v715_v22, %v626_v25  ;;  %v1306_v3 = vmul.f32 %v626_v25, %v626_v25  ;;  %v1175_v25 = vld [vmem:[#allocation3 + $0x88] sm:$0xff] }
 0x1e8   : > { %1523 = vst.msk [vmem:[#allocation3 + $0x68] sm:$0xff] %vm1125_vm1, %v1491_v24  ;;  %1076 = vadd.xlane.f32.xlu1 %v1075_v26  ;;  %v1460_v28 = vadd.f32 %v1459_v27, %v1305_v20  ;;  %v918_v20 = vld [vmem:[#allocation2 + $0x88] sm:$0xff] }
 0x1e9   : > { %v1463_v18 = vadd.f32 %v1307_v2, %v1306_v3  ;;  %v1182_v3 = vld [vmem:[#allocation3 + $0xc0] sm:$0xff] }
 0x1ea   : > { %1461 = vadd.xlane.f32.xlu0 %v1460_v28 }
 0x1eb   : > { %v804_v31 = vpop.f32.mrf.mxu2  ;;  %v1007_v32 = vpop.xlane.xlu2 %1006 }
 0x1ec   : > { %v1079_v34 = vadd.f32 %v1078_v30, %v804_v31  ;;  %v893_v35 = vpop.f32.mrf.mxu3  ;;  %v1107_v36 = vadd.f32 %v1007_v32, %v915_v29  ;;  %v1308_v12 = vmul.f32 %v804_v31, %v804_v31  ;;  %v919_v29 = vld [vmem:[#allocation2 + $0x90] sm:$0xff] }
 0x1ed   : > { %v718_v37 = vpop.f32.mrf.mxu1  ;;  %v1392_v38 = vpop.xlane.xlu1 %1391  ;;  %v1309_v23 = vmul.f32 %v893_v35, %v893_v35  ;;  %v1176_v31 = vld [vmem:[#allocation3 + $0x90] sm:$0xff] }
 0x1ee   : > { %1140 = vst.msk [vmem:[#allocation2 + $0x70] sm:$0xff] %vm1125_vm1, %v1107_v36  ;;  %v1311_v39 = vmul.f32 %v718_v37, %v718_v37  ;;  %v1492_v40 = vadd.f32 %v1392_v38, %v1172_v33  ;;  %v629_v41 = vpop.f32.mrf.mxu0  ;;  %v1080_v42 = vadd.f32 %v1079_v34, %v893_v35  ;;  %v1464_v21 = vadd.f32 %v1463_v18, %v1308_v12  ;;  %v920_v35 = vld [vmem:[#allocation2 + $0x98] sm:$0xff] }
 0x1ef   : > { %v1310_v43 = vmul.f32 %v629_v41, %v629_v41  ;;  %v1083_v44 = vadd.f32 %v718_v37, %v629_v41  ;;  %v1177_v37 = vld [vmem:[#allocation3 + $0x98] sm:$0xff]  ;;  %v921_v41 = vld [vmem:[#allocation2 + $0xa0] sm:$0xff] }
 0x1f0   : > { %1524 = vst.msk [vmem:[#allocation3 + $0x70] sm:$0xff] %vm1125_vm1, %v1492_v40  ;;  %1081 = vadd.xlane.f32.xlu2 %v1080_v42  ;;  %v1465_v27 = vadd.f32 %v1464_v21, %v1309_v23  ;;  %v1185_v21 = vld [vmem:[#allocation3 + $0xd8] sm:$0xff] }
 0x1f1   : > { %v1468_v46 = vadd.f32 %v1311_v39, %v1310_v43  ;;  %v1178_v43 = vld [vmem:[#allocation3 + $0xa0] sm:$0xff] }
 0x1f3   : > { %v807_v47 = vpop.f32.mrf.mxu2  ;;  %v1012_v48 = vpop.xlane.xlu0 %1011 }
 0x1f4   : > { %v1084_v49 = vadd.f32 %v1083_v44, %v807_v47  ;;  %v1312_v50 = vmul.f32 %v807_v47, %v807_v47  ;;  %v896_v51 = vpop.f32.mrf.mxu3  ;;  %v1108_v52 = vadd.f32 %v1012_v48, %v916_v45  ;;  %v922_v47 = vld [vmem:[#allocation2 + $0xa8] sm:$0xff] }
 0x1f5   : > { %v1313_v54 = vmul.f32 %v896_v51, %v896_v51  ;;  %v720_v55 = vpop.f32.mrf.mxu1  ;;  %v1397_v56 = vpop.xlane.xlu2 %1396 }
 0x1f6   : > { %1141 = vst.msk [vmem:[#allocation2 + $0x78] sm:$0xff] %vm1125_vm1, %v1108_v52  ;;  %v631_v57 = vpop.f32.mrf.mxu0  ;;  %v1085_v58 = vadd.f32 %v1084_v49, %v896_v51  ;;  %v1469_v59 = vadd.f32 %v1468_v46, %v1312_v50  ;;  %v1493_v60 = vadd.f32 %v1397_v56, %v1173_v53  ;;  %v1315_v61 = vmul.f32 %v720_v55, %v720_v55  ;;  %v1179_v49 = vld [vmem:[#allocation3 + $0xa8] sm:$0xff]  ;;  %v923_v53 = vld [vmem:[#allocation2 + $0xb0] sm:$0xff] }
 0x1f7   : > { %v1314_v62 = vmul.f32 %v631_v57, %v631_v57  ;;  %v1088_v1 = vadd.f32 %v720_v55, %v631_v57  ;;  %v1180_v55 = vld [vmem:[#allocation3 + $0xb0] sm:$0xff] }
 0x1f8   : > { %1086 = vadd.xlane.f32.xlu0 %v1085_v58  ;;  %v1470_v63 = vadd.f32 %v1469_v59, %v1313_v54  ;;  %1525 = vst.msk [vmem:[#allocation3 + $0x78] sm:$0xff] %vm1125_vm1, %v1493_v60  ;;  %v924_v59 = vld [vmem:[#allocation2 + $0xb8] sm:$0xff] }
 0x1f9   : > { %v1473_v6 = vadd.f32 %v1315_v61, %v1314_v62  ;;  %v1181_v61 = vld [vmem:[#allocation3 + $0xb8] sm:$0xff] }
 0x1fa   : > { %1471 = vadd.xlane.f32.xlu2 %v1470_v63 }
 0x1fb   : > { %v809_v4 = vpop.f32.mrf.mxu2  ;;  %v1017_v5 = vpop.xlane.xlu1 %1016 }
 0x1fc   : > { %v1089_v7 = vadd.f32 %v1088_v1, %v809_v4  ;;  %v1316_v8 = vmul.f32 %v809_v4, %v809_v4  ;;  %v898_v9 = vpop.f32.mrf.mxu3  ;;  %v1109_v10 = vadd.f32 %v1017_v5, %v917_v0  ;;  %v925_v1 = vld [vmem:[#allocation2 + $0xc0] sm:$0xff] }
 0x1fd   : > { %v1317_v15 = vmul.f32 %v898_v9, %v898_v9  ;;  %v1402_v16 = vpop.xlane.xlu0 %1401 }
 0x1fe   : > { %v1474_v13 = vadd.f32 %v1473_v6, %v1316_v8  ;;  %v1090_v14 = vadd.f32 %v1089_v7, %v898_v9  ;;  %1142 = vst.msk [vmem:[#allocation2 + $0x80] sm:$0xff] %vm1125_vm1, %v1109_v10  ;;  %v1494_v17 = vadd.f32 %v1402_v16, %v1174_v11  ;;  %v926_v7 = vld [vmem:[#allocation2 + $0xc8] sm:$0xff] }
 0x1ff   : > { %v1183_v9 = vld [vmem:[#allocation3 + $0xc8] sm:$0xff] }
 0x200   : > { %1091 = vadd.xlane.f32.xlu1 %v1090_v14  ;;  %v1475_v19 = vadd.f32 %v1474_v13, %v1317_v15  ;;  %1526 = vst.msk [vmem:[#allocation3 + $0x80] sm:$0xff] %vm1125_vm1, %v1494_v17  ;;  %v927_v13 = vld [vmem:[#allocation2 + $0xd0] sm:$0xff] }
 0x201   : > { %v1184_v15 = vld [vmem:[#allocation3 + $0xd0] sm:$0xff] }
 0x202   : > { %1476 = vadd.xlane.f32.xlu0 %v1475_v19  ;;  %v928_v19 = vld [vmem:[#allocation2 + $0xd8] sm:$0xff] }
 0x203   : > { %v1022_v22 = vpop.xlane.xlu2 %1021 }
 0x204   : > { %v1110_v24 = vadd.f32 %v1022_v22, %v918_v20 }
 0x205   : > { %v1407_v26 = vpop.xlane.xlu1 %1406 }
 0x206   : > { %1143 = vst.msk [vmem:[#allocation2 + $0x88] sm:$0xff] %vm1125_vm1, %v1110_v24  ;;  %v1495_v28 = vadd.f32 %v1407_v26, %v1175_v25  ;;  %v929_v25 = vld [vmem:[#allocation2 + $0xe0] sm:$0xff] }
 0x208   : > { %1466 = vadd.xlane.f32.xlu1 %v1465_v27  ;;  %1527 = vst.msk [vmem:[#allocation3 + $0x88] sm:$0xff] %vm1125_vm1, %v1495_v28  ;;  %v1186_v27 = vld [vmem:[#allocation3 + $0xe0] sm:$0xff] }
 0x20b   : > { %v1027_v30 = vpop.xlane.xlu0 %1026 }
 0x20c   : > { %v1111_v32 = vadd.f32 %v1027_v30, %v919_v29 }
 0x20d   : > { %v1412_v33 = vpop.xlane.xlu2 %1411 }
 0x20e   : > { %1144 = vst.msk [vmem:[#allocation2 + $0x90] sm:$0xff] %vm1125_vm1, %v1111_v32  ;;  %v1496_v34 = vadd.f32 %v1412_v33, %v1176_v31  ;;  %v930_v31 = vld [vmem:[#allocation2 + $0xe8] sm:$0xff] }
 0x210   : > { %1528 = vst.msk [vmem:[#allocation3 + $0x90] sm:$0xff] %vm1125_vm1, %v1496_v34  ;;  %v931_v34 = vld [vmem:[#allocation2 + $0xf0] sm:$0xff] }
 0x213   : > { %v1032_v36 = vpop.xlane.xlu1 %1031 }
 0x214   : > { %v1112_v38 = vadd.f32 %v1032_v36, %v920_v35  ;;  %v1188_v36 = vld [vmem:[#allocation3 + $0xf0] sm:$0xff] }
 0x215   : > { %v1417_v39 = vpop.xlane.xlu0 %1416 }
 0x216   : > { %1145 = vst.msk [vmem:[#allocation2 + $0x98] sm:$0xff] %vm1125_vm1, %v1112_v38  ;;  %v1497_v40 = vadd.f32 %v1417_v39, %v1177_v37 }
 0x218   : > { %1529 = vst.msk [vmem:[#allocation3 + $0x98] sm:$0xff] %vm1125_vm1, %v1497_v40  ;;  %v932_v40 = vld [vmem:[#allocation2 + $0xf8] sm:$0xff] }
 0x21b   : > { %v1037_v42 = vpop.xlane.xlu2 %1036 }
 0x21c   : > { %v1113_v44 = vadd.f32 %v1037_v42, %v921_v41  ;;  %v1189_v42 = vld [vmem:[#allocation3 + $0xf8] sm:$0xff] }
 0x21d   : > { %v1422_v45 = vpop.xlane.xlu1 %1421 }
 0x21e   : > { %1146 = vst.msk [vmem:[#allocation2 + $0xa0] sm:$0xff] %vm1125_vm1, %v1113_v44  ;;  %v1498_v46 = vadd.f32 %v1422_v45, %v1178_v43 }
 0x220   : > { %1530 = vst.msk [vmem:[#allocation3 + $0xa0] sm:$0xff] %vm1125_vm1, %v1498_v46  ;;  %v1187_v46 = vld [vmem:[#allocation3 + $0xe8] sm:$0xff] }
 0x223   : > { %v1042_v48 = vpop.xlane.xlu0 %1041 }
 0x224   : > { %v1114_v50 = vadd.f32 %v1042_v48, %v922_v47 }
 0x225   : > { %v1427_v51 = vpop.xlane.xlu2 %1426 }
 0x226   : > { %1147 = vst.msk [vmem:[#allocation2 + $0xa8] sm:$0xff] %vm1125_vm1, %v1114_v50  ;;  %v1499_v52 = vadd.f32 %v1427_v51, %v1179_v49 }
 0x228   : > { %1531 = vst.msk [vmem:[#allocation3 + $0xa8] sm:$0xff] %vm1125_vm1, %v1499_v52 }
 0x22b   : > { %v1047_v54 = vpop.xlane.xlu1 %1046 }
 0x22c   : > { %v1115_v56 = vadd.f32 %v1047_v54, %v923_v53 }
 0x22d   : > { %v1432_v57 = vpop.xlane.xlu0 %1431 }
 0x22e   : > { %1148 = vst.msk [vmem:[#allocation2 + $0xb0] sm:$0xff] %vm1125_vm1, %v1115_v56  ;;  %v1500_v58 = vadd.f32 %v1432_v57, %v1180_v55 }
 0x230   : > { %1532 = vst.msk [vmem:[#allocation3 + $0xb0] sm:$0xff] %vm1125_vm1, %v1500_v58 }
 0x233   : > { %v1052_v60 = vpop.xlane.xlu2 %1051 }
 0x234   : > { %v1116_v62 = vadd.f32 %v1052_v60, %v924_v59 }
 0x235   : > { %v1437_v63 = vpop.xlane.xlu1 %1436 }
 0x236   : > { %1149 = vst.msk [vmem:[#allocation2 + $0xb8] sm:$0xff] %vm1125_vm1, %v1116_v62  ;;  %v1501_v0 = vadd.f32 %v1437_v63, %v1181_v61 }
 0x238   : > { %1533 = vst.msk [vmem:[#allocation3 + $0xb8] sm:$0xff] %vm1125_vm1, %v1501_v0 }
 0x23b   : > { %v1057_v2 = vpop.xlane.xlu0 %1056 }
 0x23c   : > { %v1117_v4 = vadd.f32 %v1057_v2, %v925_v1 }
 0x23d   : > { %v1442_v5 = vpop.xlane.xlu2 %1441 }
 0x23e   : > { %1150 = vst.msk [vmem:[#allocation2 + $0xc0] sm:$0xff] %vm1125_vm1, %v1117_v4  ;;  %v1502_v6 = vadd.f32 %v1442_v5, %v1182_v3 }
 0x240   : > { %1534 = vst.msk [vmem:[#allocation3 + $0xc0] sm:$0xff] %vm1125_vm1, %v1502_v6 }
 0x243   : > { %v1062_v8 = vpop.xlane.xlu1 %1061 }
 0x244   : > { %v1118_v10 = vadd.f32 %v1062_v8, %v926_v7 }
 0x245   : > { %v1447_v11 = vpop.xlane.xlu0 %1446 }
 0x246   : > { %1151 = vst.msk [vmem:[#allocation2 + $0xc8] sm:$0xff] %vm1125_vm1, %v1118_v10  ;;  %v1503_v12 = vadd.f32 %v1447_v11, %v1183_v9 }
 0x248   : > { %1535 = vst.msk [vmem:[#allocation3 + $0xc8] sm:$0xff] %vm1125_vm1, %v1503_v12 }
 0x24b   : > { %v1067_v14 = vpop.xlane.xlu2 %1066 }
 0x24c   : > { %v1119_v16 = vadd.f32 %v1067_v14, %v927_v13 }
 0x24d   : > { %v1452_v17 = vpop.xlane.xlu1 %1451 }
 0x24e   : > { %1152 = vst.msk [vmem:[#allocation2 + $0xd0] sm:$0xff] %vm1125_vm1, %v1119_v16  ;;  %v1504_v18 = vadd.f32 %v1452_v17, %v1184_v15 }
 0x250   : > { %1536 = vst.msk [vmem:[#allocation3 + $0xd0] sm:$0xff] %vm1125_vm1, %v1504_v18 }
 0x253   : > { %v1072_v20 = vpop.xlane.xlu0 %1071 }
 0x254   : > { %v1120_v22 = vadd.f32 %v1072_v20, %v928_v19 }
 0x255   : > { %v1457_v23 = vpop.xlane.xlu2 %1456 }
 0x256   : > { %1153 = vst.msk [vmem:[#allocation2 + $0xd8] sm:$0xff] %vm1125_vm1, %v1120_v22  ;;  %v1505_v24 = vadd.f32 %v1457_v23, %v1185_v21 }
 0x258   : > { %1537 = vst.msk [vmem:[#allocation3 + $0xd8] sm:$0xff] %vm1125_vm1, %v1505_v24 }
 0x25b   : > { %v1077_v26 = vpop.xlane.xlu1 %1076 }
 0x25c   : > { %v1121_v28 = vadd.f32 %v1077_v26, %v929_v25 }
 0x25d   : > { %v1462_v29 = vpop.xlane.xlu0 %1461 }
 0x25e   : > { %1154 = vst.msk [vmem:[#allocation2 + $0xe0] sm:$0xff] %vm1125_vm1, %v1121_v28  ;;  %v1506_v30 = vadd.f32 %v1462_v29, %v1186_v27 }
 0x260   : > { %1538 = vst.msk [vmem:[#allocation3 + $0xe0] sm:$0xff] %vm1125_vm1, %v1506_v30 }
 0x263   : > { %v1082_v32 = vpop.xlane.xlu2 %1081 }
 0x264   : > { %v1122_v33 = vadd.f32 %v1082_v32, %v930_v31 }
 0x266   : > { %1155 = vst.msk [vmem:[#allocation2 + $0xe8] sm:$0xff] %vm1125_vm1, %v1122_v33 }
 0x26b   : > { %v1087_v35 = vpop.xlane.xlu0 %1086 }
 0x26c   : > { %v1123_v37 = vadd.f32 %v1087_v35, %v931_v34 }
 0x26d   : > { %v1472_v38 = vpop.xlane.xlu2 %1471 }
 0x26e   : > { %1156 = vst.msk [vmem:[#allocation2 + $0xf0] sm:$0xff] %vm1125_vm1, %v1123_v37  ;;  %v1508_v39 = vadd.f32 %v1472_v38, %v1188_v36 }
 0x270   : > { %1540 = vst.msk [vmem:[#allocation3 + $0xf0] sm:$0xff] %vm1125_vm1, %v1508_v39 }
 0x273   : > { %v1092_v41 = vpop.xlane.xlu1 %1091 }
 0x274   : > { %v1124_v43 = vadd.f32 %v1092_v41, %v932_v40 }
 0x275   : > { %v1477_v44 = vpop.xlane.xlu0 %1476 }
 0x276   : > { %1157 = vst.msk [vmem:[#allocation2 + $0xf8] sm:$0xff] %vm1125_vm1, %v1124_v43  ;;  %v1509_v45 = vadd.f32 %v1477_v44, %v1189_v42 }
 0x278   : > { %1541 = vst.msk [vmem:[#allocation3 + $0xf8] sm:$0xff] %vm1125_vm1, %v1509_v45 }
 0x27a   : > { %1543 = sbr.rel (!%p251_p0) target bundleno = 800 (0x320), region = 48 }
 0x27b   : > { %v1467_v47 = vpop.xlane.xlu1 %1466 }
 0x27c   : > { %v1507_v48 = vadd.f32 %v1467_v47, %v1187_v46 }
 0x27e   : > { %1539 = vst.msk [vmem:[#allocation3 + $0xe8] sm:$0xff] %vm1125_vm1, %v1507_v48 }
 0x27f   : > { %v1544_v49 = vld [vmem:[#allocation2] sm:$0xff]  ;;  %v1545_v53 = vld [vmem:[#allocation2 + $0x8] sm:$0xff]  ;;  %v1546_v57 = vld [vmem:[#allocation2 + $0x10] sm:$0xff] }
 0x280   : > { %v1608_v50 = vld [vmem:[#allocation3] sm:$0xff]  ;;  %v3108_v51 = vmul.f32 0.0009765625, %v1544_v49  ;;  %v1609_v54 = vld [vmem:[#allocation3 + $0x8] sm:$0xff]  ;;  %v3110_v55 = vmul.f32 0.0009765625, %v1545_v53  ;;  %v1610_v58 = vld [vmem:[#allocation3 + $0x10] sm:$0xff]  ;;  %v3114_v60 = vmul.f32 0.0009765625, %v1546_v57 }
 0x281   : > { %v1640_v52 = vmul.f32 0.0009765625, %v1608_v50  ;;  %v1641_v56 = vmul.f32 0.0009765625, %v1609_v54  ;;  %v1642_v61 = vmul.f32 0.0009765625, %v1610_v58  ;;  %v1547_v62 = vld [vmem:[#allocation2 + $0x18] sm:$0xff]  ;;  %v1548_v3 = vld [vmem:[#allocation2 + $0x20] sm:$0xff]  ;;  %v1549_v9 = vld [vmem:[#allocation2 + $0x28] sm:$0xff] }
 0x282   : > { %v1672_v59 = vmul.f32 %v3108_v51, %v3108_v51  ;;  %v1611_v63 = vld [vmem:[#allocation3 + $0x18] sm:$0xff]  ;;  %v1673_v0 = vmul.f32 %v3110_v55, %v3110_v55  ;;  %v3118_v1 = vmul.f32 0.0009765625, %v1547_v62  ;;  %v1612_v4 = vld [vmem:[#allocation3 + $0x20] sm:$0xff]  ;;  %v1674_v6 = vmul.f32 %v3114_v60, %v3114_v60  ;;  %v1613_v10 = vld [vmem:[#allocation3 + $0x28] sm:$0xff] }
 0x283   : > { %v1643_v2 = vmul.f32 0.0009765625, %v1611_v63  ;;  %v3122_v7 = vmul.f32 0.0009765625, %v1548_v3  ;;  %v1644_v8 = vmul.f32 0.0009765625, %v1612_v4  ;;  %v3126_v13 = vmul.f32 0.0009765625, %v1549_v9  ;;  %v1550_v15 = vld [vmem:[#allocation2 + $0x30] sm:$0xff]  ;;  %v1551_v25 = vld [vmem:[#allocation2 + $0x38] sm:$0xff] }
 0x284   : > { %v1704_v5 = vsub.f32 %v1640_v52, %v1672_v59  ;;  %v1705_v11 = vsub.f32 %v1641_v56, %v1673_v0  ;;  %v1675_v12 = vmul.f32 %v3118_v1, %v3118_v1  ;;  %v1645_v14 = vmul.f32 0.0009765625, %v1613_v10  ;;  %v1614_v16 = vld [vmem:[#allocation3 + $0x30] sm:$0xff]  ;;  %v1615_v36 = vld [vmem:[#allocation3 + $0x38] sm:$0xff]  ;;  %v1552_v41 = vld [vmem:[#allocation2 + $0x40] sm:$0xff] }
 0x285   : > { %v1706_v18 = vsub.f32 %v1642_v61, %v1674_v6  ;;  %v1676_v19 = vmul.f32 %v3122_v7, %v3122_v7  ;;  %v3130_v20 = vmul.f32 0.0009765625, %v1550_v15  ;;  %v1677_v23 = vmul.f32 %v3126_v13, %v3126_v13  ;;  %v1616_v44 = vld [vmem:[#allocation3 + $0x40] sm:$0xff]  ;;  %v1553_v45 = vld [vmem:[#allocation2 + $0x48] sm:$0xff]  ;;  %v1554_v50 = vld [vmem:[#allocation2 + $0x50] sm:$0xff] }
 0x286   : > { %v1736_v17 = vmax.f32 %v1704_v5, 0.0  ;;  %v1737_v21 = vmax.f32 %v1705_v11, 0.0  ;;  %v1707_v22 = vsub.f32 %v1643_v2, %v1675_v12  ;;  %v1646_v24 = vmul.f32 0.0009765625, %v1614_v16  ;;  %v1617_v48 = vld [vmem:[#allocation3 + $0x48] sm:$0xff] }
 0x287   : > { %v1738_v27 = vmax.f32 %v1706_v18, 0.0  ;;  %v1708_v28 = vsub.f32 %v1644_v8, %v1676_v19  ;;  %v1678_v29 = vmul.f32 %v3130_v20, %v3130_v20  ;;  %v1709_v32 = vsub.f32 %v1645_v14, %v1677_v23 }
 0x288   : > { %v3134_v26 = vadd.f32 1e-05, %v1736_v17  ;;  %v3138_v30 = vadd.f32 1e-05, %v1737_v21  ;;  %v1739_v31 = vmax.f32 %v1707_v22, 0.0  ;;  %v3143_v35 = vmul.f32 0.0009765625, %v1551_v25 }
 0x289   : > { %v3141_v33 = vadd.f32 1e-05, %v1738_v27  ;;  %v1740_v34 = vmax.f32 %v1708_v28, 0.0  ;;  %v1741_v38 = vmax.f32 %v1709_v32, 0.0  ;;  %v1710_v40 = vsub.f32 %v1646_v24, %v1678_v29  ;;  %v1619_v27 = vld [vmem:[#allocation3 + $0x58] sm:$0xff] }
 0x28a   : > { %2554 = vrsqrt.f32 %v3134_v26  ;;  %v3146_v37 = vadd.f32 1e-05, %v1739_v31  ;;  %v1647_v43 = vmul.f32 0.0009765625, %v1615_v36  ;;  %vm1806_vm2 = vweird.f32 %v3134_v26  ;;  %v2120_v36 = vld [vmem:[%s4552_s2] sm:$0xff] }
 0x28b   : > { %2556 = vrsqrt.f32 %v3138_v30  ;;  %v3149_v39 = vadd.f32 1e-05, %v1740_v34  ;;  %v3152_v42 = vadd.f32 1e-05, %v1741_v38  ;;  %v1742_v46 = vmax.f32 %v1710_v40, 0.0 }
 0x28c   : > { %2558 = vrsqrt.f32 %v3141_v33  ;;  %v1679_v47 = vmul.f32 %v3143_v35, %v3143_v35  ;;  %vm1816_vm3 = vweird.f32 %v3138_v30  ;;  %vm1826_vm4 = vweird.f32 %v3141_v33 }
 0x28d   : > { %2560 = vrsqrt.f32 %v3146_v37  ;;  %v3161_v49 = vmul.f32 0.0009765625, %v1552_v41  ;;  %vm1836_vm5 = vweird.f32 %v3146_v37  ;;  %v3166_v53 = vadd.f32 1e-05, %v1742_v46 }
 0x28e   : > { %2562 = vrsqrt.f32 %v3149_v39  ;;  %v1711_v54 = vsub.f32 %v1647_v43, %v1679_v47  ;;  %v1648_v56 = vmul.f32 0.0009765625, %v1616_v44  ;;  %v3168_v57 = vmul.f32 0.0009765625, %v1553_v45  ;;  %v2121_v44 = vld [vmem:[%s4552_s2 + $0x8] sm:$0xff] }
 0x28f   : > { %2564 = vrsqrt.f32 %v3152_v42  ;;  %vm1846_vm7 = vweird.f32 %v3149_v39  ;;  %v1680_v61 = vmul.f32 %v3161_v49, %v3161_v49  ;;  %v3178_v62 = vmul.f32 0.0009765625, %v1617_v48 }
 0x290   : > { %v3163_v52 = vpop.eup %2554  ;;  %vm1856_vm9 = vweird.f32 %v3152_v42  ;;  %2566 = vrsqrt.f32 %v3166_v53  ;;  %v3187_v2 = vmul.f32 0.0009765625, %v1554_v50  ;;  %v1743_v6 = vmax.f32 %v1711_v54, 0.0  ;;  %v2122_v50 = vld [vmem:[%s4552_s2 + $0x10] sm:$0xff] }
 0x291   : > { %v3170_v58 = vpop.eup %2556  ;;  %v1801_v59 = vmul.f32 %v3163_v52, %v3134_v26  ;;  %vm1807_vm6 = vweird.f32 %v3163_v52  ;;  %v1712_v11 = vsub.f32 %v1648_v56, %v1680_v61  ;;  %vm1866_vm13 = vweird.f32 %v3166_v53 }
 0x292   : > { %v3180_v63 = vpop.eup %2558  ;;  %v1811_v0 = vmul.f32 %v3170_v58, %v3138_v30  ;;  %vm1817_vm8 = vweird.f32 %v3170_v58  ;;  %v3213_v24 = vadd.f32 1e-05, %v1743_v6  ;;  %vm3221_vm15 = vmor %vm1806_vm2, %vm1807_vm6  ;;  %v1621_v30 = vld [vmem:[#allocation3 + $0x68] sm:$0xff] }
 0x293   : > { %v3189_v3 = vpop.eup %2560  ;;  %v1802_v4 = vmul.f32 %v3163_v52, %v1801_v59  ;;  %v1821_v5 = vmul.f32 %v3180_v63, %v3141_v33  ;;  %vm1827_vm10 = vweird.f32 %v3180_v63  ;;  %v1744_v32 = vmax.f32 %v1712_v11, 0.0  ;;  %vm3234_vm0 = vmor %vm1816_vm3, %vm1817_vm8 }
 0x294   : > { %v3195_v8 = vpop.eup %2562  ;;  %v1812_v9 = vmul.f32 %v3170_v58, %v1811_v0  ;;  %v1831_v10 = vmul.f32 %v3189_v3, %v3146_v37  ;;  %vm1837_vm11 = vweird.f32 %v3189_v3  ;;  %vm3248_vm2 = vmor %vm1826_vm4, %vm1827_vm10  ;;  %v2123_v0 = vld [vmem:[%s4552_s2 + $0x18] sm:$0xff]  ;;  %2568 = vrsqrt.f32 %v3213_v24 }
 0x295   : > { %v3201_v12 = vpop.eup %2564  ;;  %v1803_v14 = vmul.f32 0.5, %v1802_v4  ;;  %v1822_v15 = vmul.f32 %v3180_v63, %v1821_v5  ;;  %v1841_v16 = vmul.f32 %v3195_v8, %v3149_v39  ;;  %vm1847_vm12 = vweird.f32 %v3195_v8  ;;  %vm3264_vm4 = vmor %vm1836_vm5, %vm1837_vm11 }
 0x296   : > { %v1813_v17 = vmul.f32 0.5, %v1812_v9  ;;  %v1832_v18 = vmul.f32 %v3189_v3, %v1831_v10  ;;  %v1851_v19 = vmul.f32 %v3201_v12, %v3152_v42  ;;  %vm1857_vm14 = vweird.f32 %v3201_v12  ;;  %v3215_v25 = vpop.eup %2566  ;;  %vm3282_vm5 = vmor %vm1846_vm7, %vm1847_vm12  ;;  %v2124_v9 = vld [vmem:[%s4552_s2 + $0x20] sm:$0xff]  ;;  %v2125_v42 = vld [vmem:[%s4552_s2 + $0x28] sm:$0xff] }
 0x297   : > { %v1804_v21 = vsub.f32 1.5, %v1803_v14  ;;  %v1823_v22 = vmul.f32 0.5, %v1822_v15  ;;  %v1842_v23 = vmul.f32 %v3195_v8, %v1841_v16  ;;  %v1861_v41 = vmul.f32 %v3215_v25, %v3166_v53  ;;  %vm3299_vm6 = vmor %vm1856_vm9, %vm1857_vm14  ;;  %v1618_v15 = vld [vmem:[#allocation3 + $0x50] sm:$0xff] }
 0x298   : > { %v1814_v28 = vsub.f32 1.5, %v1813_v17  ;;  %v1833_v29 = vmul.f32 0.5, %v1832_v18  ;;  %v1852_v31 = vmul.f32 %v3201_v12, %v1851_v19  ;;  %vm1867_vm3 = vweird.f32 %v3215_v25  ;;  %v1555_v18 = vld [vmem:[#allocation2 + $0x58] sm:$0xff] }
 0x299   : > { %v1805_v34 = vmul.f32 %v3163_v52, %v1804_v21  ;;  %v1824_v38 = vsub.f32 1.5, %v1823_v22  ;;  %v1843_v40 = vmul.f32 0.5, %v1842_v23  ;;  %v1862_v56 = vmul.f32 %v3215_v25, %v1861_v41  ;;  %vm3342_vm7 = vmor %vm1866_vm13, %vm1867_vm3 }
 0x29a   : > { %v1815_v43 = vmul.f32 %v3170_v58, %v1814_v28  ;;  %v1834_v45 = vsub.f32 1.5, %v1833_v29  ;;  %v1853_v46 = vmul.f32 0.5, %v1852_v31  ;;  %v3346_v22 = vadd.f32 1e-05, %v1744_v32  ;;  %v1556_v28 = vld [vmem:[#allocation2 + $0x60] sm:$0xff]  ;;  %v2126_v29 = vld [vmem:[%s4552_s2 + $0x30] sm:$0xff] }
 0x29b   : > { %v1809_v47 = vsel %vm3221_vm15, %v3163_v52, %v1805_v34  ;;  %v1825_v48 = vmul.f32 %v3180_v63, %v1824_v38  ;;  %v1844_v54 = vsub.f32 1.5, %v1843_v40  ;;  %v1863_v10 = vmul.f32 0.5, %v1862_v56  ;;  %v1620_v34 = vld [vmem:[#allocation3 + $0x60] sm:$0xff] }
 0x29c   : > { %v3269_v59 = vmul.f32 %v2120_v36, %v1809_v47  ;;  %v1819_v52 = vsel %vm3234_vm0, %v3170_v58, %v1815_v43  ;;  %v1835_v61 = vmul.f32 %v3189_v3, %v1834_v45  ;;  %v1854_v4 = vsub.f32 1.5, %v1853_v46  ;;  %v2569_v45 = vpop.eup %2568 }
 0x29d   : > { %v3286_v5 = vmul.f32 %v2121_v44, %v1819_v52  ;;  %v1829_v58 = vsel %vm3248_vm2, %v3180_v63, %v1825_v48  ;;  %v1845_v6 = vmul.f32 %v3195_v8, %v1844_v54  ;;  %v1864_v17 = vsub.f32 1.5, %v1863_v10  ;;  %v1557_v44 = vld [vmem:[#allocation2 + $0x68] sm:$0xff] }
 0x29e   : > { %2184 = vst.msk [vmem:[%s4554_s4] sm:$0xff] %vm1125_vm1, %v3269_v59  ;;  %v3308_v63 = vmul.f32 %v2122_v50, %v1829_v58  ;;  %v1839_v11 = vsel %vm3264_vm4, %v3189_v3, %v1835_v61  ;;  %v1855_v14 = vmul.f32 %v3201_v12, %v1854_v4  ;;  %v1681_v23 = vmul.f32 %v3168_v57, %v3168_v57  ;;  %v1558_v50 = vld [vmem:[#allocation2 + $0x70] sm:$0xff] }
 0x29f   : > { %2185 = vst.msk [vmem:[%s4554_s4 + $0x8] sm:$0xff] %vm1125_vm1, %v3286_v5  ;;  %v3323_v16 = vmul.f32 %v2123_v0, %v1839_v11  ;;  %v1849_v3 = vsel %vm3282_vm5, %v3195_v8, %v1845_v6  ;;  %v1865_v53 = vmul.f32 %v3215_v25, %v1864_v17  ;;  %v1650_v31 = vmul.f32 0.0009765625, %v1618_v15  ;;  %v1622_v11 = vld [vmem:[#allocation3 + $0x70] sm:$0xff] }
 0x2a0   : > { %2186 = vst.msk [vmem:[%s4554_s4 + $0x10] sm:$0xff] %vm1125_vm1, %v3308_v63  ;;  %v3333_v19 = vmul.f32 %v2124_v9, %v1849_v3  ;;  %v1859_v21 = vsel %vm3299_vm6, %v3201_v12, %v1855_v14  ;;  %v1682_v32 = vmul.f32 %v3187_v2, %v3187_v2  ;;  %2570 = vrsqrt.f32 %v3346_v22 }
 0x2a1   : > { %2187 = vst.msk [vmem:[%s4554_s4 + $0x18] sm:$0xff] %vm1125_vm1, %v3323_v16  ;;  %v3355_v12 = vmul.f32 %v2125_v42, %v1859_v21  ;;  %v1713_v36 = vsub.f32 %v3178_v62, %v1681_v23  ;;  %v3370_v26 = vmul.f32 0.0009765625, %v1555_v18  ;;  %v1869_v38 = vsel %vm3342_vm7, %v3215_v25, %v1865_v53 }
 0x2a2   : > { %2188 = vst.msk [vmem:[%s4554_s4 + $0x20] sm:$0xff] %vm1125_vm1, %v3333_v19  ;;  %v1714_v40 = vsub.f32 %v1650_v31, %v1682_v32  ;;  %v1651_v41 = vmul.f32 0.0009765625, %v1619_v27  ;;  %v3380_v43 = vmul.f32 0.0009765625, %v1556_v28  ;;  %v3382_v62 = vmul.f32 %v2126_v29, %v1869_v38  ;;  %v1559_v27 = vld [vmem:[#allocation2 + $0x78] sm:$0xff] }
 0x2a3   : > { %2189 = vst.msk [vmem:[%s4554_s4 + $0x28] sm:$0xff] %vm1125_vm1, %v3355_v12  ;;  %v1745_v46 = vmax.f32 %v1713_v36, 0.0  ;;  %v1683_v47 = vmul.f32 %v3370_v26, %v3370_v26  ;;  %v1652_v48 = vmul.f32 0.0009765625, %v1620_v34  ;;  %v1871_v33 = vmul.f32 %v2569_v45, %v3213_v24  ;;  %v2127_v32 = vld [vmem:[%s4552_s2 + $0x38] sm:$0xff] }
 0x2a4   : > { %v1746_v54 = vmax.f32 %v1714_v40, 0.0  ;;  %v1684_v25 = vmul.f32 %v3380_v43, %v3380_v43  ;;  %2190 = vst.msk [vmem:[%s4554_s4 + $0x30] sm:$0xff] %vm1125_vm1, %v3382_v62  ;;  %v3396_v61 = vmul.f32 0.0009765625, %v1557_v44  ;;  %v1653_v0 = vmul.f32 0.0009765625, %v1621_v30  ;;  %v1623_v36 = vld [vmem:[#allocation3 + $0x78] sm:$0xff] }
 0x2a5   : > { %v3394_v56 = vadd.f32 1e-05, %v1745_v46  ;;  %v1715_v52 = vsub.f32 %v1651_v41, %v1683_v47  ;;  %v1872_v37 = vmul.f32 %v2569_v45, %v1871_v33  ;;  %v3400_v6 = vmul.f32 0.0009765625, %v1558_v50 }
 0x2a6   : > { %v3398_v4 = vadd.f32 1e-05, %v1746_v54  ;;  %v1716_v58 = vsub.f32 %v1652_v48, %v1684_v25  ;;  %v3402_v9 = vpop.eup %2570  ;;  %vm1876_vm8 = vweird.f32 %v3213_v24  ;;  %v1685_v10 = vmul.f32 %v3396_v61, %v3396_v61  ;;  %v1560_v54 = vld [vmem:[#allocation2 + $0x80] sm:$0xff] }
 0x2a7   : > { %2572 = vrsqrt.f32 %v3394_v56  ;;  %v1747_v39 = vmax.f32 %v1715_v52, 0.0  ;;  %v1873_v14 = vmul.f32 0.5, %v1872_v37  ;;  %vm1877_vm9 = vweird.f32 %v2569_v45  ;;  %v2128_v52 = vld [vmem:[%s4552_s2 + $0x40] sm:$0xff] }
 0x2a8   : > { %v1881_v42 = vmul.f32 %v3402_v9, %v3346_v22  ;;  %2574 = vrsqrt.f32 %v3398_v4  ;;  %vm1886_vm10 = vweird.f32 %v3346_v22  ;;  %v1748_v3 = vmax.f32 %v1716_v58, 0.0  ;;  %vm3419_vm11 = vmor %vm1876_vm8, %vm1877_vm9 }
 0x2a9   : > { %v3412_v15 = vadd.f32 1e-05, %v1747_v39  ;;  %v1717_v17 = vsub.f32 %v1653_v0, %v1685_v10  ;;  %v1874_v18 = vsub.f32 1.5, %v1873_v14  ;;  %v1654_v8 = vmul.f32 0.0009765625, %v1622_v11  ;;  %v1624_v10 = vld [vmem:[#allocation3 + $0x80] sm:$0xff] }
 0x2aa   : > { %v1882_v21 = vmul.f32 %v3402_v9, %v1881_v42  ;;  %v1686_v23 = vmul.f32 %v3400_v6, %v3400_v6  ;;  %vm1896_vm12 = vweird.f32 %v3394_v56  ;;  %v3425_v53 = vadd.f32 1e-05, %v1748_v3 }
 0x2ab   : > { %2576 = vrsqrt.f32 %v3412_v15  ;;  %v1749_v29 = vmax.f32 %v1717_v17, 0.0  ;;  %v1875_v31 = vmul.f32 %v2569_v45, %v1874_v18  ;;  %vm1887_vm13 = vweird.f32 %v3402_v9 }
 0x2ac   : > { %v1883_v34 = vmul.f32 0.5, %v1882_v21  ;;  %v1718_v24 = vsub.f32 %v1654_v8, %v1686_v23  ;;  %vm1906_vm14 = vweird.f32 %v3398_v4  ;;  %2578 = vrsqrt.f32 %v3425_v53  ;;  %vm3450_vm0 = vmor %vm1886_vm10, %vm1887_vm13 }
 0x2ad   : > { %v3431_v38 = vpop.eup %2572  ;;  %v3435_v40 = vadd.f32 1e-05, %v1749_v29  ;;  %v3437_v41 = vmul.f32 0.0009765625, %v1559_v27  ;;  %v1879_v30 = vsel %vm3419_vm11, %v2569_v45, %v1875_v31  ;;  %vm1916_vm15 = vweird.f32 %v3412_v15 }
 0x2ae   : > { %v3439_v44 = vpop.eup %2574  ;;  %v1884_v46 = vsub.f32 1.5, %v1883_v34  ;;  %v1891_v47 = vmul.f32 %v3431_v38, %v3394_v56  ;;  %v3446_v48 = vmul.f32 %v2127_v32, %v1879_v30  ;;  %v1655_v45 = vmul.f32 0.0009765625, %v1623_v36  ;;  %v2129_v30 = vld [vmem:[%s4552_s2 + $0x48] sm:$0xff] }
 0x2af   : > { %v1901_v33 = vmul.f32 %v3439_v44, %v3398_v4  ;;  %2580 = vrsqrt.f32 %v3435_v40  ;;  %vm1926_vm2 = vweird.f32 %v3425_v53  ;;  %v1750_v22 = vmax.f32 %v1718_v24, 0.0 }
 0x2b0   : > { %v1885_v25 = vmul.f32 %v3402_v9, %v1884_v46  ;;  %v1892_v0 = vmul.f32 %v3431_v38, %v1891_v47  ;;  %2191 = vst.msk [vmem:[%s4554_s4 + $0x38] sm:$0xff] %vm1125_vm1, %v3446_v48  ;;  %vm1897_vm3 = vweird.f32 %v3431_v38  ;;  %vm1907_vm4 = vweird.f32 %v3439_v44 }
 0x2b1   : > { %v3463_v37 = vpop.eup %2576  ;;  %v1902_v58 = vmul.f32 %v3439_v44, %v1901_v33  ;;  %v1687_v39 = vmul.f32 %v3437_v41, %v3437_v41  ;;  %vm1936_vm5 = vweird.f32 %v3435_v40  ;;  %v3481_v3 = vmul.f32 0.0009765625, %v1560_v54  ;;  %vm3503_vm6 = vmor %vm1896_vm12, %vm1897_vm3 }
 0x2b2   : > { %v1889_v11 = vsel %vm3450_vm0, %v3402_v9, %v1885_v25  ;;  %v1893_v14 = vmul.f32 0.5, %v1892_v0  ;;  %v1911_v42 = vmul.f32 %v3463_v37, %v3412_v15  ;;  %v3483_v17 = vpop.eup %2578  ;;  %v3487_v8 = vadd.f32 1e-05, %v1750_v22  ;;  %vm3517_vm8 = vmor %vm1906_vm14, %vm1907_vm4 }
 0x2b3   : > { %v3485_v18 = vmul.f32 %v2128_v52, %v1889_v11  ;;  %v1903_v21 = vmul.f32 0.5, %v1902_v58  ;;  %v1719_v23 = vsub.f32 %v1655_v45, %v1687_v39  ;;  %v1921_v9 = vmul.f32 %v3483_v17, %v3425_v53  ;;  %v2130_v45 = vld [vmem:[%s4552_s2 + $0x50] sm:$0xff]  ;;  %v1561_v58 = vld [vmem:[#allocation2 + $0x88] sm:$0xff] }
 0x2b4   : > { %v1894_v27 = vsub.f32 1.5, %v1893_v14  ;;  %v1912_v28 = vmul.f32 %v3463_v37, %v1911_v42  ;;  %v1656_v29 = vmul.f32 0.0009765625, %v1624_v10  ;;  %vm1917_vm7 = vweird.f32 %v3463_v37  ;;  %v1625_v39 = vld [vmem:[#allocation3 + $0x88] sm:$0xff]  ;;  %v1562_v10 = vld [vmem:[#allocation2 + $0x90] sm:$0xff] }
 0x2b5   : > { %v3492_v31 = vpop.eup %2580  ;;  %2192 = vst.msk [vmem:[%s4554_s4 + $0x40] sm:$0xff] %vm1125_vm1, %v3485_v18  ;;  %v1904_v34 = vsub.f32 1.5, %v1903_v21  ;;  %2582 = vrsqrt.f32 %v3487_v8  ;;  %v1751_v24 = vmax.f32 %v1719_v23, 0.0  ;;  %v1922_v47 = vmul.f32 %v3483_v17, %v1921_v9  ;;  %vm3547_vm11 = vmor %vm1916_vm15, %vm1917_vm7 }
 0x2b6   : > { %v1895_v36 = vmul.f32 %v3431_v38, %v1894_v27  ;;  %v1913_v46 = vmul.f32 0.5, %v1912_v28  ;;  %v1931_v50 = vmul.f32 %v3492_v31, %v3435_v40  ;;  %vm1927_vm9 = vweird.f32 %v3483_v17  ;;  %v2133_v40 = vld [vmem:[%s4552_s2 + $0x68] sm:$0xff] }
 0x2b7   : > { %v1905_v33 = vmul.f32 %v3439_v44, %v1904_v34  ;;  %v3529_v54 = vadd.f32 1e-05, %v1751_v24  ;;  %v1688_v4 = vmul.f32 %v3481_v3, %v3481_v3  ;;  %v1923_v0 = vmul.f32 0.5, %v1922_v47  ;;  %vm3570_vm13 = vmor %vm1926_vm2, %vm1927_vm9 }
 0x2b8   : > { %v1899_v25 = vsel %vm3503_vm6, %v3431_v38, %v1895_v36  ;;  %v1914_v52 = vsub.f32 1.5, %v1913_v46  ;;  %v1932_v22 = vmul.f32 %v3492_v31, %v1931_v50  ;;  %vm1946_vm10 = vweird.f32 %v3487_v8  ;;  %v1626_v36 = vld [vmem:[#allocation3 + $0x90] sm:$0xff] }
 0x2b9   : > { %v3538_v11 = vmul.f32 %v2129_v30, %v1899_v25  ;;  %v1909_v14 = vsel %vm3517_vm8, %v3439_v44, %v1905_v33  ;;  %vm1937_vm12 = vweird.f32 %v3492_v31  ;;  %2584 = vrsqrt.f32 %v3529_v54  ;;  %v2131_v44 = vld [vmem:[%s4552_s2 + $0x58] sm:$0xff] }
 0x2ba   : > { %v3553_v42 = vmul.f32 %v2130_v45, %v1909_v14  ;;  %v1915_v21 = vmul.f32 %v3463_v37, %v1914_v52  ;;  %v1924_v23 = vsub.f32 1.5, %v1923_v0  ;;  %v1933_v27 = vmul.f32 0.5, %v1932_v22  ;;  %vm3598_vm14 = vmor %vm1936_vm5, %vm1937_vm12 }
 0x2bb   : > { %v3559_v28 = vpop.eup %2582  ;;  %2193 = vst.msk [vmem:[%s4554_s4 + $0x48] sm:$0xff] %vm1125_vm1, %v3538_v11  ;;  %v1720_v9 = vsub.f32 %v1656_v29, %v1688_v4  ;;  %v3574_v32 = vmul.f32 0.0009765625, %v1561_v58  ;;  %v1657_v34 = vmul.f32 0.0009765625, %v1625_v39  ;;  %v3576_v24 = vmul.f32 0.0009765625, %v1562_v10  ;;  %v2132_v29 = vld [vmem:[%s4552_s2 + $0x60] sm:$0xff]  ;;  %v1563_v10 = vld [vmem:[#allocation2 + $0x98] sm:$0xff] }
 0x2bc   : > { %2194 = vst.msk [vmem:[%s4554_s4 + $0x50] sm:$0xff] %vm1125_vm1, %v3553_v42  ;;  %v1919_v53 = vsel %vm3547_vm11, %v3463_v37, %v1915_v21  ;;  %v1925_v30 = vmul.f32 %v3483_v17, %v1924_v23  ;;  %v1934_v56 = vsub.f32 1.5, %v1933_v27  ;;  %v1941_v46 = vmul.f32 %v3559_v28, %v3487_v8  ;;  %v1564_v23 = vld [vmem:[#allocation2 + $0xa0] sm:$0xff] }
 0x2bd   : > { %4603 = vst [vmem:[#allocation7_spill] sm:$0xff] %v3574_v32  ;;  %v3592_v47 = vmul.f32 %v2131_v44, %v1919_v53  ;;  %vm1956_vm15 = vweird.f32 %v3529_v54  ;;  %v1752_v37 = vmax.f32 %v1720_v9, 0.0  ;;  %v1689_v33 = vmul.f32 %v3574_v32, %v3574_v32  ;;  %v1627_v44 = vld [vmem:[#allocation3 + $0x98] sm:$0xff]  ;;  %v1628_v27 = vld [vmem:[#allocation3 + $0xa0] sm:$0xff] }
 0x2be   : > { %4604 = vst [vmem:[#allocation8_spill] sm:$0xff] %v3576_v24  ;;  %v1929_v45 = vsel %vm3570_vm13, %v3483_v17, %v1925_v30  ;;  %v1935_v4 = vmul.f32 %v3492_v31, %v1934_v56  ;;  %v1942_v25 = vmul.f32 %v3559_v28, %v1941_v46  ;;  %v1658_v52 = vmul.f32 0.0009765625, %v1626_v36  ;;  %v1565_v30 = vld [vmem:[#allocation2 + $0xa8] sm:$0xff] }
 0x2bf   : > { %v3613_v0 = vpop.eup %2584  ;;  %2195 = vst.msk [vmem:[%s4554_s4 + $0x58] sm:$0xff] %vm1125_vm1, %v3592_v47  ;;  %v3620_v22 = vmul.f32 %v2132_v29, %v1929_v45  ;;  %v3622_v17 = vadd.f32 1e-05, %v1752_v37  ;;  %v1721_v58 = vsub.f32 %v1657_v34, %v1689_v33  ;;  %v1690_v39 = vmul.f32 %v3576_v24, %v3576_v24  ;;  %v2134_v45 = vld [vmem:[%s4552_s2 + $0x70] sm:$0xff] }
 0x2c0   : > { %v1939_v14 = vsel %vm3598_vm14, %v3492_v31, %v1935_v4  ;;  %v1943_v38 = vmul.f32 0.5, %v1942_v25  ;;  %vm1947_vm0 = vweird.f32 %v3559_v28  ;;  %v1951_v21 = vmul.f32 %v3613_v0, %v3529_v54  ;;  %v1629_v25 = vld [vmem:[#allocation3 + $0xa8] sm:$0xff] }
 0x2c1   : > { %2196 = vst.msk [vmem:[%s4554_s4 + $0x60] sm:$0xff] %vm1125_vm1, %v3620_v22  ;;  %v3637_v15 = vmul.f32 %v2133_v40, %v1939_v14  ;;  %vm1957_vm2 = vweird.f32 %v3613_v0  ;;  %2586 = vrsqrt.f32 %v3622_v17  ;;  %v1753_v31 = vmax.f32 %v1721_v58, 0.0  ;;  %vm3653_vm3 = vmor %vm1946_vm10, %vm1947_vm0 }
 0x2c2   : > { %v1944_v9 = vsub.f32 1.5, %v1943_v38  ;;  %v1952_v34 = vmul.f32 %v3613_v0, %v1951_v21  ;;  %v1722_v36 = vsub.f32 %v1658_v52, %v1690_v39  ;;  %v3642_v53 = vmul.f32 0.0009765625, %v1563_v10  ;;  %vm3685_vm4 = vmor %vm1956_vm15, %vm1957_vm2 }
 0x2c3   : > { %2197 = vst.msk [vmem:[%s4554_s4 + $0x68] sm:$0xff] %vm1125_vm1, %v3637_v15  ;;  %v3657_v56 = vadd.f32 1e-05, %v1753_v31  ;;  %v1659_v46 = vmul.f32 0.0009765625, %v1627_v44  ;;  %v3659_v50 = vmul.f32 0.0009765625, %v1564_v23  ;;  %v1660_v37 = vmul.f32 0.0009765625, %v1628_v27 }
 0x2c4   : > { %4607 = vst [vmem:[#allocation9_spill] sm:$0xff] %v3642_v53  ;;  %v1945_v33 = vmul.f32 %v3559_v28, %v1944_v9  ;;  %v1953_v4 = vmul.f32 0.5, %v1952_v34  ;;  %v1754_v40 = vmax.f32 %v1722_v36, 0.0  ;;  %v1691_v8 = vmul.f32 %v3642_v53, %v3642_v53  ;;  %v1566_v9 = vld [vmem:[#allocation2 + $0xb0] sm:$0xff] }
 0x2c5   : > { %4610 = vst [vmem:[#allocation10_spill] sm:$0xff] %v3659_v50  ;;  %2588 = vrsqrt.f32 %v3657_v56  ;;  %v1692_v52 = vmul.f32 %v3659_v50, %v3659_v50  ;;  %v3670_v58 = vmul.f32 0.0009765625, %v1565_v30  ;;  %v1661_v31 = vmul.f32 0.0009765625, %v1629_v25  ;;  %v1630_v34 = vld [vmem:[#allocation3 + $0xb0] sm:$0xff]  ;;  %v2135_v30 = vld [vmem:[%s4552_s2 + $0x78] sm:$0xff] }
 0x2c6   : > { %v1949_v39 = vsel %vm3653_vm3, %v3559_v28, %v1945_v33  ;;  %v1954_v10 = vsub.f32 1.5, %v1953_v4  ;;  %v3675_v14 = vadd.f32 1e-05, %v1754_v40  ;;  %v1723_v38 = vsub.f32 %v1659_v46, %v1691_v8 }
 0x2c7   : > { %4611 = vst [vmem:[#allocation11_spill] sm:$0xff] %v3670_v58  ;;  %v3677_v21 = vpop.eup %2586  ;;  %v3679_v44 = vmul.f32 %v2134_v45, %v1949_v39  ;;  %v1724_v27 = vsub.f32 %v1660_v37, %v1692_v52  ;;  %v1693_v28 = vmul.f32 %v3670_v58, %v3670_v58  ;;  %vm1966_vm5 = vweird.f32 %v3622_v17 }
 0x2c8   : > { %v1955_v36 = vmul.f32 %v3613_v0, %v1954_v10  ;;  %v1961_v54 = vmul.f32 %v3677_v21, %v3622_v17  ;;  %2590 = vrsqrt.f32 %v3675_v14  ;;  %v1755_v29 = vmax.f32 %v1723_v38, 0.0  ;;  %v2136_v17 = vld [vmem:[%s4552_s2 + $0x80] sm:$0xff] }
 0x2c9   : > { %2198 = vst.msk [vmem:[%s4554_s4 + $0x70] sm:$0xff] %vm1125_vm1, %v3679_v44  ;;  %v1756_v46 = vmax.f32 %v1724_v27, 0.0  ;;  %v1725_v37 = vsub.f32 %v1661_v31, %v1693_v28  ;;  %v3708_v4 = vmul.f32 0.0009765625, %v1566_v9  ;;  %v1662_v40 = vmul.f32 0.0009765625, %v1630_v34  ;;  %v1567_v31 = vld [vmem:[#allocation2 + $0xb8] sm:$0xff] }
 0x2ca   : > { %v1959_v33 = vsel %vm3685_vm4, %v3613_v0, %v1955_v36  ;;  %v1962_v45 = vmul.f32 %v3677_v21, %v1961_v54  ;;  %v3714_v52 = vadd.f32 1e-05, %v1755_v29  ;;  %vm1967_vm6 = vweird.f32 %v3677_v21  ;;  %v1568_v54 = vld [vmem:[#allocation2 + $0xc0] sm:$0xff] }
 0x2cb   : > { %4614 = vst [vmem:[#allocation12_spill] sm:$0xff] %v3708_v4  ;;  %v3710_v8 = vpop.eup %2588  ;;  %v3712_v25 = vmul.f32 %v2135_v30, %v1959_v33  ;;  %v3716_v39 = vadd.f32 1e-05, %v1756_v46  ;;  %v1757_v10 = vmax.f32 %v1725_v37, 0.0  ;;  %v1694_v23 = vmul.f32 %v3708_v4, %v3708_v4  ;;  %v1631_v30 = vld [vmem:[#allocation3 + $0xb8] sm:$0xff]  ;;  %vm3740_vm8 = vmor %vm1966_vm5, %vm1967_vm6  ;;  %v1632_v37 = vld [vmem:[#allocation3 + $0xc0] sm:$0xff] }
 0x2cc   : > { %v1963_v38 = vmul.f32 0.5, %v1962_v45  ;;  %v1971_v0 = vmul.f32 %v3710_v8, %v3657_v56  ;;  %vm1976_vm7 = vweird.f32 %v3657_v56  ;;  %2592 = vrsqrt.f32 %v3714_v52 }
 0x2cd   : > { %2199 = vst.msk [vmem:[%s4554_s4 + $0x78] sm:$0xff] %vm1125_vm1, %v3712_v25  ;;  %v3730_v27 = vadd.f32 1e-05, %v1757_v10  ;;  %2594 = vrsqrt.f32 %v3716_v39  ;;  %v1726_v36 = vsub.f32 %v1662_v40, %v1694_v23  ;;  %vm1977_vm9 = vweird.f32 %v3710_v8 }
 0x2ce   : > { %v3732_v28 = vpop.eup %2590  ;;  %v1964_v9 = vsub.f32 1.5, %v1963_v38  ;;  %v1972_v34 = vmul.f32 %v3710_v8, %v1971_v0  ;;  %vm1986_vm10 = vweird.f32 %v3675_v14  ;;  %vm1996_vm11 = vweird.f32 %v3714_v52  ;;  %vm3775_vm15 = vmor %vm1976_vm7, %vm1977_vm9 }
 0x2cf   : > { %v1981_v46 = vmul.f32 %v3732_v28, %v3675_v14  ;;  %2596 = vrsqrt.f32 %v3730_v27  ;;  %v1758_v40 = vmax.f32 %v1726_v36, 0.0  ;;  %v3754_v10 = vmul.f32 0.0009765625, %v1567_v31 }
 0x2d0   : > { %v1965_v33 = vmul.f32 %v3677_v21, %v1964_v9  ;;  %v1973_v45 = vmul.f32 0.5, %v1972_v34  ;;  %vm1987_vm12 = vweird.f32 %v3732_v28  ;;  %vm2006_vm13 = vweird.f32 %v3716_v39  ;;  %v1569_v9 = vld [vmem:[#allocation2 + $0xc8] sm:$0xff] }
 0x2d1   : > { %4617 = vst [vmem:[#allocation13_spill] sm:$0xff] %v3754_v10  ;;  %v1982_v38 = vmul.f32 %v3732_v28, %v1981_v46  ;;  %v1663_v0 = vmul.f32 0.0009765625, %v1631_v30  ;;  %v3759_v23 = vmul.f32 0.0009765625, %v1568_v54  ;;  %vm2016_vm14 = vweird.f32 %v3730_v27  ;;  %vm3812_vm3 = vmor %vm1986_vm10, %vm1987_vm12 }
 0x2d2   : > { %v1969_v4 = vsel %vm3740_vm8, %v3677_v21, %v1965_v33  ;;  %v1974_v34 = vsub.f32 1.5, %v1973_v45  ;;  %v3765_v36 = vadd.f32 1e-05, %v1758_v40  ;;  %v1664_v31 = vmul.f32 0.0009765625, %v1632_v37  ;;  %v3767_v58 = vpop.eup %2592  ;;  %v2137_v33 = vld [vmem:[%s4552_s2 + $0x88] sm:$0xff] }
 0x2d3   : > { %4618 = vst [vmem:[#allocation14_spill] sm:$0xff] %v3759_v23  ;;  %v3769_v46 = vmul.f32 %v2136_v17, %v1969_v4  ;;  %v1983_v54 = vmul.f32 0.5, %v1982_v38  ;;  %v1695_v21 = vmul.f32 %v3754_v10, %v3754_v10  ;;  %v1696_v29 = vmul.f32 %v3759_v23, %v3759_v23  ;;  %v3783_v37 = vpop.eup %2594 }
 0x2d4   : > { %v1975_v4 = vmul.f32 %v3710_v8, %v1974_v34  ;;  %v1991_v56 = vmul.f32 %v3767_v58, %v3714_v52  ;;  %2598 = vrsqrt.f32 %v3765_v36  ;;  %v3792_v17 = vmul.f32 0.0009765625, %v1569_v9  ;;  %v1633_v34 = vld [vmem:[#allocation3 + $0xc8] sm:$0xff] }
 0x2d5   : > { %v3794_v45 = vpop.eup %2596  ;;  %2200 = vst.msk [vmem:[%s4554_s4 + $0x80] sm:$0xff] %vm1125_vm1, %v3769_v46  ;;  %v1984_v40 = vsub.f32 1.5, %v1983_v54  ;;  %vm1997_vm0 = vweird.f32 %v3767_v58  ;;  %v2001_v38 = vmul.f32 %v3783_v37, %v3716_v39  ;;  %vm2007_vm2 = vweird.f32 %v3783_v37 }
 0x2d6   : > { %4621 = vst [vmem:[#allocation15_spill] sm:$0xff] %v3792_v17  ;;  %v1979_v9 = vsel %vm3775_vm15, %v3710_v8, %v1975_v4  ;;  %v1992_v54 = vmul.f32 %v3767_v58, %v1991_v56  ;;  %v2011_v10 = vmul.f32 %v3794_v45, %v3730_v27  ;;  %vm2017_vm4 = vweird.f32 %v3794_v45  ;;  %v2138_v8 = vld [vmem:[%s4552_s2 + $0x90] sm:$0xff]  ;;  %vm3846_vm5 = vmor %vm1996_vm11, %vm1997_vm0  ;;  %v2141_v27 = vld [vmem:[%s4552_s2 + $0xa8] sm:$0xff] }
 0x2d7   : > { %v3820_v50 = vmul.f32 %v2137_v33, %v1979_v9  ;;  %v1985_v30 = vmul.f32 %v3732_v28, %v1984_v40  ;;  %v2002_v14 = vmul.f32 %v3783_v37, %v2001_v38  ;;  %v1727_v4 = vsub.f32 %v1663_v0, %v1695_v21  ;;  %vm3867_vm6 = vmor %vm2006_vm13, %vm2007_vm2 }
 0x2d8   : > { %v1993_v53 = vmul.f32 0.5, %v1992_v54  ;;  %v2012_v24 = vmul.f32 %v3794_v45, %v2011_v10  ;;  %v1728_v56 = vsub.f32 %v1664_v31, %v1696_v29  ;;  %v1665_v32 = vmul.f32 0.0009765625, %v1633_v34  ;;  %vm3881_vm7 = vmor %vm2016_vm14, %vm2017_vm4 }
 0x2d9   : > { %4624 = vst [vmem:[#allocation16_spill] sm:$0xff] %v3820_v50  ;;  %v1989_v33 = vsel %vm3812_vm3, %v3732_v28, %v1985_v30  ;;  %v2003_v40 = vmul.f32 0.5, %v2002_v14  ;;  %v1759_v9 = vmax.f32 %v1727_v4, 0.0  ;;  %v1697_v0 = vmul.f32 %v3792_v17, %v3792_v17  ;;  %v1570_v4 = vld [vmem:[#allocation2 + $0xd0] sm:$0xff] }
 0x2da   : > { %2201 = vst.msk [vmem:[%s4554_s4 + $0x88] sm:$0xff] %vm1125_vm1, %v3820_v50  ;;  %v3838_v21 = vpop.eup %2598  ;;  %v3840_v10 = vmul.f32 %v2138_v8, %v1989_v33  ;;  %v1994_v31 = vsub.f32 1.5, %v1993_v53  ;;  %v2013_v29 = vmul.f32 0.5, %v2012_v24  ;;  %v1760_v38 = vmax.f32 %v1728_v56, 0.0  ;;  %v2139_v53 = vld [vmem:[%s4552_s2 + $0x98] sm:$0xff]  ;;  %v2140_v33 = vld [vmem:[%s4552_s2 + $0xa0] sm:$0xff] }
 0x2db   : > { %v2004_v28 = vsub.f32 1.5, %v2003_v40  ;;  %v2021_v23 = vmul.f32 %v3838_v21, %v3765_v36  ;;  %v3852_v54 = vadd.f32 1e-05, %v1759_v9  ;;  %v1729_v14 = vsub.f32 %v1665_v32, %v1697_v0  ;;  %v1634_v32 = vld [vmem:[#allocation3 + $0xd0] sm:$0xff] }
 0x2dc   : > { %4625 = vst [vmem:[#allocation17_spill] sm:$0xff] %v3840_v10  ;;  %v1995_v24 = vmul.f32 %v3767_v58, %v1994_v31  ;;  %v2014_v30 = vsub.f32 1.5, %v2013_v29  ;;  %v3871_v8 = vadd.f32 1e-05, %v1760_v38  ;;  %vm2026_vm8 = vweird.f32 %v3765_v36  ;;  %v1571_v31 = vld [vmem:[#allocation2 + $0xd8] sm:$0xff] }
 0x2dd   : > { %2202 = vst.msk [vmem:[%s4554_s4 + $0x90] sm:$0xff] %vm1125_vm1, %v3840_v10  ;;  %v2005_v56 = vmul.f32 %v3783_v37, %v2004_v28  ;;  %v2022_v40 = vmul.f32 %v3838_v21, %v2021_v23  ;;  %2600 = vrsqrt.f32 %v3852_v54  ;;  %vm2027_vm9 = vweird.f32 %v3838_v21  ;;  %v1572_v23 = vld [vmem:[#allocation2 + $0xe0] sm:$0xff] }
 0x2de   : > { %v1999_v9 = vsel %vm3846_vm5, %v3767_v58, %v1995_v24  ;;  %v2015_v0 = vmul.f32 %v3794_v45, %v2014_v30  ;;  %2602 = vrsqrt.f32 %v3871_v8  ;;  %v1761_v34 = vmax.f32 %v1729_v14, 0.0  ;;  %v1635_v58 = vld [vmem:[#allocation3 + $0xd8] sm:$0xff]  ;;  %v1636_v24 = vld [vmem:[#allocation3 + $0xe0] sm:$0xff]  ;;  %vm3929_vm10 = vmor %vm2026_vm8, %vm2027_vm9 }
 0x2df   : > { %v3897_v29 = vmul.f32 %v2139_v53, %v1999_v9  ;;  %v2009_v38 = vsel %vm3867_vm6, %v3783_v37, %v2005_v56  ;;  %v2023_v28 = vmul.f32 0.5, %v2022_v40  ;;  %v3907_v10 = vmul.f32 0.0009765625, %v1570_v4  ;;  %v2142_v40 = vld [vmem:[%s4552_s2 + $0xb0] sm:$0xff] }
 0x2e0   : > { %v3902_v30 = vmul.f32 %v2140_v33, %v2009_v38  ;;  %v2019_v17 = vsel %vm3881_vm7, %v3794_v45, %v2015_v0  ;;  %v1666_v50 = vmul.f32 0.0009765625, %v1634_v32  ;;  %v3916_v52 = vadd.f32 1e-05, %v1761_v34  ;;  %v1573_v38 = vld [vmem:[#allocation2 + $0xe8] sm:$0xff] }
 0x2e1   : > { %4633 = vst [vmem:[#allocation19_spill] sm:$0xff] %v3907_v10  ;;  %v3914_v37 = vmul.f32 %v2141_v27, %v2019_v17  ;;  %v2024_v53 = vsub.f32 1.5, %v2023_v28  ;;  %v3918_v14 = vmul.f32 0.0009765625, %v1571_v31  ;;  %v1698_v17 = vmul.f32 %v3907_v10, %v3907_v10 }
 0x2e2   : > { %4632 = vst [vmem:[#allocation18_spill] sm:$0xff] %v3902_v30  ;;  %v1667_v4 = vmul.f32 0.0009765625, %v1635_v58  ;;  %v3935_v56 = vmul.f32 0.0009765625, %v1572_v23  ;;  %v1668_v33 = vmul.f32 0.0009765625, %v1636_v24  ;;  %vm2036_vm11 = vweird.f32 %v3852_v54  ;;  %v1637_v23 = vld [vmem:[#allocation3 + $0xe8] sm:$0xff] }
 0x2e3   : > { %2203 = vst.msk [vmem:[%s4554_s4 + $0x98] sm:$0xff] %vm1125_vm1, %v3897_v29  ;;  %v3937_v39 = vpop.eup %2600  ;;  %v2025_v36 = vmul.f32 %v3838_v21, %v2024_v53  ;;  %2604 = vrsqrt.f32 %v3916_v52  ;;  %v1699_v32 = vmul.f32 %v3918_v14, %v3918_v14  ;;  %vm2046_vm12 = vweird.f32 %v3871_v8 }
 0x2e4   : > { %4634 = vst [vmem:[#allocation20_spill] sm:$0xff] %v3914_v37  ;;  %v3952_v9 = vpop.eup %2602  ;;  %v2031_v0 = vmul.f32 %v3937_v39, %v3852_v54  ;;  %v1730_v27 = vsub.f32 %v1666_v50, %v1698_v17  ;;  %v1700_v31 = vmul.f32 %v3935_v56, %v3935_v56  ;;  %vm2037_vm13 = vweird.f32 %v3937_v39 }
 0x2e5   : > { %4635 = vst [vmem:[#allocation21_spill] sm:$0xff] %v3918_v14  ;;  %v2029_v28 = vsel %vm3929_vm10, %v3838_v21, %v2025_v36  ;;  %v2041_v34 = vmul.f32 %v3952_v9, %v3871_v8  ;;  %v1731_v58 = vsub.f32 %v1667_v4, %v1699_v32  ;;  %v1574_v14 = vld [vmem:[#allocation2 + $0xf0] sm:$0xff]  ;;  %vm2047_vm14 = vweird.f32 %v3952_v9  ;;  %vm3995_vm0 = vmor %vm2036_vm11, %vm2037_vm13 }
 0x2e6   : > { %2204 = vst.msk [vmem:[%s4554_s4 + $0xa0] sm:$0xff] %vm1125_vm1, %v3902_v30  ;;  %v3965_v24 = vmul.f32 %v2142_v40, %v2029_v28  ;;  %v2032_v53 = vmul.f32 %v3937_v39, %v2031_v0  ;;  %v1762_v50 = vmax.f32 %v1730_v27, 0.0  ;;  %v1732_v17 = vsub.f32 %v1668_v33, %v1700_v31  ;;  %v1638_v36 = vld [vmem:[#allocation3 + $0xf0] sm:$0xff]  ;;  %vm4009_vm3 = vmor %vm2046_vm12, %vm2047_vm14 }
 0x2e7   : > { %4638 = vst [vmem:[#allocation22_spill] sm:$0xff] %v3935_v56  ;;  %v2042_v56 = vmul.f32 %v3952_v9, %v2041_v34  ;;  %v1763_v45 = vmax.f32 %v1731_v58, 0.0  ;;  %v3970_v21 = vmul.f32 0.0009765625, %v1573_v38  ;;  %v1669_v33 = vmul.f32 0.0009765625, %v1637_v23 }
 0x2e8   : > { %2205 = vst.msk [vmem:[%s4554_s4 + $0xa8] sm:$0xff] %vm1125_vm1, %v3914_v37  ;;  %v2033_v4 = vmul.f32 0.5, %v2032_v53  ;;  %v3977_v40 = vadd.f32 1e-05, %v1762_v50  ;;  %v1764_v32 = vmax.f32 %v1732_v17, 0.0  ;;  %v3985_v28 = vmul.f32 0.0009765625, %v1574_v14 }
 0x2e9   : > { %4639 = vst [vmem:[#allocation23_spill] sm:$0xff] %v3965_v24  ;;  %v3979_v0 = vpop.eup %2604  ;;  %v2043_v27 = vmul.f32 0.5, %v2042_v56  ;;  %v3981_v31 = vadd.f32 1e-05, %v1763_v45  ;;  %v1701_v38 = vmul.f32 %v3970_v21, %v3970_v21  ;;  %vm2056_vm15 = vweird.f32 %v3916_v52  ;;  %v1575_v53 = vld [vmem:[#allocation2 + $0xf8] sm:$0xff] }
 0x2ea   : > { %4640 = vst [vmem:[#allocation24_spill] sm:$0xff] %v3970_v21  ;;  %v2034_v34 = vsub.f32 1.5, %v2033_v4  ;;  %v2051_v58 = vmul.f32 %v3979_v0, %v3916_v52  ;;  %2606 = vrsqrt.f32 %v3977_v40  ;;  %vm2057_vm2 = vweird.f32 %v3979_v0  ;;  %v1639_v50 = vld [vmem:[#allocation3 + $0xf8] sm:$0xff] }
 0x2eb   : > { %2206 = vst.msk [vmem:[%s4554_s4 + $0xb0] sm:$0xff] %vm1125_vm1, %v3965_v24  ;;  %v2044_v23 = vsub.f32 1.5, %v2043_v27  ;;  %2608 = vrsqrt.f32 %v3981_v31  ;;  %v1670_v14 = vmul.f32 0.0009765625, %v1638_v36  ;;  %v2143_v45 = vld [vmem:[%s4552_s2 + $0xb8] sm:$0xff]  ;;  %v4014_v27 = vadd.f32 1e-05, %v1764_v32  ;;  %vm4053_vm5 = vmor %vm2056_vm15, %vm2057_vm2 }
 0x2ec   : > { %4641 = vst [vmem:[#allocation25_spill] sm:$0xff] %v3985_v28  ;;  %v2035_v17 = vmul.f32 %v3937_v39, %v2034_v34  ;;  %v2052_v4 = vmul.f32 %v3979_v0, %v2051_v58  ;;  %v1733_v36 = vsub.f32 %v1669_v33, %v1701_v38  ;;  %v2144_v34 = vld [vmem:[%s4552_s2 + $0xc0] sm:$0xff]  ;;  %vm2066_vm4 = vweird.f32 %v3977_v40 }
 0x2ed   : > { %v2045_v21 = vmul.f32 %v3952_v9, %v2044_v23  ;;  %v1702_v8 = vmul.f32 %v3985_v28, %v3985_v28  ;;  %v4023_v10 = vmul.f32 0.0009765625, %v1575_v53  ;;  %2610 = vrsqrt.f32 %v4014_v27 }
 0x2ee   : > { %v2039_v58 = vsel %vm3995_vm0, %v3937_v39, %v2035_v17  ;;  %v2053_v32 = vmul.f32 0.5, %v2052_v4  ;;  %v1671_v33 = vmul.f32 0.0009765625, %v1639_v50  ;;  %v1765_v24 = vmax.f32 %v1733_v36, 0.0  ;;  %v2145_v17 = vld [vmem:[%s4552_s2 + $0xc8] sm:$0xff] }
 0x2ef   : > { %v4029_v38 = vmul.f32 %v2143_v45, %v2039_v58  ;;  %v2049_v23 = vsel %vm4009_vm3, %v3952_v9, %v2045_v21  ;;  %v1734_v37 = vsub.f32 %v1670_v14, %v1702_v8  ;;  %v1703_v39 = vmul.f32 %v4023_v10, %v4023_v10  ;;  %v2216_v14 = vld [vmem:[%s4553_s3] sm:$0xff] }
 0x2f0   : > { %v4034_v30 = vpop.eup %2606  ;;  %v4036_v53 = vmul.f32 %v2144_v34, %v2049_v23  ;;  %v2054_v28 = vsub.f32 1.5, %v2053_v32  ;;  %v2248_v56 = vmul.f32 %v3269_v59, %v3108_v51  ;;  %vm2076_vm6 = vweird.f32 %v3981_v31 }
 0x2f1   : > { %v4042_v50 = vpop.eup %2608  ;;  %2207 = vst.msk [vmem:[%s4554_s4 + $0xb8] sm:$0xff] %vm1125_vm1, %v4029_v38  ;;  %v2061_v21 = vmul.f32 %v4034_v30, %v3977_v40  ;;  %v4060_v51 = vadd.f32 1e-05, %v1765_v24  ;;  %v1766_v59 = vmax.f32 %v1734_v37, 0.0  ;;  %vm2086_vm7 = vweird.f32 %v4014_v27  ;;  %v2224_v40 = vld [vmem:[%s4553_s3 + $0x40] sm:$0xff] }
 0x2f2   : > { %2208 = vst.msk [vmem:[%s4554_s4 + $0xc0] sm:$0xff] %vm1125_vm1, %v4036_v53  ;;  %v2055_v52 = vmul.f32 %v3979_v0, %v2054_v28  ;;  %v2071_v24 = vmul.f32 %v4042_v50, %v3981_v31  ;;  %v1735_v37 = vsub.f32 %v1671_v33, %v1703_v39  ;;  %vm2067_vm8 = vweird.f32 %v4034_v30 }
 0x2f3   : > { %v2062_v45 = vmul.f32 %v4034_v30, %v2061_v21  ;;  %2612 = vrsqrt.f32 %v4060_v51  ;;  %v4080_v54 = vadd.f32 1e-05, %v1766_v59  ;;  %v4082_v4 = vpop.eup %2610  ;;  %v2280_v8 = vsub.f32 %v2216_v14, %v2248_v56  ;;  %v2218_v56 = vld [vmem:[%s4553_s3 + $0x10] sm:$0xff]  ;;  %vm4124_vm11 = vmor %vm2066_vm4, %vm2067_vm8 }
 0x2f4   : > { %v2059_v28 = vsel %vm4053_vm5, %v3979_v0, %v2055_v52  ;;  %v2072_v36 = vmul.f32 %v4042_v50, %v2071_v24  ;;  %v1767_v34 = vmax.f32 %v1735_v37, 0.0  ;;  %vm2077_vm9 = vweird.f32 %v4042_v50  ;;  %v2217_v0 = vld [vmem:[%s4553_s3 + $0x8] sm:$0xff]  ;;  %v2219_v52 = vld [vmem:[%s4553_s3 + $0x18] sm:$0xff] }
 0x2f5   : > { %v4088_v58 = vmul.f32 %v2145_v17, %v2059_v28  ;;  %v2063_v32 = vmul.f32 0.5, %v2062_v45  ;;  %v2081_v33 = vmul.f32 %v4082_v4, %v4014_v27  ;;  %vm2096_vm10 = vweird.f32 %v4060_v51  ;;  %2312 = vst.msk [vmem:[%s4555_s5] sm:$0xff] %vm1125_vm1, %v2280_v8  ;;  %vm4142_vm13 = vmor %vm2076_vm6, %vm2077_vm9 }
 0x2f6   : > { %v2073_v23 = vmul.f32 0.5, %v2072_v36  ;;  %2614 = vrsqrt.f32 %v4080_v54  ;;  %v4095_v39 = vadd.f32 1e-05, %v1767_v34  ;;  %v2249_v59 = vmul.f32 %v3286_v5, %v3110_v55 }
 0x2f7   : > { %2209 = vst.msk [vmem:[%s4554_s4 + $0xc8] sm:$0xff] %vm1125_vm1, %v4088_v58  ;;  %v2064_v9 = vsub.f32 1.5, %v2063_v32  ;;  %v2082_v21 = vmul.f32 %v4082_v4, %v2081_v33  ;;  %v2250_v14 = vmul.f32 %v3308_v63, %v3114_v60  ;;  %vm2087_vm12 = vweird.f32 %v4082_v4  ;;  %v2146_v63 = vld [vmem:[%s4552_s2 + $0xd0] sm:$0xff]  ;;  %v2220_v32 = vld [vmem:[%s4553_s3 + $0x20] sm:$0xff] }
 0x2f8   : > { %v2074_v24 = vsub.f32 1.5, %v2073_v23  ;;  %2616 = vrsqrt.f32 %v4095_v39  ;;  %v2251_v55 = vmul.f32 %v3323_v16, %v3118_v1  ;;  %v2281_v45 = vsub.f32 %v2217_v0, %v2249_v59  ;;  %v2147_v16 = vld [vmem:[%s4552_s2 + $0xd8] sm:$0xff]  ;;  %v2221_v23 = vld [vmem:[%s4553_s3 + $0x28] sm:$0xff]  ;;  %vm4182_vm0 = vmor %vm2086_vm7, %vm2087_vm12 }
 0x2f9   : > { %v4132_v60 = vpop.eup %2612  ;;  %v2065_v5 = vmul.f32 %v4034_v30, %v2064_v9  ;;  %v2083_v37 = vmul.f32 0.5, %v2082_v21  ;;  %v2282_v28 = vsub.f32 %v2218_v56, %v2250_v14  ;;  %vm2106_vm14 = vweird.f32 %v4080_v54  ;;  %v2148_v21 = vld [vmem:[%s4552_s2 + $0xe0] sm:$0xff] }
 0x2fa   : > { %v2075_v1 = vmul.f32 %v4042_v50, %v2074_v24  ;;  %v2091_v36 = vmul.f32 %v4132_v60, %v4060_v51  ;;  %v2283_v34 = vsub.f32 %v2219_v52, %v2251_v55  ;;  %vm2116_vm15 = vweird.f32 %v4095_v39  ;;  %2313 = vst.msk [vmem:[%s4555_s5 + $0x8] sm:$0xff] %vm1125_vm1, %v2281_v45 }
 0x2fb   : > { %v2069_v31 = vsel %vm4124_vm11, %v4034_v30, %v2065_v5  ;;  %v2084_v8 = vsub.f32 1.5, %v2083_v37  ;;  %v2252_v33 = vmul.f32 %v3333_v19, %v3122_v7  ;;  %v2253_v30 = vmul.f32 %v3355_v12, %v3126_v13  ;;  %2314 = vst.msk [vmem:[%s4555_s5 + $0x10] sm:$0xff] %vm1125_vm1, %v2282_v28  ;;  %v2222_v13 = vld [vmem:[%s4553_s3 + $0x30] sm:$0xff] }
 0x2fc   : > { %v4171_v0 = vpop.eup %2614  ;;  %v4173_v56 = vmul.f32 %v2146_v63, %v2069_v31  ;;  %v2079_v9 = vsel %vm4142_vm13, %v4042_v50, %v2075_v1  ;;  %v2092_v19 = vmul.f32 %v4132_v60, %v2091_v36  ;;  %v2254_v12 = vmul.f32 %v3382_v62, %v3130_v20  ;;  %2315 = vst.msk [vmem:[%s4555_s5 + $0x18] sm:$0xff] %vm1125_vm1, %v2283_v34  ;;  %v2223_v63 = vld [vmem:[%s4553_s3 + $0x38] sm:$0xff]  ;;  %v2225_v1 = vld [vmem:[%s4553_s3 + $0x48] sm:$0xff]  ;;  %v2150_v7 = vld [vmem:[%s4552_s2 + $0xf0] sm:$0xff] }
 0x2fd   : > { %v4196_v50 = vmul.f32 %v2147_v16, %v2079_v9  ;;  %v2085_v27 = vmul.f32 %v4082_v4, %v2084_v8  ;;  %vm2097_vm2 = vweird.f32 %v4132_v60  ;;  %v2101_v59 = vmul.f32 %v4171_v0, %v4080_v54  ;;  %v4665_v16 = vld [vmem:[#allocation10_spill] sm:$0xff] }
 0x2fe   : > { %v4209_v14 = vpop.eup %2616  ;;  %2210 = vst.msk [vmem:[%s4554_s4 + $0xd0] sm:$0xff] %vm1125_vm1, %v4173_v56  ;;  %v2093_v20 = vmul.f32 0.5, %v2092_v19  ;;  %vm2107_vm3 = vweird.f32 %v4171_v0  ;;  %v2284_v62 = vsub.f32 %v2220_v32, %v2252_v33  ;;  %v2285_v52 = vsub.f32 %v2221_v23, %v2253_v30  ;;  %vm4251_vm4 = vmor %vm2096_vm10, %vm2097_vm2  ;;  %v2228_v30 = vld [vmem:[%s4553_s3 + $0x60] sm:$0xff] }
 0x2ff   : > { %2211 = vst.msk [vmem:[%s4554_s4 + $0xd8] sm:$0xff] %vm1125_vm1, %v4196_v50  ;;  %v2089_v17 = vsel %vm4182_vm0, %v4082_v4, %v2085_v27  ;;  %v2102_v24 = vmul.f32 %v4171_v0, %v2101_v59  ;;  %v2111_v55 = vmul.f32 %v4209_v14, %v4095_v39  ;;  %v2286_v5 = vsub.f32 %v2222_v13, %v2254_v12  ;;  %vm4293_vm6 = vmor %vm2106_vm14, %vm2107_vm3  ;;  %v2151_v12 = vld [vmem:[%s4552_s2 + $0xf8] sm:$0xff] }
 0x300   : > { %v4234_v37 = vmul.f32 %v2148_v21, %v2089_v17  ;;  %v2094_v45 = vsub.f32 1.5, %v2093_v20  ;;  %2316 = vst.msk [vmem:[%s4555_s5 + $0x20] sm:$0xff] %vm1125_vm1, %v2284_v62  ;;  %v2255_v4 = vmul.f32 %v3446_v48, %v3143_v35  ;;  %v2256_v28 = vmul.f32 %v3485_v18, %v3161_v49  ;;  %v2226_v49 = vld [vmem:[%s4553_s3 + $0x50] sm:$0xff]  ;;  %v2227_v18 = vld [vmem:[%s4553_s3 + $0x58] sm:$0xff]  ;;  %v4660_v62 = vld [vmem:[#allocation7_spill] sm:$0xff] }
 0x301   : > { %v2103_v36 = vmul.f32 0.5, %v2102_v24  ;;  %v2112_v34 = vmul.f32 %v4209_v14, %v2111_v55  ;;  %2317 = vst.msk [vmem:[%s4555_s5 + $0x28] sm:$0xff] %vm1125_vm1, %v2285_v52  ;;  %v2257_v35 = vmul.f32 %v3538_v11, %v3168_v57  ;;  %v2258_v48 = vmul.f32 %v3553_v42, %v3187_v2  ;;  %v2149_v57 = vld [vmem:[%s4552_s2 + $0xe8] sm:$0xff]  ;;  %v4663_v55 = vld [vmem:[#allocation17_spill] sm:$0xff] }
 0x302   : > { %2212 = vst.msk [vmem:[%s4554_s4 + $0xe0] sm:$0xff] %vm1125_vm1, %v4234_v37  ;;  %v2095_v51 = vmul.f32 %v4132_v60, %v2094_v45  ;;  %v2287_v11 = vsub.f32 %v2223_v63, %v2255_v4  ;;  %v2288_v31 = vsub.f32 %v2224_v40, %v2256_v28  ;;  %v2259_v2 = vmul.f32 %v3592_v47, %v3370_v26  ;;  %v4661_v52 = vld [vmem:[#allocation16_spill] sm:$0xff]  ;;  %v2234_v40 = vld [vmem:[%s4553_s3 + $0x90] sm:$0xff] }
 0x303   : > { %v2104_v42 = vsub.f32 1.5, %v2103_v36  ;;  %v2113_v8 = vmul.f32 0.5, %v2112_v34  ;;  %vm2117_vm5 = vweird.f32 %v4209_v14  ;;  %2318 = vst.msk [vmem:[%s4555_s5 + $0x30] sm:$0xff] %vm1125_vm1, %v2286_v5  ;;  %v2289_v32 = vsub.f32 %v2225_v1, %v2257_v35  ;;  %v4662_v24 = vld [vmem:[#allocation8_spill] sm:$0xff]  ;;  %v4664_v45 = vld [vmem:[#allocation9_spill] sm:$0xff]  ;;  %v2235_v1 = vld [vmem:[%s4553_s3 + $0x98] sm:$0xff] }
 0x304   : > { %v2099_v33 = vsel %vm4251_vm4, %v4132_v60, %v2095_v51  ;;  %2319 = vst.msk [vmem:[%s4555_s5 + $0x38] sm:$0xff] %vm1125_vm1, %v2287_v11  ;;  %v2290_v47 = vsub.f32 %v2226_v49, %v2258_v48  ;;  %v2291_v23 = vsub.f32 %v2227_v18, %v2259_v2  ;;  %v2260_v60 = vmul.f32 %v3620_v22, %v3380_v43  ;;  %vm4322_vm7 = vmor %vm2116_vm15, %vm2117_vm5  ;;  %v2229_v22 = vld [vmem:[%s4553_s3 + $0x68] sm:$0xff]  ;;  %v4666_v36 = vld [vmem:[#allocation18_spill] sm:$0xff] }
 0x305   : > { %v4306_v9 = vmul.f32 %v2149_v57, %v2099_v33  ;;  %v2105_v54 = vmul.f32 %v4171_v0, %v2104_v42  ;;  %v2114_v19 = vsub.f32 1.5, %v2113_v8  ;;  %2320 = vst.msk [vmem:[%s4555_s5 + $0x40] sm:$0xff] %vm1125_vm1, %v2288_v31  ;;  %v2261_v13 = vmul.f32 %v3637_v15, %v3396_v61  ;;  %v4667_v49 = vld [vmem:[#allocation11_spill] sm:$0xff]  ;;  %v4668_v48 = vld [vmem:[#allocation20_spill] sm:$0xff]  ;;  %v2238_v8 = vld [vmem:[%s4553_s3 + $0xb0] sm:$0xff] }
 0x306   : > { %2321 = vst.msk [vmem:[%s4555_s5 + $0x48] sm:$0xff] %vm1125_vm1, %v2289_v32  ;;  %v2262_v61 = vmul.f32 %v3679_v44, %v3400_v6  ;;  %v2292_v27 = vsub.f32 %v2228_v30, %v2260_v60  ;;  %v2230_v6 = vld [vmem:[%s4553_s3 + $0x70] sm:$0xff]  ;;  %v2263_v44 = vmul.f32 %v3712_v25, %v3437_v41  ;;  %v2264_v59 = vmul.f32 %v3769_v46, %v3481_v3  ;;  %v2232_v25 = vld [vmem:[%s4553_s3 + $0x80] sm:$0xff]  ;;  %v2237_v57 = vld [vmem:[%s4553_s3 + $0xa8] sm:$0xff] }
 0x307   : > { %2213 = vst.msk [vmem:[%s4554_s4 + $0xe8] sm:$0xff] %vm1125_vm1, %v4306_v9  ;;  %v2109_v15 = vsel %vm4293_vm6, %v4171_v0, %v2105_v54  ;;  %v2115_v39 = vmul.f32 %v4209_v14, %v2114_v19  ;;  %v2231_v0 = vld [vmem:[%s4553_s3 + $0x78] sm:$0xff]  ;;  %v2293_v41 = vsub.f32 %v2229_v22, %v2261_v13  ;;  %v2265_v17 = vmul.f32 %v4661_v52, %v4660_v62  ;;  %v4669_v11 = vld [vmem:[#allocation12_spill] sm:$0xff]  ;;  %v4670_v31 = vld [vmem:[#allocation23_spill] sm:$0xff] }
 0x308   : > { %v2182_v21 = vmul.f32 %v2150_v7, %v2109_v15  ;;  %2322 = vst.msk [vmem:[%s4555_s5 + $0x50] sm:$0xff] %vm1125_vm1, %v2290_v47  ;;  %v2294_v46 = vsub.f32 %v2230_v6, %v2262_v61  ;;  %v2266_v5 = vmul.f32 %v4663_v55, %v4662_v24  ;;  %v2295_v63 = vsub.f32 %v2231_v0, %v2263_v44  ;;  %v4671_v32 = vld [vmem:[#allocation13_spill] sm:$0xff]  ;;  %v2239_v47 = vld [vmem:[%s4553_s3 + $0xb8] sm:$0xff]  ;;  %v4673_v54 = vld [vmem:[#allocation15_spill] sm:$0xff] }
 0x309   : > { %v2119_v20 = vsel %vm4322_vm7, %v4209_v14, %v2115_v39  ;;  %2323 = vst.msk [vmem:[%s4555_s5 + $0x58] sm:$0xff] %vm1125_vm1, %v2291_v23  ;;  %v2233_v14 = vld [vmem:[%s4553_s3 + $0x88] sm:$0xff]  ;;  %v2267_v4 = vmul.f32 %v3897_v29, %v4664_v45  ;;  %v2296_v28 = vsub.f32 %v2232_v25, %v2264_v59  ;;  %v2268_v34 = vmul.f32 %v4666_v36, %v4665_v16  ;;  %v2236_v29 = vld [vmem:[%s4553_s3 + $0xa0] sm:$0xff]  ;;  %v4672_v23 = vld [vmem:[#allocation14_spill] sm:$0xff] }
 0x30a   : > { %2214 = vst.msk [vmem:[%s4554_s4 + $0xf0] sm:$0xff] %vm1125_vm1, %v2182_v21  ;;  %v2183_v3 = vmul.f32 %v2151_v12, %v2119_v20  ;;  %v2297_v35 = vsub.f32 %v2233_v14, %v2265_v17  ;;  %v2269_v18 = vmul.f32 %v4668_v48, %v4667_v49  ;;  %v2298_v51 = vsub.f32 %v2234_v40, %v2266_v5  ;;  %v4674_v13 = vld [vmem:[#allocation19_spill] sm:$0xff]  ;;  %v4675_v61 = vld [vmem:[#allocation21_spill] sm:$0xff]  ;;  %v4676_v12 = vld [vmem:[#allocation22_spill] sm:$0xff] }
 0x30b   : > { %2324 = vst.msk [vmem:[%s4555_s5 + $0x60] sm:$0xff] %vm1125_vm1, %v2292_v27  ;;  %v2270_v2 = vmul.f32 %v4670_v31, %v4669_v11  ;;  %v2299_v42 = vsub.f32 %v2235_v1, %v2267_v4  ;;  %v2271_v33 = vmul.f32 %v4029_v38, %v4671_v32  ;;  %v2300_v26 = vsub.f32 %v2236_v29, %v2268_v34  ;;  %v2240_v38 = vld [vmem:[%s4553_s3 + $0xc0] sm:$0xff]  ;;  %v4677_v44 = vld [vmem:[#allocation24_spill] sm:$0xff]  ;;  %v4678_v20 = vld [vmem:[#allocation25_spill] sm:$0xff] }
 0x30c   : > { %2215 = vst.msk [vmem:[%s4554_s4 + $0xf8] sm:$0xff] %vm1125_vm1, %v2183_v3  ;;  %v2272_v30 = vmul.f32 %v4036_v53, %v4672_v23  ;;  %v2301_v60 = vsub.f32 %v2237_v57, %v2269_v18  ;;  %v2273_v7 = vmul.f32 %v4088_v58, %v4673_v54  ;;  %v2241_v53 = vld [vmem:[%s4553_s3 + $0xc8] sm:$0xff]  ;;  %v2274_v43 = vmul.f32 %v4173_v56, %v4674_v13  ;;  %v2242_v58 = vld [vmem:[%s4553_s3 + $0xd0] sm:$0xff]  ;;  %v2243_v56 = vld [vmem:[%s4553_s3 + $0xd8] sm:$0xff] }
 0x30d   : > { %2325 = vst.msk [vmem:[%s4555_s5 + $0x68] sm:$0xff] %vm1125_vm1, %v2293_v41  ;;  %v2302_v19 = vsub.f32 %v2238_v8, %v2270_v2  ;;  %v2303_v22 = vsub.f32 %v2239_v47, %v2271_v33  ;;  %v2275_v15 = vmul.f32 %v4196_v50, %v4675_v61  ;;  %v2276_v27 = vmul.f32 %v4234_v37, %v4676_v12  ;;  %v2244_v50 = vld [vmem:[%s4553_s3 + $0xe0] sm:$0xff]  ;;  %v2245_v37 = vld [vmem:[%s4553_s3 + $0xe8] sm:$0xff] }
 0x30e   : > { %2326 = vst.msk [vmem:[%s4555_s5 + $0x70] sm:$0xff] %vm1125_vm1, %v2294_v46  ;;  %v2304_v39 = vsub.f32 %v2240_v38, %v2272_v30  ;;  %v2305_v6 = vsub.f32 %v2241_v53, %v2273_v7  ;;  %v2277_v0 = vmul.f32 %v4306_v9, %v4677_v44  ;;  %v2306_v59 = vsub.f32 %v2242_v58, %v2274_v43  ;;  %v2246_v9 = vld [vmem:[%s4553_s3 + $0xf0] sm:$0xff] }
 0x30f   : > { %2327 = vst.msk [vmem:[%s4555_s5 + $0x78] sm:$0xff] %vm1125_vm1, %v2295_v63  ;;  %v2278_v41 = vmul.f32 %v2182_v21, %v4678_v20  ;;  %v2307_v25 = vsub.f32 %v2243_v56, %v2275_v15  ;;  %v2279_v62 = vmul.f32 %v2183_v3, %v4023_v10  ;;  %v2308_v52 = vsub.f32 %v2244_v50, %v2276_v27  ;;  %v2247_v21 = vld [vmem:[%s4553_s3 + $0xf8] sm:$0xff] }
 0x310   : > { %2328 = vst.msk [vmem:[%s4555_s5 + $0x80] sm:$0xff] %vm1125_vm1, %v2296_v28  ;;  %v2309_v17 = vsub.f32 %v2245_v37, %v2277_v0 }
 0x311   : > { %2329 = vst.msk [vmem:[%s4555_s5 + $0x88] sm:$0xff] %vm1125_vm1, %v2297_v35  ;;  %v2310_v10 = vsub.f32 %v2246_v9, %v2278_v41  ;;  %v2311_v3 = vsub.f32 %v2247_v21, %v2279_v62 }
 0x312   : > { %2330 = vst.msk [vmem:[%s4555_s5 + $0x90] sm:$0xff] %vm1125_vm1, %v2298_v51 }
 0x313   : > { %2331 = vst.msk [vmem:[%s4555_s5 + $0x98] sm:$0xff] %vm1125_vm1, %v2299_v42 }
 0x314   : > { %2332 = vst.msk [vmem:[%s4555_s5 + $0xa0] sm:$0xff] %vm1125_vm1, %v2300_v26 }
 0x315   : > { %2333 = vst.msk [vmem:[%s4555_s5 + $0xa8] sm:$0xff] %vm1125_vm1, %v2301_v60 }
 0x316   : > { %2334 = vst.msk [vmem:[%s4555_s5 + $0xb0] sm:$0xff] %vm1125_vm1, %v2302_v19 }
 0x317   : > { %2335 = vst.msk [vmem:[%s4555_s5 + $0xb8] sm:$0xff] %vm1125_vm1, %v2303_v22 }
 0x318   : > { %2336 = vst.msk [vmem:[%s4555_s5 + $0xc0] sm:$0xff] %vm1125_vm1, %v2304_v39 }
 0x319   : > { %2337 = vst.msk [vmem:[%s4555_s5 + $0xc8] sm:$0xff] %vm1125_vm1, %v2305_v6 }
 0x31a   : > { %2338 = vst.msk [vmem:[%s4555_s5 + $0xd0] sm:$0xff] %vm1125_vm1, %v2306_v59 }
 0x31b   : > { %2339 = vst.msk [vmem:[%s4555_s5 + $0xd8] sm:$0xff] %vm1125_vm1, %v2307_v25 }
 0x31c   : > { %2340 = vst.msk [vmem:[%s4555_s5 + $0xe0] sm:$0xff] %vm1125_vm1, %v2308_v52 }
 0x31d   : > { %2341 = vst.msk [vmem:[%s4555_s5 + $0xe8] sm:$0xff] %vm1125_vm1, %v2309_v17 }
 0x31e   : > { %2342 = vst.msk [vmem:[%s4555_s5 + $0xf0] sm:$0xff] %vm1125_vm1, %v2310_v10 }
 0x31f   : > { %2343 = vst.msk [vmem:[%s4555_s5 + $0xf8] sm:$0xff] %vm1125_vm1, %v2311_v3 }
 0x320 PF: > { %s19_s23 = sadd.s32 1, %s2698_s23   ;;  %s4679_s18 = smov %s2682_s19 }
 0x321   : > { %p16_p1 = scmp.ge.s32.totalorder %s19_s23, 4   ;;  %s4680_s19 = smov %s2686_s20 }
 0x322   : > { %s4681_s20 = smov %s2782_s30  ;;  %s4682_s21 = smov %s2694_s22 }
 0x323   : > { %s4683_s22 = smov %s4685_s25  ;;  %18 = sbr.rel (!%p16_p1) target bundleno = 4 (0x4), region = 88 }
 0x328   :  { %2361 = vsyncpa [#allocation5], 1 }
 0x329   :  { %2363 = vsyncpa [#allocation5 + $0x1], 1 }

// kernel: mlp1d_forward.3
= control target key start
LH: loop header
LB: loop body
LE: loop exit
PB: predicated region body
PF: predicated region fallthrough
CT: control target
= control target key end

     0   :  { %10 = vsyncpa [#allocation3], 0  ;;  %s4067_s0 = inlined_call_operand.hbm [shape: f32[2,128,512], index: 0, kind: input, shape index: {}]   ;;  %s4068_s1 = inlined_call_operand.vmem [shape: bf16[256,128], index: 1, kind: input, shape index: {}]   ;;  %s4069_s2 = inlined_call_operand.vmem [shape: bf16[128,256], index: 2, kind: input, shape index: {}]   ;;  %s4070_s3 = inlined_call_operand.vmem [shape: f32[256,1], index: 3, kind: input, shape index: {}]   ;;  %s4071_s4 = inlined_call_operand.vmem [shape: f32[256,1], index: 4, kind: input, shape index: {}]   ;;  %s4072_s5 = inlined_call_operand.hbm [shape: f32[2,128,512], index: 5, kind: output, shape index: {}]  }
   0x1   :  { %12 = vsyncpa [#allocation3 + $0x1], 0 }
   0x2   :  { %13 = vsyncpa [#allocation4], 0 }
   0x3   :  { %15 = vsyncpa [#allocation4 + $0x1], 0  ;;  %s2730_s18 = smov 0   ;;  %s2732_s19 = smov 0  }
   0x4   :  { %s2734_s20 = smov 0   ;;  %s2736_s21 = smov 0  }
   0x5   :  { %s2738_s22 = smov 0   ;;  %s2740_s23 = smov 0  }
   0x6 LB: > { %s2334_s24 = sadd.s32 4294967295, %s2693_s23   ;;  %s2335_s25 = sadd.s32 4294967294, %s2693_s23   ;;  %s2693_s23 = sphi %s2740_s23, %s21_s23   ;;  %s2689_s22 = sphi %s2738_s22, %s4234_s22   ;;  %s2685_s21 = sphi %s2736_s21, %s4233_s21   ;;  %s2681_s20 = sphi %s2734_s20, %s4232_s20   ;;  %s2677_s19 = sphi %s2732_s19, %s4231_s19   ;;  %s2673_s18 = sphi %s2730_s18, %s4230_s18  }
   0x7   : > { %s33_s26 = sadd.s32 1, %s2689_s22  ;;  %s42_s27 = sadd.s32 1, %s2681_s20 }
   0x8   : > { %p35_p0 = scmp.ge.s32.totalorder %s33_s26, 2  ;;  %p49_p1 = scmp.ne.s32.totalorder %s2681_s20, %s2677_s19 }
   0x9   : > { %p50_p2 = scmp.eq.s32.totalorder %s2693_s23, 0  ;;  %p55_p3 = scmp.ne.s32.totalorder %s2677_s19, %s2673_s18 }
   0xa   : > { %s4236_s26 = smov (%p35_p0, %s33_s26), 0  ;;  %p56_p5 = scmp.eq.s32.totalorder %s2334_s24, 0 }
   0xb   : > { %p2771_p4 = por %p50_p2, %p49_p1  ;;  %s37_s29 = ssub.s32 %s2689_s22, %s4236_s26 }
   0xc   : > { %p165_p6 = scmp.eq.s32.totalorder %s2334_s24, 1  ;;  %p40_p7 = scmp.eq.s32.totalorder %s37_s29, 0 }
   0xd   : > { %p2777_p8 = por %p56_p5, %p55_p3  ;;  %p171_p10 = scmp.eq.s32.totalorder %s2335_s25, 1 }
   0xe   : > { %p2781_p9 = por %p165_p6, %p49_p1  ;;  %p2337_p12 = scmp.ge.s32.totalorder %s2693_s23, 2 }
   0xf   : > { %s2786_s7 = scalar_select %p40_p7, %s2681_s20, %s42_s27  }
  0x10   : > { %p2788_p11 = por %p171_p10, %p55_p3  ;;  %p2523_p13 = scmp.lt.s32.totalorder %s2693_s23, 2 }
  0x11   : > { %s203_s9 = sand.u32 1, %s2681_s20   ;;  %s2477_s11 = sshll.u32 %s2689_s22, 9 }
  0x12   : > { %s2338_s10 = sshll.u32 %s203_s9, 9  ;;  %s214_s14 = scalar_lea.hbm %s4067_s0, %s2477_s11 }
  0x13   : > { %s207_s15 = scalar_lea.vmem [#allocation2], %s2338_s10  ;;  %s215_s17 = sshll.u32 %s214_s14, 4  ;;  %s216_s17 = int_to_ptr.hbm [resolvable:$true] %s215_s17 }
  0x14   : > { %s217_s16 = sshll.u32 %s207_s15, 4  ;;  %p2516_p0 = pnand %p2523_p13, %p2771_p4  ;;  %s218_s16 = int_to_ptr.vmem [resolvable:$true] %s217_s16 }
  0x15   : > { %p2341_p1 = scmp.ge.s32.totalorder %s2693_s23, 1  ;;  %s204_s24 = scalar_lea.sflag [#allocation3], %s203_s9 }
  0x16   : > { %s2695_s25 = smov 512   ;;  %s2696_s27 = smov 32  }
  0x17   : > { %2518 = dma.hbm_to_vmem [thread:$0]  (!%p2516_p0), %s216_s17, 8192, %s218_s16, %s204_s24, %s2695_s25, %s2695_s25, %s2696_s27  }
  0x18   : > { %p225_p2 = scmp.lt.s32.totalorder %s2693_s23, 3 }
  0x1a   : > { %p226_p3 = pnand %p2341_p1, %p225_p2 }
  0x1c   : > { %229 = sbr.rel (%p226_p3) target bundleno = 873 (0x369), region = 40 }
  0x21   : > { %s2804_s29 = sand.u32 1, %s2677_s19  }
  0x22   : > { %s2342_s10 = sshll.u32 %s2804_s29, 9  ;;  %s232_s11 = scalar_lea.sflag [#allocation3], %s2804_s29 }
  0x23   : > { %s2810_s28 = scalar_lea.vmem [#allocation2], %s2342_s10 }
  0x24   : > { %2664 = dma.done.wait (%p2777_p8), %s232_s11, 8192  }
  0x25   : > { %2666 = vsyncadd (%p2777_p8), %s232_s11, 4294959104  ;;  %v2697_v0 = vmov 0   ;;  %v1179_v1 = vld [vmem:[%s4071_s4 + $0x70] sm:$0xff]  ;;  %v321_v4 = vld [vmem:[%s2810_s28 + $0x1c0] sm:$0xff]  ;;  %s3937_s15 = scalar_lea.vmem [#allocation5], %s2342_s10  ;;  %s2510_s10 = sshll.u32 %s2685_s21, 9 }
  0x26   : > { %2580 = vset.pattern.permute.xlu2 %v2697_v0  ;;  %2579 = vset.pattern.permute.xlu1 %v2697_v0  ;;  %v875_v2 = vld [vmem:[%s4070_s3 + $0xf0] sm:$0xff]  ;;  %v325_v5 = vld [vmem:[%s2810_s28 + $0x1e0] sm:$0xff]  ;;  %v322_v6 = vld [vmem:[%s2810_s28 + $0x1c8] sm:$0xff]  ;;  %s2243_s17 = scalar_lea.hbm %s4072_s5, %s2510_s10  ;;  %s2244_s24 = sshll.u32 %s3937_s15, 4  ;;  %s2245_s24 = int_to_ptr.vmem [resolvable:$true] %s2244_s24 }
  0x27   : > { %2578 = vset.pattern.permute.xlu0 %v2697_v0  ;;  %v859_v3 = vld [vmem:[%s4070_s3 + $0x70] sm:$0xff]  ;;  %1269 = vperm.xlu2 %2580, %v1179_v1   ;;  %v357_v7 = vpack.c.bf16 %v325_v5, %v321_v4  ;;  %v326_v8 = vld [vmem:[%s2810_s28 + $0x1e8] sm:$0xff]  ;;  %v324_v13 = vld [vmem:[%s2810_s28 + $0x1d8] sm:$0xff]  ;;  %s2246_s25 = sshll.u32 %s2243_s17, 4  ;;  %s2230_s21 = scalar_lea.sflag [#allocation4], %s2804_s29  ;;  %s2247_s25 = int_to_ptr.hbm [resolvable:$true] %s2246_s25 }
  0x28   : > { %1029 = vperm.xlu1 %2579, %v875_v2   ;;  %949 = vperm.xlu0 %2578, %v859_v3   ;;  %v323_v9 = vld [vmem:[%s2810_s28 + $0x1d0] sm:$0xff]  ;;  %v358_v11 = vpack.c.bf16 %v326_v8, %v322_v6  ;;  %v328_v14 = vld [vmem:[%s2810_s28 + $0x1f8] sm:$0xff]  ;;  %v313_v15 = vld [vmem:[%s2810_s28 + $0x180] sm:$0xff]  ;;  %s2625_s27 = sshra.s32 %s2247_s25, 4  ;;  %s2631_s13 = scalar_lea.hbm %s4072_s5, 1024  ;;  %s2626_s27 = int_to_ptr.hbm [resolvable:$true] %s2625_s27 }
  0x29   : > { %v327_v10 = vld [vmem:[%s2810_s28 + $0x1f0] sm:$0xff]  ;;  %489 = vmatpush.bf16.msra.mxu0 %v357_v7  ;;  %v360_v16 = vpack.c.bf16 %v328_v14, %v324_v13  ;;  %v317_v17 = vld [vmem:[%s2810_s28 + $0x1a0] sm:$0xff]  ;;  %v314_v18 = vld [vmem:[%s2810_s28 + $0x188] sm:$0xff]  ;;  %s2627_s11 = scalar_lea.hbm %s2626_s27, 512  ;;  %p2632_p7 = scmp.lt.s32.totalorder %s2626_s27, %s4072_s5 }
  0x2a   : > { %v359_v12 = vpack.c.bf16 %v327_v10, %v323_v9  ;;  %v318_v19 = vld [vmem:[%s2810_s28 + $0x1a8] sm:$0xff]  ;;  %578 = vmatpush.bf16.msra.mxu1 %v358_v11  ;;  %v353_v20 = vpack.c.bf16 %v317_v17, %v313_v15  ;;  %v315_v22 = vld [vmem:[%s2810_s28 + $0x190] sm:$0xff]  ;;  %v316_v24 = vld [vmem:[%s2810_s28 + $0x198] sm:$0xff]  ;;  %p2628_p4 = scmp.ne.s32.totalorder %s2626_s27, %s2627_s11  ;;  %p2633_p8 = scmp.lt.s32.totalorder %s2631_s13, %s2627_s11 }
  0x2b   : > { %v354_v21 = vpack.c.bf16 %v318_v19, %v314_v18  ;;  %v319_v23 = vld [vmem:[%s2810_s28 + $0x1b0] sm:$0xff]  ;;  %756 = vmatpush.bf16.msra.mxu3 %v360_v16  ;;  %v320_v26 = vld [vmem:[%s2810_s28 + $0x1b8] sm:$0xff]  ;;  %v305_v31 = vld [vmem:[%s2810_s28 + $0x140] sm:$0xff] }
  0x2c   : > { %667 = vmatpush.bf16.msra.mxu2 %v359_v12  ;;  %v355_v25 = vpack.c.bf16 %v319_v23, %v315_v22  ;;  %v1180_v27 = vld [vmem:[%s4071_s4 + $0x78] sm:$0xff]  ;;  %v356_v29 = vpack.c.bf16 %v320_v26, %v316_v24  ;;  %v309_v32 = vld [vmem:[%s2810_s28 + $0x160] sm:$0xff]  ;;  %v306_v34 = vld [vmem:[%s2810_s28 + $0x148] sm:$0xff]  ;;  %p2629_p5 = pnand %p2628_p4, %p2781_p9  ;;  %p2634_p10 = por %p2633_p8, %p2632_p7 }
  0x2d   : > { %v876_v28 = vld [vmem:[%s4070_s3 + $0xf8] sm:$0xff]  ;;  %490 = vmatpush.bf16.msra.mxu0 %v353_v20  ;;  %v349_v33 = vpack.c.bf16 %v309_v32, %v305_v31  ;;  %v310_v35 = vld [vmem:[%s2810_s28 + $0x168] sm:$0xff]  ;;  %v307_v36 = vld [vmem:[%s2810_s28 + $0x150] sm:$0xff] }
  0x2e   : > { %v860_v30 = vld [vmem:[%s4070_s3 + $0x78] sm:$0xff]  ;;  %579 = vmatpush.bf16.msra.mxu1 %v354_v21  ;;  %v350_v37 = vpack.c.bf16 %v310_v35, %v306_v34  ;;  %v311_v38 = vld [vmem:[%s2810_s28 + $0x170] sm:$0xff]  ;;  %v297_v43 = vld [vmem:[%s2810_s28 + $0x100] sm:$0xff]  ;;  %p2630_p6 = pneg %p2629_p5 }
  0x2f   : > { %v308_v39 = vld [vmem:[%s2810_s28 + $0x158] sm:$0xff]  ;;  %757 = vmatpush.bf16.msra.mxu3 %v356_v29  ;;  %1274 = vperm.xlu2 %2580, %v1180_v27   ;;  %v351_v41 = vpack.c.bf16 %v311_v38, %v307_v36  ;;  %v301_v44 = vld [vmem:[%s2810_s28 + $0x120] sm:$0xff]  ;;  %v298_v45 = vld [vmem:[%s2810_s28 + $0x108] sm:$0xff] }
  0x30   : > { %668 = vmatpush.bf16.msra.mxu2 %v355_v25  ;;  %v312_v40 = vld [vmem:[%s2810_s28 + $0x178] sm:$0xff]  ;;  %1034 = vperm.xlu1 %2579, %v876_v28   ;;  %v302_v46 = vld [vmem:[%s2810_s28 + $0x128] sm:$0xff]  ;;  %v299_v47 = vld [vmem:[%s2810_s28 + $0x110] sm:$0xff]  ;;  %v345_v49 = vpack.c.bf16 %v301_v44, %v297_v43  ;;  %p2635_p13 = pnand %p2634_p10, %p2630_p6 }
  0x31   : > { %v352_v42 = vpack.c.bf16 %v312_v40, %v308_v39  ;;  %954 = vperm.xlu0 %2578, %v860_v30   ;;  %v303_v48 = vld [vmem:[%s2810_s28 + $0x130] sm:$0xff]  ;;  %491 = vmatpush.bf16.msra.mxu0 %v349_v33  ;;  %v300_v50 = vld [vmem:[%s2810_s28 + $0x118] sm:$0xff]  ;;  %v346_v52 = vpack.c.bf16 %v302_v46, %v298_v45  ;;  %v857_v54 = vld [vmem:[%s4070_s3 + $0x60] sm:$0xff] }
  0x32   : > { %v304_v51 = vld [vmem:[%s2810_s28 + $0x138] sm:$0xff]  ;;  %580 = vmatpush.bf16.msra.mxu1 %v350_v37  ;;  %v347_v53 = vpack.c.bf16 %v303_v48, %v299_v47  ;;  %v289_v55 = vld [vmem:[%s2810_s28 + $0xc0] sm:$0xff]  ;;  %v290_v58 = vld [vmem:[%s2810_s28 + $0xc8] sm:$0xff] }
  0x33   : > { %758 = vmatpush.bf16.msra.mxu3 %v352_v42  ;;  %v348_v56 = vpack.c.bf16 %v304_v51, %v300_v50  ;;  %v293_v57 = vld [vmem:[%s2810_s28 + $0xe0] sm:$0xff]  ;;  %v294_v59 = vld [vmem:[%s2810_s28 + $0xe8] sm:$0xff]  ;;  %v291_v60 = vld [vmem:[%s2810_s28 + $0xd0] sm:$0xff] }
  0x34   : > { %669 = vmatpush.bf16.msra.mxu2 %v351_v41  ;;  %v295_v61 = vld [vmem:[%s2810_s28 + $0xf0] sm:$0xff]  ;;  %v292_v62 = vld [vmem:[%s2810_s28 + $0xd8] sm:$0xff]  ;;  %v341_v1 = vpack.c.bf16 %v293_v57, %v289_v55  ;;  %v342_v3 = vpack.c.bf16 %v294_v59, %v290_v58  ;;  %v281_v5 = vld [vmem:[%s2810_s28 + $0x80] sm:$0xff] }
  0x35   : > { %492 = vmatpush.bf16.msra.mxu0 %v345_v49  ;;  %v1196_v63 = vld [vmem:[%s4071_s4 + $0xf8] sm:$0xff]  ;;  %v1195_v0 = vld [vmem:[%s4071_s4 + $0xf0] sm:$0xff]  ;;  %v343_v4 = vpack.c.bf16 %v295_v61, %v291_v60  ;;  %v285_v6 = vld [vmem:[%s2810_s28 + $0xa0] sm:$0xff] }
  0x36   : > { %v296_v2 = vld [vmem:[%s2810_s28 + $0xf8] sm:$0xff]  ;;  %581 = vmatpush.bf16.msra.mxu1 %v346_v52  ;;  %v282_v7 = vld [vmem:[%s2810_s28 + $0x88] sm:$0xff]  ;;  %v283_v10 = vld [vmem:[%s2810_s28 + $0x90] sm:$0xff]  ;;  %v337_v14 = vpack.c.bf16 %v285_v6, %v281_v5 }
  0x37   : > { %759 = vmatpush.bf16.msra.mxu3 %v348_v56  ;;  %939 = vperm.xlu2 %2580, %v857_v54   ;;  %v344_v8 = vpack.c.bf16 %v296_v2, %v292_v62  ;;  %v286_v9 = vld [vmem:[%s2810_s28 + $0xa8] sm:$0xff]  ;;  %v287_v11 = vld [vmem:[%s2810_s28 + $0xb0] sm:$0xff]  ;;  %v284_v12 = vld [vmem:[%s2810_s28 + $0x98] sm:$0xff] }
  0x38   : > { %670 = vmatpush.bf16.msra.mxu2 %v347_v53  ;;  %1354 = vperm.xlu1 %2579, %v1196_v63   ;;  %v288_v13 = vld [vmem:[%s2810_s28 + $0xb8] sm:$0xff]  ;;  %v338_v15 = vpack.c.bf16 %v286_v9, %v282_v7  ;;  %v339_v16 = vpack.c.bf16 %v287_v11, %v283_v10  ;;  %v273_v17 = vld [vmem:[%s2810_s28 + $0x40] sm:$0xff]  ;;  %v274_v19 = vld [vmem:[%s2810_s28 + $0x48] sm:$0xff] }
  0x39   : > { %1349 = vperm.xlu0 %2578, %v1195_v0   ;;  %493 = vmatpush.bf16.msra.mxu0 %v341_v1  ;;  %v277_v18 = vld [vmem:[%s2810_s28 + $0x60] sm:$0xff]  ;;  %v340_v20 = vpack.c.bf16 %v288_v13, %v284_v12  ;;  %v278_v21 = vld [vmem:[%s2810_s28 + $0x68] sm:$0xff]  ;;  %v275_v22 = vld [vmem:[%s2810_s28 + $0x50] sm:$0xff] }
  0x3a   : > { %582 = vmatpush.bf16.msra.mxu1 %v342_v3  ;;  %v279_v23 = vld [vmem:[%s2810_s28 + $0x70] sm:$0xff]  ;;  %v874_v24 = vld [vmem:[%s4070_s3 + $0xe8] sm:$0xff]  ;;  %v276_v25 = vld [vmem:[%s2810_s28 + $0x58] sm:$0xff]  ;;  %v333_v29 = vpack.c.bf16 %v277_v18, %v273_v17  ;;  %v334_v30 = vpack.c.bf16 %v278_v21, %v274_v19 }
  0x3b   : > { %760 = vmatpush.bf16.msra.mxu3 %v344_v8  ;;  %v280_v26 = vld [vmem:[%s2810_s28 + $0x78] sm:$0xff]  ;;  %v873_v27 = vld [vmem:[%s4070_s3 + $0xe0] sm:$0xff]  ;;  %v858_v28 = vld [vmem:[%s4070_s3 + $0x68] sm:$0xff]  ;;  %v335_v31 = vpack.c.bf16 %v279_v23, %v275_v22 }
  0x3c   : > { %671 = vmatpush.bf16.msra.mxu2 %v343_v4  ;;  %v265_v32 = vld [vmem:[%s2810_s28] sm:$0xff]  ;;  %v266_v34 = vld [vmem:[%s2810_s28 + $0x8] sm:$0xff]  ;;  %v336_v35 = vpack.c.bf16 %v280_v26, %v276_v25  ;;  %v267_v37 = vld [vmem:[%s2810_s28 + $0x10] sm:$0xff] }
  0x3d   : > { %494 = vmatpush.bf16.msra.mxu0 %v337_v14  ;;  %v269_v33 = vld [vmem:[%s2810_s28 + $0x20] sm:$0xff]  ;;  %v270_v36 = vld [vmem:[%s2810_s28 + $0x28] sm:$0xff]  ;;  %v271_v38 = vld [vmem:[%s2810_s28 + $0x30] sm:$0xff] }
  0x3e   : > { %583 = vmatpush.bf16.msra.mxu1 %v338_v15  ;;  %v268_v39 = vld [vmem:[%s2810_s28 + $0x18] sm:$0xff]  ;;  %v329_v41 = vpack.c.bf16 %v269_v33, %v265_v32  ;;  %v330_v42 = vpack.c.bf16 %v270_v36, %v266_v34  ;;  %v331_v43 = vpack.c.bf16 %v271_v38, %v267_v37  ;;  %v1193_v45 = vld [vmem:[%s4071_s4 + $0xe0] sm:$0xff]  ;;  %v1178_v46 = vld [vmem:[%s4071_s4 + $0x68] sm:$0xff] }
  0x3f   : > { %761 = vmatpush.bf16.msra.mxu3 %v340_v20  ;;  %1024 = vperm.xlu2 %2580, %v874_v24   ;;  %v272_v40 = vld [vmem:[%s2810_s28 + $0x38] sm:$0xff]  ;;  %v1177_v47 = vld [vmem:[%s4071_s4 + $0x60] sm:$0xff]  ;;  %v1194_v50 = vld [vmem:[%s4071_s4 + $0xe8] sm:$0xff] }
  0x40   : > { %672 = vmatpush.bf16.msra.mxu2 %v339_v16  ;;  %1019 = vperm.xlu1 %2579, %v873_v27   ;;  %v332_v44 = vpack.c.bf16 %v272_v40, %v268_v39  ;;  %v2478_v48 = vld [vmem:[%s4068_s1] sm:$0xff]  ;;  %v856_v49 = vld [vmem:[%s4070_s3 + $0x58] sm:$0xff]  ;;  %v855_v51 = vld [vmem:[%s4070_s3 + $0x50] sm:$0xff] }
  0x41   : > { %944 = vperm.xlu0 %2578, %v858_v28   ;;  %495 = vmatpush.bf16.msra.mxu0 %v333_v29  ;;  %v1175_v52 = vld [vmem:[%s4071_s4 + $0x50] sm:$0xff]  ;;  %v872_v54 = vld [vmem:[%s4070_s3 + $0xd8] sm:$0xff]  ;;  %v2479_v55 = vld [vmem:[%s4068_s1 + $0x8] sm:$0xff] }
  0x42   : > { %584 = vmatpush.bf16.msra.mxu1 %v334_v30  ;;  %v871_v53 = vld [vmem:[%s4070_s3 + $0xd0] sm:$0xff]  ;;  %v1192_v56 = vld [vmem:[%s4071_s4 + $0xd8] sm:$0xff]  ;;  %v869_v59 = vld [vmem:[%s4070_s3 + $0xc0] sm:$0xff] }
  0x43   : > { %762 = vmatpush.bf16.msra.mxu3 %v336_v35  ;;  %v1176_v57 = vld [vmem:[%s4071_s4 + $0x58] sm:$0xff]  ;;  %v1191_v58 = vld [vmem:[%s4071_s4 + $0xd0] sm:$0xff]  ;;  %v854_v60 = vld [vmem:[%s4070_s3 + $0x48] sm:$0xff] }
  0x44   : > { %673 = vmatpush.bf16.msra.mxu2 %v335_v31  ;;  %v853_v61 = vld [vmem:[%s4070_s3 + $0x40] sm:$0xff]  ;;  %v2480_v62 = vld [vmem:[%s4068_s1 + $0x10] sm:$0xff]  ;;  %v1174_v63 = vld [vmem:[%s4071_s4 + $0x48] sm:$0xff] }
  0x45   : > { %496 = vmatpush.bf16.msra.mxu0 %v329_v41  ;;  %v1173_v0 = vld [vmem:[%s4071_s4 + $0x40] sm:$0xff]  ;;  %v870_v1 = vld [vmem:[%s4070_s3 + $0xc8] sm:$0xff]  ;;  %v851_v2 = vld [vmem:[%s4070_s3 + $0x30] sm:$0xff] }
  0x46   : > { %585 = vmatpush.bf16.msra.mxu1 %v330_v42  ;;  %v1190_v3 = vld [vmem:[%s4071_s4 + $0xc8] sm:$0xff]  ;;  %v1189_v4 = vld [vmem:[%s4071_s4 + $0xc0] sm:$0xff]  ;;  %v2481_v5 = vld [vmem:[%s4068_s1 + $0x18] sm:$0xff] }
  0x47   : > { %763 = vmatpush.bf16.msra.mxu3 %v332_v44  ;;  %1339 = vperm.xlu2 %2580, %v1193_v45   ;;  %v868_v6 = vld [vmem:[%s4070_s3 + $0xb8] sm:$0xff]  ;;  %v867_v7 = vld [vmem:[%s4070_s3 + $0xb0] sm:$0xff]  ;;  %v2482_v13 = vld [vmem:[%s4068_s1 + $0x20] sm:$0xff] }
  0x48   : > { %674 = vmatpush.bf16.msra.mxu2 %v331_v43  ;;  %1264 = vperm.xlu1 %2579, %v1178_v46   ;;  %v852_v8 = vld [vmem:[%s4070_s3 + $0x38] sm:$0xff]  ;;  %v1187_v10 = vld [vmem:[%s4071_s4 + $0xb0] sm:$0xff]  ;;  %v850_v15 = vld [vmem:[%s4070_s3 + $0x28] sm:$0xff] }
  0x49   : > { %1259 = vperm.xlu0 %2578, %v1177_v47   ;;  %497 = vmatmul.bf16.vlgmr.msra.gmra.mxu0 %v2478_v48  ;;  %v1172_v11 = vld [vmem:[%s4071_s4 + $0x38] sm:$0xff]  ;;  %v1171_v12 = vld [vmem:[%s4071_s4 + $0x30] sm:$0xff]  ;;  %v849_v17 = vld [vmem:[%s4070_s3 + $0x20] sm:$0xff] }
  0x4a   : > { %586 = vmatmul.bf16.vlgmr.msra.gmra.mxu1 %v2478_v48  ;;  %764 = vmatmul.bf16.vlgmr.msra.gmra.mxu3 %v2478_v48  ;;  %v1188_v16 = vld [vmem:[%s4071_s4 + $0xb8] sm:$0xff]  ;;  %v1169_v19 = vld [vmem:[%s4071_s4 + $0x20] sm:$0xff]  ;;  %v866_v21 = vld [vmem:[%s4070_s3 + $0xa8] sm:$0xff] }
  0x4b   : > { %675 = vmatmul.bf16.vlgmr.msra.gmra.mxu2 %v2478_v48  ;;  %v865_v20 = vld [vmem:[%s4070_s3 + $0xa0] sm:$0xff]  ;;  %v2483_v22 = vld [vmem:[%s4068_s1 + $0x28] sm:$0xff]  ;;  %v863_v32 = vld [vmem:[%s4070_s3 + $0x90] sm:$0xff] }
  0x4c   : > { %v1186_v26 = vld [vmem:[%s4071_s4 + $0xa8] sm:$0xff]  ;;  %v1185_v28 = vld [vmem:[%s4071_s4 + $0xa0] sm:$0xff]  ;;  %v848_v33 = vld [vmem:[%s4070_s3 + $0x18] sm:$0xff] }
  0x4d   : > { %v1170_v27 = vld [vmem:[%s4071_s4 + $0x28] sm:$0xff]  ;;  %v847_v34 = vld [vmem:[%s4070_s3 + $0x10] sm:$0xff]  ;;  %v1168_v39 = vld [vmem:[%s4071_s4 + $0x18] sm:$0xff] }
  0x4e   : > { %v2484_v35 = vld [vmem:[%s4068_s1 + $0x30] sm:$0xff]  ;;  %v864_v41 = vld [vmem:[%s4070_s3 + $0x98] sm:$0xff]  ;;  %v845_v45 = vld [vmem:[%s4070_s3] sm:$0xff] }
  0x4f   : > { %934 = vperm.xlu2 %2580, %v856_v49   ;;  %v1167_v40 = vld [vmem:[%s4071_s4 + $0x10] sm:$0xff]  ;;  %v1184_v46 = vld [vmem:[%s4071_s4 + $0x98] sm:$0xff] }
  0x50   : > { %929 = vperm.xlu1 %2579, %v855_v51   ;;  %v1183_v47 = vld [vmem:[%s4071_s4 + $0x90] sm:$0xff]  ;;  %v2485_v48 = vld [vmem:[%s4068_s1 + $0x38] sm:$0xff] }
  0x51   : > { %1344 = vperm.xlu0 %2578, %v1194_v50  }
  0x57   : > { %1249 = vperm.xlu2 %2580, %v1175_v52   ;;  %v862_v52 = vld [vmem:[%s4070_s3 + $0x88] sm:$0xff] }
  0x58   : > { %1014 = vperm.xlu1 %2579, %v872_v54   ;;  %v846_v54 = vld [vmem:[%s4070_s3 + $0x8] sm:$0xff] }
  0x59   : > { %1009 = vperm.xlu0 %2578, %v871_v53   ;;  %502 = vmatmul.bf16.gmra.mxu0 %v2479_v55  ;;  %v861_v53 = vld [vmem:[%s4070_s3 + $0x80] sm:$0xff] }
  0x5a   : > { %591 = vmatmul.bf16.gmra.mxu1 %v2479_v55  ;;  %769 = vmatmul.bf16.gmra.mxu3 %v2479_v55 }
  0x5b   : > { %680 = vmatmul.bf16.gmra.mxu2 %v2479_v55 }
  0x5f   : > { %1334 = vperm.xlu2 %2580, %v1192_v56  }
  0x60   : > { %1329 = vperm.xlu1 %2579, %v1191_v58   ;;  %v1181_v58 = vld [vmem:[%s4071_s4 + $0x80] sm:$0xff] }
  0x61   : > { %1254 = vperm.xlu0 %2578, %v1176_v57  }
  0x67   : > { %999 = vperm.xlu2 %2580, %v869_v59   ;;  %v1166_v59 = vld [vmem:[%s4071_s4 + $0x8] sm:$0xff] }
  0x68   : > { %924 = vperm.xlu1 %2579, %v854_v60   ;;  %v1165_v60 = vld [vmem:[%s4071_s4] sm:$0xff] }
  0x69   : > { %919 = vperm.xlu0 %2578, %v853_v61   ;;  %507 = vmatmul.bf16.gmra.mxu0 %v2480_v62  ;;  %v2486_v61 = vld [vmem:[%s4068_s1 + $0x40] sm:$0xff] }
  0x6a   : > { %596 = vmatmul.bf16.gmra.mxu1 %v2480_v62  ;;  %774 = vmatmul.bf16.gmra.mxu3 %v2480_v62 }
  0x6b   : > { %685 = vmatmul.bf16.gmra.mxu2 %v2480_v62 }
  0x6f   : > { %1244 = vperm.xlu2 %2580, %v1174_v63  }
  0x70   : > { %1239 = vperm.xlu1 %2579, %v1173_v0  }
  0x71   : > { %1004 = vperm.xlu0 %2578, %v870_v1  }
  0x77   : > { %909 = vperm.xlu2 %2580, %v851_v2  }
  0x78   : > { %1324 = vperm.xlu1 %2579, %v1190_v3  }
  0x79   : > { %1319 = vperm.xlu0 %2578, %v1189_v4   ;;  %512 = vmatmul.bf16.gmra.mxu0 %v2481_v5 }
  0x7a   : > { %601 = vmatmul.bf16.gmra.mxu1 %v2481_v5  ;;  %779 = vmatmul.bf16.gmra.mxu3 %v2481_v5 }
  0x7b   : > { %690 = vmatmul.bf16.gmra.mxu2 %v2481_v5  ;;  %v1182_v5 = vld [vmem:[%s4071_s4 + $0x88] sm:$0xff] }
  0x7f   : > { %994 = vperm.xlu2 %2580, %v868_v6  }
  0x80   : > { %989 = vperm.xlu1 %2579, %v867_v7  }
  0x81   : > { %914 = vperm.xlu0 %2578, %v852_v8   ;;  %v3000_v9 = vpop.permute.xlu2 %1269 }
  0x87   : > { %1309 = vperm.xlu2 %2580, %v1187_v10  }
  0x88   : > { %1234 = vperm.xlu1 %2579, %v1172_v11  }
  0x89   : > { %1229 = vperm.xlu0 %2578, %v1171_v12   ;;  %517 = vmatmul.bf16.gmra.mxu0 %v2482_v13  ;;  %v3014_v14 = vpop.permute.xlu2 %1274 }
  0x8a   : > { %606 = vmatmul.bf16.gmra.mxu1 %v2482_v13  ;;  %784 = vmatmul.bf16.gmra.mxu3 %v2482_v13 }
  0x8b   : > { %695 = vmatmul.bf16.gmra.mxu2 %v2482_v13 }
  0x8f   : > { %904 = vperm.xlu2 %2580, %v850_v15   ;;  %v2487_v15 = vld [vmem:[%s4068_s1 + $0x48] sm:$0xff] }
  0x90   : > { %899 = vperm.xlu1 %2579, %v849_v17  }
  0x91   : > { %1314 = vperm.xlu0 %2578, %v1188_v16   ;;  %v3025_v18 = vpop.permute.xlu2 %939 }
  0x97   : > { %1219 = vperm.xlu2 %2580, %v1169_v19  }
  0x98   : > { %984 = vperm.xlu1 %2579, %v866_v21  }
  0x99   : > { %979 = vperm.xlu0 %2578, %v865_v20   ;;  %522 = vmatmul.bf16.gmra.mxu0 %v2483_v22  ;;  %v3043_v25 = vpop.permute.xlu2 %1024 }
  0x9a   : > { %v3039_v23 = vpop.permute.xlu1 %1029  ;;  %611 = vmatmul.bf16.gmra.mxu1 %v2483_v22  ;;  %v3041_v24 = vpop.permute.xlu0 %949  ;;  %4111 = vst [vmem:[#allocation9_spill] sm:$0xff] %v3043_v25  ;;  %789 = vmatmul.bf16.gmra.mxu3 %v2483_v22 }
  0x9b   : > { %4110 = vst [vmem:[#allocation8_spill] sm:$0xff] %v3039_v23  ;;  %700 = vmatmul.bf16.gmra.mxu2 %v2483_v22 }
  0x9f   : > { %1304 = vperm.xlu2 %2580, %v1186_v26  }
  0xa0   : > { %1299 = vperm.xlu1 %2579, %v1185_v28  }
  0xa1   : > { %1224 = vperm.xlu0 %2578, %v1170_v27   ;;  %v3054_v29 = vpop.permute.xlu2 %1339 }
  0xa2   : > { %4112 = vst [vmem:[#allocation10_spill] sm:$0xff] %v3054_v29  ;;  %v3056_v30 = vpop.permute.xlu1 %1034 }
  0xa3   : > { %4113 = vst [vmem:[#allocation11_spill] sm:$0xff] %v3056_v30  ;;  %v3058_v31 = vpop.permute.xlu0 %954 }
  0xa7   : > { %969 = vperm.xlu2 %2580, %v863_v32  }
  0xa8   : > { %894 = vperm.xlu1 %2579, %v848_v33  }
  0xa9   : > { %889 = vperm.xlu0 %2578, %v847_v34   ;;  %527 = vmatmul.bf16.gmra.mxu0 %v2484_v35  ;;  %v3072_v36 = vpop.permute.xlu2 %934 }
  0xaa   : > { %616 = vmatmul.bf16.gmra.mxu1 %v2484_v35  ;;  %794 = vmatmul.bf16.gmra.mxu3 %v2484_v35  ;;  %v3074_v37 = vpop.permute.xlu1 %1354 }
  0xab   : > { %705 = vmatmul.bf16.gmra.mxu2 %v2484_v35  ;;  %4114 = vst [vmem:[#allocation12_spill] sm:$0xff] %v3074_v37  ;;  %v3076_v38 = vpop.permute.xlu0 %1349 }
  0xac   : > { %4115 = vst [vmem:[#allocation13_spill] sm:$0xff] %v3076_v38 }
  0xaf   : > { %1214 = vperm.xlu2 %2580, %v1168_v39   ;;  %v2488_v39 = vld [vmem:[%s4068_s1 + $0x50] sm:$0xff] }
  0xb0   : > { %1209 = vperm.xlu1 %2579, %v1167_v40  }
  0xb1   : > { %974 = vperm.xlu0 %2578, %v864_v41   ;;  %v3087_v42 = vpop.permute.xlu2 %1249 }
  0xb2   : > { %v3089_v43 = vpop.permute.xlu1 %1019 }
  0xb3   : > { %4116 = vst [vmem:[#allocation14_spill] sm:$0xff] %v3089_v43  ;;  %v3091_v44 = vpop.permute.xlu0 %944 }
  0xb7   : > { %879 = vperm.xlu2 %2580, %v845_v45  }
  0xb8   : > { %1294 = vperm.xlu1 %2579, %v1184_v46  }
  0xb9   : > { %1289 = vperm.xlu0 %2578, %v1183_v47   ;;  %532 = vmatmul.bf16.gmra.mxu0 %v2485_v48  ;;  %v3105_v49 = vpop.permute.xlu2 %1334 }
  0xba   : > { %621 = vmatmul.bf16.gmra.mxu1 %v2485_v48  ;;  %4117 = vst [vmem:[#allocation15_spill] sm:$0xff] %v3105_v49  ;;  %799 = vmatmul.bf16.gmra.mxu3 %v2485_v48  ;;  %v3107_v50 = vpop.permute.xlu1 %1264 }
  0xbb   : > { %710 = vmatmul.bf16.gmra.mxu2 %v2485_v48  ;;  %v3109_v51 = vpop.permute.xlu0 %1259 }
  0xbf   : > { %964 = vperm.xlu2 %2580, %v862_v52  }
  0xc0   : > { %959 = vperm.xlu1 %2579, %v861_v53  }
  0xc1   : > { %884 = vperm.xlu0 %2578, %v846_v54   ;;  %v3120_v55 = vpop.permute.xlu2 %999 }
  0xc2   : > { %4118 = vst [vmem:[#allocation16_spill] sm:$0xff] %v3120_v55  ;;  %v3124_v57 = vpop.permute.xlu1 %929 }
  0xc3   : > { %v3122_v56 = vpop.permute.xlu0 %1344 }
  0xc4   : > { %4119 = vst [vmem:[#allocation17_spill] sm:$0xff] %v3122_v56 }
  0xc6   : > { %v3138_v62 = vpop.f32.mrf.mxu0 }
  0xc7   : > { %v3140_v63 = vpop.f32.mrf.mxu1  ;;  %1279 = vperm.xlu2 %2580, %v1181_v58  }
  0xc8   : > { %1204 = vperm.xlu1 %2579, %v1166_v59  }
  0xc9   : > { %1199 = vperm.xlu0 %2578, %v1165_v60   ;;  %537 = vmatmul.bf16.gmra.mxu0 %v2486_v61  ;;  %v3142_v0 = vpop.permute.xlu2 %1244 }
  0xca   : > { %626 = vmatmul.bf16.gmra.mxu1 %v2486_v61  ;;  %804 = vmatmul.bf16.gmra.mxu3 %v2486_v61  ;;  %v3146_v2 = vpop.permute.xlu1 %1014 }
  0xcb   : > { %715 = vmatmul.bf16.gmra.mxu2 %v2486_v61  ;;  %v3144_v1 = vpop.permute.xlu0 %1009  ;;  %4121 = vst [vmem:[#allocation19_spill] sm:$0xff] %v3146_v2 }
  0xcc   : > { %4120 = vst [vmem:[#allocation18_spill] sm:$0xff] %v3144_v1 }
  0xcd   : > { %v3150_v4 = vpop.f32.mrf.mxu3 }
  0xce   : > { %v3148_v3 = vpop.f32.mrf.mxu2  ;;  %4123 = vst [vmem:[#allocation21_spill] sm:$0xff] %v3150_v4  ;;  %v3155_v6 = vpop.f32.mrf.mxu0 }
  0xcf   : > { %4122 = vst [vmem:[#allocation20_spill] sm:$0xff] %v3148_v3  ;;  %v3157_v7 = vpop.f32.mrf.mxu1 }
  0xd1   : > { %1284 = vperm.xlu0 %2578, %v1182_v5   ;;  %v910_v11 = vpop.permute.xlu2 %909 }
  0xd2   : > { %v3161_v10 = vpop.permute.xlu1 %1329 }
  0xd3   : > { %v3159_v8 = vpop.permute.xlu0 %1254  ;;  %4124 = vst [vmem:[#allocation22_spill] sm:$0xff] %v3161_v10 }
  0xd5   : > { %v3165_v13 = vpop.f32.mrf.mxu3 }
  0xd6   : > { %v3163_v12 = vpop.f32.mrf.mxu2  ;;  %4126 = vst [vmem:[#allocation24_spill] sm:$0xff] %v3165_v13  ;;  %v3170_v16 = vpop.f32.mrf.mxu0 }
  0xd7   : > { %4125 = vst [vmem:[#allocation23_spill] sm:$0xff] %v3163_v12  ;;  %v3172_v17 = vpop.f32.mrf.mxu1 }
  0xd9   : > { %542 = vmatmul.bf16.gmra.mxu0 %v2487_v15  ;;  %v3186_v28 = vpop.permute.xlu2 %994 }
  0xda   : > { %631 = vmatmul.bf16.gmra.mxu1 %v2487_v15  ;;  %809 = vmatmul.bf16.gmra.mxu3 %v2487_v15  ;;  %v3174_v19 = vpop.permute.xlu1 %924  ;;  %4127 = vst [vmem:[#allocation25_spill] sm:$0xff] %v3186_v28 }
  0xdb   : > { %720 = vmatmul.bf16.gmra.mxu2 %v2487_v15  ;;  %v3176_v20 = vpop.permute.xlu0 %919  ;;  %v2489_v15 = vld [vmem:[%s4068_s1 + $0x58] sm:$0xff] }
  0xdd   : > { %v3180_v22 = vpop.f32.mrf.mxu3 }
  0xde   : > { %v3178_v21 = vpop.f32.mrf.mxu2  ;;  %v3182_v26 = vpop.f32.mrf.mxu0 }
  0xdf   : > { %v3184_v27 = vpop.f32.mrf.mxu1 }
  0xe1   : > { %v3203_v45 = vpop.permute.xlu2 %1309 }
  0xe2   : > { %v3188_v32 = vpop.permute.xlu1 %1239  ;;  %4129 = vst [vmem:[#allocation27_spill] sm:$0xff] %v3203_v45 }
  0xe3   : > { %v3190_v33 = vpop.permute.xlu0 %1004 }
  0xe4   : > { %4128 = vst [vmem:[#allocation26_spill] sm:$0xff] %v3190_v33 }
  0xe5   : > { %v3194_v35 = vpop.f32.mrf.mxu3 }
  0xe6   : > { %v3192_v34 = vpop.f32.mrf.mxu2  ;;  %v3199_v40 = vpop.f32.mrf.mxu0 }
  0xe7   : > { %v3201_v41 = vpop.f32.mrf.mxu1 }
  0xe9   : > { %547 = vmatmul.bf16.gmra.mxu0 %v2488_v39  ;;  %v3215_v60 = vpop.permute.xlu2 %904 }
  0xea   : > { %636 = vmatmul.bf16.gmra.mxu1 %v2488_v39  ;;  %814 = vmatmul.bf16.gmra.mxu3 %v2488_v39  ;;  %v3205_v46 = vpop.permute.xlu1 %1324 }
  0xeb   : > { %725 = vmatmul.bf16.gmra.mxu2 %v2488_v39  ;;  %4130 = vst [vmem:[#allocation28_spill] sm:$0xff] %v3205_v46  ;;  %v3207_v47 = vpop.permute.xlu0 %1319 }
  0xec   : > { %4131 = vst [vmem:[#allocation29_spill] sm:$0xff] %v3207_v47 }
  0xed   : > { %v775_v52 = vpop.f32.mrf.mxu3 }
  0xee   : > { %v686_v48 = vpop.f32.mrf.mxu2  ;;  %v3209_v53 = vpop.f32.mrf.mxu0 }
  0xef   : > { %v3211_v54 = vpop.f32.mrf.mxu1 }
  0xf1   : > { %v3224_v37 = vpop.permute.xlu2 %1219 }
  0xf2   : > { %v3213_v58 = vpop.permute.xlu1 %989 }
  0xf3   : > { %4132 = vst [vmem:[#allocation30_spill] sm:$0xff] %v3213_v58  ;;  %v915_v59 = vpop.permute.xlu0 %914 }
  0xf5   : > { %v3219_v5 = vpop.f32.mrf.mxu3 }
  0xf6   : > { %v3217_v61 = vpop.f32.mrf.mxu2  ;;  %v513_v39 = vpop.f32.mrf.mxu0 }
  0xf7   : > { %v602_v45 = vpop.f32.mrf.mxu1  ;;  %v1061_v58 = vmul.f32 %v910_v11, %v513_v39 }
  0xf8   : > { %v1062_v55 = vmul.f32 %v910_v11, %v602_v45 }
  0xf9   : > { %552 = vmatmul.bf16.gmra.mxu0 %v2489_v15 }
  0xfa   : > { %641 = vmatmul.bf16.gmra.mxu1 %v2489_v15  ;;  %819 = vmatmul.bf16.gmra.mxu3 %v2489_v15  ;;  %v1235_v47 = vpop.permute.xlu1 %1234 }
  0xfb   : > { %730 = vmatmul.bf16.gmra.mxu2 %v2489_v15  ;;  %v1230_v46 = vpop.permute.xlu0 %1229 }
  0xfc   : > { %v1381_v43 = vadd.f32 %v1230_v46, %v1061_v58  ;;  %v1382_v15 = vadd.f32 %v1230_v46, %v1062_v55 }
  0xfd   : > { %v780_v10 = vpop.f32.mrf.mxu3 }
  0xfe   : > { %v691_v28 = vpop.f32.mrf.mxu2  ;;  %v1064_v33 = vmul.f32 %v910_v11, %v780_v10  ;;  %v515_v29 = vpop.f32.mrf.mxu0  ;;  %v1510_v12 = vmax.f32 %v1382_v15, 0.0 }
  0xff   : > { %v1063_v49 = vmul.f32 %v910_v11, %v691_v28  ;;  %v604_v1 = vpop.f32.mrf.mxu1  ;;  %v1065_v56 = vmul.f32 %v915_v59, %v515_v29  ;;  %v1509_v11 = vmax.f32 %v1381_v43, 0.0  ;;  %v3249_v15 = vpop.permute.xlu2 %1304 }
 0x100   : > { %v1066_v2 = vmul.f32 %v915_v59, %v604_v1  ;;  %v3228_v38 = vadd.f32 %v1230_v46, %v1064_v33  ;;  %v2490_v33 = vld [vmem:[%s4068_s1 + $0x60] sm:$0xff]  ;;  %4135 = vst [vmem:[#allocation33_spill] sm:$0xff] %v3249_v15 }
 0x101   : > { %v3226_v30 = vadd.f32 %v1230_v46, %v1063_v49  ;;  %v1385_v25 = vadd.f32 %v1235_v47, %v1065_v56 }
 0x102   : > { %v1386_v23 = vadd.f32 %v1235_v47, %v1066_v2  ;;  %v900_v13 = vpop.permute.xlu1 %899 }
 0x103   : > { %v3230_v39 = vpop.permute.xlu0 %1314  ;;  %v3232_v45 = vmul.f32 %v900_v13, %v686_v48  ;;  %v3234_v10 = vmul.f32 %v900_v13, %v775_v52  ;;  %v1513_v28 = vmax.f32 %v1385_v25, 0.0 }
 0x104   : > { %4133 = vst [vmem:[#allocation31_spill] sm:$0xff] %v3230_v39  ;;  %v1514_v29 = vmax.f32 %v1386_v23, 0.0 }
 0x105   : > { %v782_v49 = vpop.f32.mrf.mxu3  ;;  %v3239_v58 = vpack.c.bf16 %v1513_v28, %v1509_v11 }
 0x106   : > { %v693_v1 = vpop.f32.mrf.mxu2  ;;  %v1068_v56 = vmul.f32 %v915_v59, %v782_v49  ;;  %v518_v2 = vpop.f32.mrf.mxu0  ;;  %v3241_v48 = vpack.c.bf16 %v1514_v29, %v1510_v12 }
 0x107   : > { %v1067_v55 = vmul.f32 %v915_v59, %v693_v1  ;;  %v607_v46 = vpop.f32.mrf.mxu1  ;;  %v1069_v52 = vmul.f32 %v3176_v20, %v518_v2  ;;  %v1054_v2 = vmul.f32 %v900_v13, %v3201_v41 }
 0x108   : > { %4134 = vst [vmem:[#allocation32_spill] sm:$0xff] %v3241_v48  ;;  %v1070_v25 = vmul.f32 %v3176_v20, %v607_v46  ;;  %v3247_v23 = vadd.f32 %v1235_v47, %v1068_v56  ;;  %v1053_v56 = vmul.f32 %v900_v13, %v3199_v40  ;;  %v1058_v13 = vmul.f32 %v3215_v60, %v3211_v54  ;;  %v2491_v54 = vld [vmem:[%s4068_s1 + $0x68] sm:$0xff] }
 0x109   : > { %v3245_v43 = vadd.f32 %v1235_v47, %v1067_v55  ;;  %v1389_v39 = vadd.f32 %v3188_v32, %v1069_v52  ;;  %557 = vmatmul.bf16.gmra.mxu0 %v2490_v33 }
 0x10a   : > { %v1390_v59 = vadd.f32 %v3188_v32, %v1070_v25  ;;  %646 = vmatmul.bf16.gmra.mxu1 %v2490_v33  ;;  %824 = vmatmul.bf16.gmra.mxu3 %v2490_v33  ;;  %v3255_v11 = vpop.permute.xlu1 %984 }
 0x10b   : > { %735 = vmatmul.bf16.gmra.mxu2 %v2490_v33  ;;  %v3253_v12 = vpop.permute.xlu0 %979  ;;  %4137 = vst [vmem:[#allocation35_spill] sm:$0xff] %v3255_v11 }
 0x10c   : > { %4136 = vst [vmem:[#allocation34_spill] sm:$0xff] %v3253_v12 }
 0x10d   : > { %v785_v29 = vpop.f32.mrf.mxu3 }
 0x10e   : > { %v696_v28 = vpop.f32.mrf.mxu2  ;;  %v1072_v47 = vmul.f32 %v3176_v20, %v785_v29  ;;  %v520_v49 = vpop.f32.mrf.mxu0  ;;  %v1057_v29 = vmul.f32 %v3215_v60, %v3209_v53 }
 0x10f   : > { %v1071_v1 = vmul.f32 %v3176_v20, %v696_v28  ;;  %v609_v55 = vpop.f32.mrf.mxu1  ;;  %v1073_v46 = vmul.f32 %v3174_v19, %v520_v49  ;;  %v1517_v49 = vmax.f32 %v1389_v39, 0.0 }
 0x110   : > { %v1074_v33 = vmul.f32 %v3174_v19, %v609_v55  ;;  %v3267_v25 = vadd.f32 %v3188_v32, %v1072_v47  ;;  %v1518_v55 = vmax.f32 %v1390_v59, 0.0  ;;  %v3279_v47 = vpop.permute.xlu2 %969 }
 0x111   : > { %v3264_v52 = vadd.f32 %v3188_v32, %v1071_v1  ;;  %v1393_v28 = vadd.f32 %v3142_v0, %v1073_v46  ;;  %v1373_v1 = vadd.f32 %v3224_v37, %v1053_v56  ;;  %v1374_v32 = vadd.f32 %v3224_v37, %v1054_v2 }
 0x112   : > { %v1394_v20 = vadd.f32 %v3142_v0, %v1074_v33  ;;  %v3275_v41 = vpop.permute.xlu1 %1299 }
 0x113   : > { %v1225_v40 = vpop.permute.xlu0 %1224  ;;  %4138 = vst [vmem:[#allocation36_spill] sm:$0xff] %v3275_v41  ;;  %v1521_v46 = vmax.f32 %v1393_v28, 0.0  ;;  %v1502_v48 = vmax.f32 %v1374_v32, 0.0 }
 0x114   : > { %v1522_v15 = vmax.f32 %v1394_v20, 0.0  ;;  %v1377_v33 = vadd.f32 %v1225_v40, %v1057_v29  ;;  %v1378_v12 = vadd.f32 %v1225_v40, %v1058_v13  ;;  %v1501_v20 = vmax.f32 %v1373_v1, 0.0 }
 0x115   : > { %v787_v53 = vpop.f32.mrf.mxu3  ;;  %v3290_v2 = vpack.c.bf16 %v1521_v46, %v1517_v49  ;;  %v1515_v49 = vmax.f32 %v3245_v43, 0.0 }
 0x116   : > { %v698_v11 = vpop.f32.mrf.mxu2  ;;  %v1076_v39 = vmul.f32 %v3174_v19, %v787_v53  ;;  %v3286_v59 = vpop.f32.mrf.mxu0  ;;  %v3292_v28 = vpack.c.bf16 %v1522_v15, %v1518_v55  ;;  %v1505_v29 = vmax.f32 %v1377_v33, 0.0  ;;  %v1506_v13 = vmax.f32 %v1378_v12, 0.0 }
 0x117   : > { %v1075_v41 = vmul.f32 %v3174_v19, %v698_v11  ;;  %v3288_v56 = vpop.f32.mrf.mxu1  ;;  %v1059_v11 = vmul.f32 %v3215_v60, %v3217_v61  ;;  %v1511_v19 = vmax.f32 %v3226_v30, 0.0  ;;  %v1512_v15 = vmax.f32 %v3228_v38, 0.0 }
 0x118   : > { %v1396_v3 = vadd.f32 %v3142_v0, %v1076_v39  ;;  %v3299_v53 = vpack.c.bf16 %v1505_v29, %v1501_v20  ;;  %v1516_v12 = vmax.f32 %v3247_v23, 0.0  ;;  %v1060_v61 = vmul.f32 %v3215_v60, %v3219_v5 }
 0x119   : > { %v1395_v4 = vadd.f32 %v3142_v0, %v1075_v41  ;;  %562 = vmatmul.bf16.gmra.mxu0 %v2491_v54  ;;  %v3304_v0 = vpack.c.bf16 %v1506_v13, %v1502_v48  ;;  %v1519_v30 = vmax.f32 %v3264_v52, 0.0  ;;  %v1520_v55 = vmax.f32 %v3267_v25, 0.0  ;;  %v1215_v25 = vpop.permute.xlu2 %1214 }
 0x11a   : > { %651 = vmatmul.bf16.gmra.mxu1 %v2491_v54  ;;  %829 = vmatmul.bf16.gmra.mxu3 %v2491_v54  ;;  %v895_v41 = vpop.permute.xlu1 %894  ;;  %v1524_v32 = vmax.f32 %v1396_v3, 0.0  ;;  %v1379_v38 = vadd.f32 %v1225_v40, %v1059_v11  ;;  %v1375_v48 = vadd.f32 %v3224_v37, %v3232_v45  ;;  %v3322_v52 = vpack.c.bf16 %v1515_v49, %v1511_v19 }
 0x11b   : > { %740 = vmatmul.bf16.gmra.mxu2 %v2491_v54  ;;  %v1523_v1 = vmax.f32 %v1395_v4, 0.0  ;;  %v890_v46 = vpop.permute.xlu0 %889  ;;  %v1049_v43 = vmul.f32 %v895_v41, %v3182_v26  ;;  %v1050_v54 = vmul.f32 %v895_v41, %v3184_v27  ;;  %v3324_v3 = vpack.c.bf16 %v1516_v12, %v1512_v15 }
 0x11c   : > { %4139 = vst [vmem:[#allocation37_spill] sm:$0xff] %v3322_v52  ;;  %v1380_v4 = vadd.f32 %v1225_v40, %v1060_v61  ;;  %v1047_v26 = vmul.f32 %v890_v46, %v3178_v21  ;;  %v1051_v39 = vmul.f32 %v895_v41, %v3192_v34  ;;  %v3330_v29 = vpack.c.bf16 %v1524_v32, %v1520_v55 }
 0x11d   : > { %v3313_v23 = vpop.f32.mrf.mxu3  ;;  %4140 = vst [vmem:[#allocation38_spill] sm:$0xff] %v3324_v3  ;;  %v3328_v20 = vpack.c.bf16 %v1523_v1, %v1519_v30  ;;  %v1045_v27 = vmul.f32 %v890_v46, %v3170_v16  ;;  %v1369_v45 = vadd.f32 %v1215_v25, %v1049_v43  ;;  %v1503_v13 = vmax.f32 %v1375_v48, 0.0 }
 0x11e   : > { %v3311_v33 = vpop.f32.mrf.mxu2  ;;  %v3318_v60 = vpop.f32.mrf.mxu0  ;;  %4142 = vst [vmem:[#allocation40_spill] sm:$0xff] %v3330_v29  ;;  %v1507_v11 = vmax.f32 %v1379_v38, 0.0  ;;  %v1046_v19 = vmul.f32 %v890_v46, %v3172_v17  ;;  %v1048_v15 = vmul.f32 %v890_v46, %v3180_v22  ;;  %v1370_v40 = vadd.f32 %v1215_v25, %v1050_v54  ;;  %v2492_v17 = vld [vmem:[%s4068_s1 + $0x70] sm:$0xff] }
 0x11f   : > { %v3320_v5 = vpop.f32.mrf.mxu1  ;;  %4141 = vst [vmem:[#allocation39_spill] sm:$0xff] %v3328_v20  ;;  %v1376_v21 = vadd.f32 %v3224_v37, %v3234_v10  ;;  %v1508_v34 = vmax.f32 %v1380_v4, 0.0  ;;  %v1052_v16 = vmul.f32 %v895_v41, %v3194_v35  ;;  %v1497_v22 = vmax.f32 %v1369_v45, 0.0 }
 0x120   : > { %v3337_v55 = vpack.c.bf16 %v1507_v11, %v1503_v13  ;;  %v1371_v46 = vadd.f32 %v1215_v25, %v1051_v39 }
 0x121   : > { %v1504_v1 = vmax.f32 %v1376_v21, 0.0  ;;  %v1372_v39 = vadd.f32 %v1215_v25, %v1052_v16  ;;  %v2493_v25 = vld [vmem:[%s4068_s1 + $0x78] sm:$0xff] }
 0x122   : > { %v1210_v49 = vpop.permute.xlu1 %1209  ;;  %4143 = vst [vmem:[#allocation41_spill] sm:$0xff] %v3337_v55  ;;  %v1499_v35 = vmax.f32 %v1371_v46, 0.0 }
 0x123   : > { %v1367_v12 = vadd.f32 %v1210_v49, %v1047_v26  ;;  %v1365_v61 = vadd.f32 %v1210_v49, %v1045_v27  ;;  %v1366_v30 = vadd.f32 %v1210_v49, %v1046_v19  ;;  %v1368_v10 = vadd.f32 %v1210_v49, %v1048_v15 }
 0x124   : > { %v1498_v26 = vmax.f32 %v1370_v40, 0.0  ;;  %v3347_v27 = vpack.c.bf16 %v1508_v34, %v1504_v1  ;;  %v1500_v19 = vmax.f32 %v1372_v39, 0.0  ;;  %v3361_v34 = vpop.permute.xlu0 %974 }
 0x125   : > { %v3342_v38 = vpop.f32.mrf.mxu3  ;;  %v1495_v37 = vmax.f32 %v1367_v12, 0.0  ;;  %v1493_v54 = vmax.f32 %v1365_v61, 0.0  ;;  %v1494_v4 = vmax.f32 %v1366_v30, 0.0  ;;  %v1496_v45 = vmax.f32 %v1368_v10, 0.0 }
 0x126   : > { %v3340_v32 = vpop.f32.mrf.mxu2  ;;  %v528_v43 = vpop.f32.mrf.mxu0  ;;  %4144 = vst [vmem:[#allocation42_spill] sm:$0xff] %v3347_v27 }
 0x127   : > { %v617_v48 = vpop.f32.mrf.mxu1  ;;  %v3349_v41 = vpack.c.bf16 %v1497_v22, %v1493_v54  ;;  %v3351_v13 = vpack.c.bf16 %v1498_v26, %v1494_v4  ;;  %v3353_v11 = vpack.c.bf16 %v1499_v35, %v1495_v37  ;;  %v3359_v12 = vpack.c.bf16 %v1500_v19, %v1496_v45 }
 0x128   : > { %v1085_v26 = vmul.f32 %v3025_v18, %v528_v43  ;;  %v1086_v35 = vmul.f32 %v3025_v18, %v617_v48 }
 0x129   : > { %4145 = vst [vmem:[#allocation43_spill] sm:$0xff] %v3351_v13  ;;  %567 = vmatmul.bf16.gmra.mxu0 %v2492_v17 }
 0x12a   : > { %656 = vmatmul.bf16.gmra.mxu1 %v2492_v17  ;;  %4146 = vst [vmem:[#allocation44_spill] sm:$0xff] %v3353_v11  ;;  %834 = vmatmul.bf16.gmra.mxu3 %v2492_v17 }
 0x12b   : > { %745 = vmatmul.bf16.gmra.mxu2 %v2492_v17  ;;  %4147 = vst [vmem:[#allocation45_spill] sm:$0xff] %v3359_v12  ;;  %v3370_v17 = vpop.permute.xlu1 %1294 }
 0x12c   : > { %4148 = vst [vmem:[#allocation46_spill] sm:$0xff] %v3370_v17  ;;  %v3390_v12 = vpop.permute.xlu0 %1289 }
 0x12d   : > { %v3357_v49 = vpop.f32.mrf.mxu3 }
 0x12e   : > { %v3355_v15 = vpop.f32.mrf.mxu2  ;;  %v530_v40 = vpop.f32.mrf.mxu0 }
 0x12f   : > { %v619_v21 = vpop.f32.mrf.mxu1  ;;  %v1089_v37 = vmul.f32 %v3091_v44, %v530_v40 }
 0x130   : > { %v1090_v10 = vmul.f32 %v3091_v44, %v619_v21  ;;  %v1081_v21 = vmul.f32 %v3072_v36, %v3318_v60  ;;  %v1405_v60 = vadd.f32 %v3109_v51, %v1085_v26 }
 0x131   : > { %v1409_v43 = vadd.f32 %v3107_v50, %v1089_v37 }
 0x132   : > { %v1410_v48 = vadd.f32 %v3107_v50, %v1090_v10  ;;  %v1401_v10 = vadd.f32 %v3159_v8, %v1081_v21 }
 0x133   : > { %v960_v3 = vpop.permute.xlu1 %959  ;;  %v1537_v20 = vmax.f32 %v1409_v43, 0.0 }
 0x134   : > { %v1538_v17 = vmax.f32 %v1410_v48, 0.0 }
 0x135   : > { %v3365_v30 = vpop.f32.mrf.mxu3 }
 0x136   : > { %v3363_v61 = vpop.f32.mrf.mxu2  ;;  %v533_v1 = vpop.f32.mrf.mxu0 }
 0x137   : > { %v622_v16 = vpop.f32.mrf.mxu1  ;;  %v1093_v22 = vmul.f32 %v3041_v24, %v533_v1 }
 0x138   : > { %v1094_v46 = vmul.f32 %v3041_v24, %v622_v16  ;;  %v1082_v16 = vmul.f32 %v3072_v36, %v3320_v5  ;;  %v1406_v5 = vadd.f32 %v3109_v51, %v1086_v35 }
 0x139   : > { %572 = vmatmul.bf16.gmra.mxu0 %v2493_v25  ;;  %v1413_v19 = vadd.f32 %v3000_v9, %v1093_v22 }
 0x13a   : > { %661 = vmatmul.bf16.gmra.mxu1 %v2493_v25  ;;  %839 = vmatmul.bf16.gmra.mxu3 %v2493_v25 }
 0x13b   : > { %750 = vmatmul.bf16.gmra.mxu2 %v2493_v25  ;;  %v1414_v25 = vadd.f32 %v3000_v9, %v1094_v46  ;;  %v1541_v11 = vmax.f32 %v1413_v19, 0.0 }
 0x13d   : > { %v3378_v4 = vpop.f32.mrf.mxu3  ;;  %v1542_v27 = vmax.f32 %v1414_v25, 0.0  ;;  %v1533_v25 = vmax.f32 %v1405_v60, 0.0 }
 0x13e   : > { %v3376_v54 = vpop.f32.mrf.mxu2  ;;  %v535_v39 = vpop.f32.mrf.mxu0 }
 0x13f   : > { %v624_v45 = vpop.f32.mrf.mxu1  ;;  %v1097_v1 = vmul.f32 %v3058_v31, %v535_v39  ;;  %v1077_v39 = vmul.f32 %v3124_v57, %v3286_v59 }
 0x140   : > { %v1098_v40 = vmul.f32 %v3058_v31, %v624_v45  ;;  %v1078_v45 = vmul.f32 %v3124_v57, %v3288_v56 }
 0x141   : > { %v1417_v22 = vadd.f32 %v3014_v14, %v1097_v1  ;;  %v1402_v1 = vadd.f32 %v3159_v8, %v1082_v16  ;;  %v1397_v56 = vadd.f32 %v3087_v42, %v1077_v39  ;;  %v1653_v16 = vpack.c.bf16 %v1537_v20, %v1533_v25 }
 0x142   : > { %v1418_v46 = vadd.f32 %v3014_v14, %v1098_v40  ;;  %v1398_v26 = vadd.f32 %v3087_v42, %v1078_v45 }
 0x143   : > { %v1545_v55 = vmax.f32 %v1417_v22, 0.0  ;;  %v1534_v22 = vmax.f32 %v1406_v5, 0.0  ;;  %v1525_v43 = vmax.f32 %v1397_v56, 0.0  ;;  %v3435_v56 = vpop.permute.xlu1 %1204 }
 0x144   : > { %v1546_v37 = vmax.f32 %v1418_v46, 0.0  ;;  %v1526_v48 = vmax.f32 %v1398_v26, 0.0 }
 0x145   : > { %v802_v52 = vpop.f32.mrf.mxu3  ;;  %v1657_v29 = vpack.c.bf16 %v1545_v55, %v1541_v11  ;;  %v1654_v13 = vpack.c.bf16 %v1538_v17, %v1534_v22  ;;  %v1529_v55 = vmax.f32 %v1401_v10, 0.0  ;;  %v3410_v11 = vpop.permute.xlu0 %884  ;;  %v1079_v17 = vmul.f32 %v3124_v57, %v3311_v33 }
 0x146   : > { %v713_v40 = vpop.f32.mrf.mxu2  ;;  %v1658_v59 = vpack.c.bf16 %v1546_v37, %v1542_v27  ;;  %v538_v35 = vpop.f32.mrf.mxu0  ;;  %v1530_v27 = vmax.f32 %v1402_v1, 0.0 }
 0x147   : > { %v627_v19 = vpop.f32.mrf.mxu1  ;;  %v3406_v46 = vmul.f32 %v960_v3, %v538_v35  ;;  %1773 = vmatpush.bf16.msrb.mxu0 %v1657_v29  ;;  %v1649_v60 = vpack.c.bf16 %v1529_v55, %v1525_v43  ;;  %v3422_v10 = vpop.permute.xlu2 %879  ;;  %v3431_v1 = vadd.f32 %v3087_v42, %v1079_v17 }
 0x148   : > { %v3408_v21 = vmul.f32 %v960_v3, %v627_v19  ;;  %1871 = vmatpush.bf16.msrb.mxu2 %v1658_v59  ;;  %v1650_v5 = vpack.c.bf16 %v1530_v27, %v1526_v48  ;;  %v1080_v59 = vmul.f32 %v3124_v57, %v3313_v23  ;;  %v1091_v57 = vmul.f32 %v3091_v44, %v3363_v61 }
 0x149   : > { %v1042_v23 = vmul.f32 %v3410_v11, %v3157_v7  ;;  %v1088_v48 = vmul.f32 %v3025_v18, %v3357_v49 }
 0x14a   : > { %v3478_v55 = vadd.f32 %v3087_v42, %v1080_v59  ;;  %v1411_v42 = vadd.f32 %v3107_v50, %v1091_v57 }
 0x14b   : > { %1774 = vmatpush.bf16.msrb.mxu0 %v1653_v16  ;;  %v4153_v16 = vld [vmem:[#allocation32_spill] sm:$0xff]  ;;  %v1362_v7 = vadd.f32 %v3435_v56, %v1042_v23 }
 0x14c   : > { %1872 = vmatpush.bf16.msrb.mxu2 %v1654_v13  ;;  %v1037_v13 = vmul.f32 %v3422_v10, %v3138_v62  ;;  %v1087_v62 = vmul.f32 %v3025_v18, %v3355_v15  ;;  %v1092_v15 = vmul.f32 %v3091_v44, %v3365_v30 }
 0x14d   : > { %v805_v45 = vpop.f32.mrf.mxu3  ;;  %v3437_v33 = vpop.permute.xlu0 %1199 }
 0x14e   : > { %v716_v39 = vpop.f32.mrf.mxu2  ;;  %v3414_v35 = vmul.f32 %v960_v3, %v805_v45  ;;  %v3416_v29 = vpop.f32.mrf.mxu0  ;;  %v1407_v43 = vadd.f32 %v3109_v51, %v1087_v62  ;;  %v4154_v62 = vld [vmem:[#allocation43_spill] sm:$0xff] }
 0x14f   : > { %v3412_v37 = vmul.f32 %v960_v3, %v716_v39  ;;  %v3418_v20 = vpop.f32.mrf.mxu1  ;;  %1775 = vmatpush.bf16.msrb.mxu0 %v1649_v60  ;;  %v1038_v3 = vmul.f32 %v3422_v10, %v3140_v63  ;;  %v1041_v63 = vmul.f32 %v3410_v11, %v3155_v6  ;;  %v1412_v39 = vadd.f32 %v3107_v50, %v1092_v15 }
 0x150   : > { %4150 = vst [vmem:[#allocation48_spill] sm:$0xff] %v3414_v35  ;;  %1873 = vmatpush.bf16.msrb.mxu2 %v1650_v5  ;;  %v1408_v50 = vadd.f32 %v3109_v51, %v1088_v48  ;;  %v1539_v15 = vmax.f32 %v1411_v42, 0.0 }
 0x151   : > { %4149 = vst [vmem:[#allocation47_spill] sm:$0xff] %v3412_v37  ;;  %v1361_v61 = vadd.f32 %v3435_v56, %v1041_v63  ;;  %v4185_v37 = vld [vmem:[#allocation11_spill] sm:$0xff] }
 0x153   : > { %1776 = vmatpush.bf16.msrb.mxu0 %v3290_v2  ;;  %v1083_v2 = vmul.f32 %v3072_v36, %v3340_v32  ;;  %v1099_v32 = vmul.f32 %v3058_v31, %v713_v40  ;;  %v1358_v40 = vadd.f32 %v3437_v33, %v1038_v3  ;;  %v1489_v17 = vmax.f32 %v1361_v61, 0.0 }
 0x154   : > { %1874 = vmatpush.bf16.msrb.mxu2 %v3292_v28  ;;  %v1084_v28 = vmul.f32 %v3072_v36, %v3342_v38  ;;  %v1100_v36 = vmul.f32 %v3058_v31, %v802_v52  ;;  %v1095_v31 = vmul.f32 %v3041_v24, %v3376_v54  ;;  %v1096_v52 = vmul.f32 %v3041_v24, %v3378_v4 }
 0x155   : > { %v3449_v19 = vpop.f32.mrf.mxu3  ;;  %v3481_v27 = vadd.f32 %v3159_v8, %v1083_v2  ;;  %v1419_v54 = vadd.f32 %v3014_v14, %v1099_v32  ;;  %v1490_v3 = vmax.f32 %v1362_v7, 0.0 }
 0x156   : > { %v3447_v26 = vpop.f32.mrf.mxu2  ;;  %4152 = vst [vmem:[#allocation50_spill] sm:$0xff] %v3449_v19  ;;  %v543_v38 = vpop.f32.mrf.mxu0  ;;  %v1420_v24 = vadd.f32 %v3014_v14, %v1100_v36  ;;  %v3486_v4 = vadd.f32 %v3159_v8, %v1084_v28  ;;  %v1415_v45 = vadd.f32 %v3000_v9, %v1095_v31  ;;  %v1416_v14 = vadd.f32 %v3000_v9, %v1096_v52  ;;  %v4155_v36 = vld [vmem:[#allocation46_spill] sm:$0xff]  ;;  %v4186_v19 = vld [vmem:[#allocation19_spill] sm:$0xff] }
 0x157   : > { %4151 = vst [vmem:[#allocation49_spill] sm:$0xff] %v3447_v26  ;;  %v632_v25 = vpop.f32.mrf.mxu1  ;;  %v1109_v6 = vmul.f32 %v3279_v47, %v543_v38  ;;  %1777 = vmatpush.bf16.msrb.mxu0 %v3239_v58  ;;  %v1357_v58 = vadd.f32 %v3437_v33, %v1037_v13  ;;  %v1486_v13 = vmax.f32 %v1358_v40, 0.0  ;;  %v1547_v59 = vmax.f32 %v1419_v54, 0.0  ;;  %v4187_v26 = vld [vmem:[#allocation17_spill] sm:$0xff] }
 0x158   : > { %v1110_v22 = vmul.f32 %v3279_v47, %v632_v25  ;;  %1875 = vmatpush.bf16.msrb.mxu2 %v4153_v16  ;;  %v1548_v18 = vmax.f32 %v1420_v24, 0.0  ;;  %v1543_v63 = vmax.f32 %v1415_v45, 0.0  ;;  %v1544_v57 = vmax.f32 %v1416_v14, 0.0 }
 0x159   : > { %v3470_v44 = vadd.f32 %v3390_v12, %v1109_v6  ;;  %v1485_v5 = vmax.f32 %v1357_v58, 0.0  ;;  %v1630_v51 = vpack.c.bf16 %v1490_v3, %v1486_v13  ;;  %v1540_v6 = vmax.f32 %v1412_v39, 0.0 }
 0x15a   : > { %v3473_v30 = vadd.f32 %v3390_v12, %v1110_v22  ;;  %v1659_v22 = vpack.c.bf16 %v1547_v59, %v1543_v63  ;;  %v1660_v16 = vpack.c.bf16 %v1548_v18, %v1544_v57  ;;  %v1528_v52 = vmax.f32 %v3478_v55, 0.0  ;;  %v4165_v57 = vld [vmem:[#allocation23_spill] sm:$0xff] }
 0x15b   : > { %1778 = vmatpush.bf16.msrb.mxu0 %v3299_v53  ;;  %v1629_v25 = vpack.c.bf16 %v1489_v17, %v1485_v5  ;;  %v1535_v58 = vmax.f32 %v1407_v43, 0.0  ;;  %v1536_v40 = vmax.f32 %v1408_v50, 0.0  ;;  %v1531_v54 = vmax.f32 %v3481_v27, 0.0  ;;  %v4162_v50 = vld [vmem:[#allocation40_spill] sm:$0xff] }
 0x15c   : > { %1876 = vmatpush.bf16.msrb.mxu2 %v3304_v0  ;;  %v1558_v61 = vmax.f32 %v3473_v30, 0.0  ;;  %v1532_v24 = vmax.f32 %v3486_v4, 0.0 }
 0x15d   : > { %v810_v8 = vpop.f32.mrf.mxu3  ;;  %v1655_v43 = vpack.c.bf16 %v1539_v15, %v1535_v58  ;;  %v1656_v14 = vpack.c.bf16 %v1540_v6, %v1536_v40  ;;  %v4173_v58 = vld [vmem:[#allocation44_spill] sm:$0xff]  ;;  %v4174_v40 = vld [vmem:[#allocation45_spill] sm:$0xff] }
 0x15e   : > { %v721_v60 = vpop.f32.mrf.mxu2  ;;  %v1112_v0 = vmul.f32 %v3279_v47, %v810_v8  ;;  %v545_v49 = vpop.f32.mrf.mxu0  ;;  %v1652_v8 = vpack.c.bf16 %v1532_v24, %v1528_v52 }
 0x15f   : > { %v1111_v53 = vmul.f32 %v3279_v47, %v721_v60  ;;  %v634_v2 = vpop.f32.mrf.mxu1  ;;  %v1113_v28 = vmul.f32 %v3361_v34, %v545_v49  ;;  %1779 = vmatpush.bf16.msrb.mxu0 %v3349_v41  ;;  %v1557_v41 = vmax.f32 %v3470_v44, 0.0 }
 0x160   : > { %v1114_v9 = vmul.f32 %v3361_v34, %v634_v2  ;;  %1877 = vmatpush.bf16.msrb.mxu2 %v4154_v62  ;;  %v1432_v32 = vadd.f32 %v3390_v12, %v1112_v0  ;;  %v4161_v2 = vld [vmem:[#allocation39_spill] sm:$0xff]  ;;  %v4164_v62 = vld [vmem:[#allocation21_spill] sm:$0xff] }
 0x161   : > { %v1431_v23 = vadd.f32 %v3390_v12, %v1111_v53  ;;  %v1433_v47 = vadd.f32 %v4155_v36, %v1113_v28  ;;  %v1527_v12 = vmax.f32 %v3431_v1, 0.0  ;;  %v4163_v28 = vld [vmem:[#allocation20_spill] sm:$0xff]  ;;  %v1040_v63 = vmul.f32 %v3422_v10, %v4164_v62 }
 0x162   : > { %v1434_v38 = vadd.f32 %v4155_v36, %v1114_v9  ;;  %v1560_v17 = vmax.f32 %v1432_v32, 0.0  ;;  %v1039_v9 = vmul.f32 %v3422_v10, %v4163_v28  ;;  %v4166_v32 = vld [vmem:[#allocation24_spill] sm:$0xff] }
 0x163   : > { %1780 = vmatpush.bf16.msrb.mxu0 %v1629_v25  ;;  %v1561_v7 = vmax.f32 %v1433_v47, 0.0  ;;  %v1651_v60 = vpack.c.bf16 %v1531_v54, %v1527_v12  ;;  %v1559_v5 = vmax.f32 %v1431_v23, 0.0  ;;  %v1043_v23 = vmul.f32 %v3410_v11, %v4165_v57  ;;  %v4167_v47 = vld [vmem:[#allocation37_spill] sm:$0xff] }
 0x164   : > { %1878 = vmatpush.bf16.msrb.mxu2 %v1630_v51  ;;  %v1562_v31 = vmax.f32 %v1434_v38, 0.0  ;;  %v4168_v38 = vld [vmem:[#allocation38_spill] sm:$0xff]  ;;  %v1359_v10 = vadd.f32 %v3437_v33, %v1039_v9 }
 0x165   : > { %v812_v44 = vpop.f32.mrf.mxu3  ;;  %v3514_v42 = vpack.c.bf16 %v1561_v7, %v1557_v41  ;;  %v1363_v15 = vadd.f32 %v3435_v56, %v1043_v23 }
 0x166   : > { %v723_v48 = vpop.f32.mrf.mxu2  ;;  %v3516_v30 = vpack.c.bf16 %v1562_v31, %v1558_v61  ;;  %v1116_v1 = vmul.f32 %v3361_v34, %v812_v44  ;;  %v3520_v45 = vpop.f32.mrf.mxu0  ;;  %v4172_v61 = vld [vmem:[#allocation42_spill] sm:$0xff]  ;;  %v1487_v12 = vmax.f32 %v1359_v10, 0.0  ;;  %v4181_v10 = vld [vmem:[#allocation8_spill] sm:$0xff] }
 0x167   : > { %1969 = vmatpush.bf16.msra.mxu0 %v1659_v22  ;;  %v1115_v39 = vmul.f32 %v3361_v34, %v723_v48  ;;  %v3522_v55 = vpop.f32.mrf.mxu1  ;;  %v1360_v22 = vadd.f32 %v3437_v33, %v1040_v63  ;;  %v1491_v7 = vmax.f32 %v1363_v15, 0.0 }
 0x168   : > { %2067 = vmatpush.bf16.msra.mxu2 %v1660_v16  ;;  %4156 = vst [vmem:[#allocation32_spill] sm:$0xff] %v3516_v30  ;;  %v1436_v4 = vadd.f32 %v4155_v36, %v1116_v1 }
 0x169   : > { %v1435_v27 = vadd.f32 %v4155_v36, %v1115_v39  ;;  %v1044_v36 = vmul.f32 %v3410_v11, %v4166_v32  ;;  %v4171_v11 = vld [vmem:[#allocation41_spill] sm:$0xff]  ;;  %v1488_v52 = vmax.f32 %v1360_v22, 0.0  ;;  %v1631_v48 = vpack.c.bf16 %v1491_v7, %v1487_v12  ;;  %v4183_v12 = vld [vmem:[#allocation14_spill] sm:$0xff] }
 0x16a   : > { %v1564_v3 = vmax.f32 %v1436_v4, 0.0 }
 0x16b   : > { %1970 = vmatpush.bf16.msra.mxu0 %v1655_v43  ;;  %v1563_v13 = vmax.f32 %v1435_v27, 0.0  ;;  %v1364_v6 = vadd.f32 %v3435_v56, %v1044_v36 }
 0x16c   : > { %2068 = vmatpush.bf16.msra.mxu2 %v1656_v14  ;;  %v3528_v59 = vpack.c.bf16 %v1564_v3, %v1560_v17 }
 0x16d   : > { %v3526_v34 = vpack.c.bf16 %v1563_v13, %v1559_v5  ;;  %v3532_v53 = vpop.f32.mrf.mxu3  ;;  %v1492_v31 = vmax.f32 %v1364_v6, 0.0 }
 0x16e   : > { %4158 = vst [vmem:[#allocation46_spill] sm:$0xff] %v3528_v59  ;;  %v3530_v18 = vpop.f32.mrf.mxu2  ;;  %v3534_v0 = vpop.f32.mrf.mxu0 }
 0x16f   : > { %1971 = vmatpush.bf16.msra.mxu0 %v1651_v60  ;;  %4157 = vst [vmem:[#allocation43_spill] sm:$0xff] %v3526_v34  ;;  %v3536_v49 = vpop.f32.mrf.mxu1  ;;  %v1632_v44 = vpack.c.bf16 %v1492_v31, %v1488_v52  ;;  %v4184_v34 = vld [vmem:[#allocation13_spill] sm:$0xff] }
 0x170   : > { %2069 = vmatpush.bf16.msra.mxu2 %v1652_v8  ;;  %4159 = vst [vmem:[#allocation51_spill] sm:$0xff] %v3530_v18  ;;  %v4188_v18 = vld [vmem:[#allocation12_spill] sm:$0xff] }
 0x171   : > { %4160 = vst [vmem:[#allocation52_spill] sm:$0xff] %v3532_v53  ;;  %v2410_v53 = vld [vmem:[%s4069_s2] sm:$0xf] }
 0x173   : > { %1972 = vmatpush.bf16.msra.mxu0 %v4161_v2 }
 0x174   : > { %2070 = vmatpush.bf16.msra.mxu2 %v4162_v50 }
 0x175   : > { %v3552_v51 = vpop.f32.mrf.mxu3 }
 0x176   : > { %v3550_v25 = vpop.f32.mrf.mxu2  ;;  %4170 = vst [vmem:[#allocation40_spill] sm:$0xff] %v3552_v51  ;;  %v3558_v16 = vpop.f32.mrf.mxu0 }
 0x177   : > { %1973 = vmatpush.bf16.msra.mxu0 %v4167_v47  ;;  %4169 = vst [vmem:[#allocation39_spill] sm:$0xff] %v3550_v25  ;;  %v3560_v41 = vpop.f32.mrf.mxu1  ;;  %v4191_v25 = vld [vmem:[#allocation10_spill] sm:$0xff] }
 0x178   : > { %2071 = vmatpush.bf16.msra.mxu2 %v4168_v38 }
 0x17b   : > { %1974 = vmatpush.bf16.msra.mxu0 %v4171_v11 }
 0x17c   : > { %2072 = vmatpush.bf16.msra.mxu2 %v4172_v61  ;;  %v4182_v61 = vld [vmem:[#allocation9_spill] sm:$0xff] }
 0x17d   : > { %v3568_v54 = vpop.f32.mrf.mxu3 }
 0x17e   : > { %v3566_v56 = vpop.f32.mrf.mxu2  ;;  %4176 = vst [vmem:[#allocation21_spill] sm:$0xff] %v3568_v54  ;;  %v3570_v33 = vpop.f32.mrf.mxu0 }
 0x17f   : > { %1975 = vmatpush.bf16.msra.mxu0 %v4173_v58  ;;  %4175 = vst [vmem:[#allocation20_spill] sm:$0xff] %v3566_v56  ;;  %v3572_v24 = vpop.f32.mrf.mxu1 }
 0x180   : > { %2073 = vmatpush.bf16.msra.mxu2 %v4174_v40 }
 0x183   : > { %1976 = vmatpush.bf16.msra.mxu0 %v1631_v48 }
 0x184   : > { %2074 = vmatpush.bf16.msra.mxu2 %v1632_v44 }
 0x185   : > { %v3576_v1 = vpop.f32.mrf.mxu3 }
 0x186   : > { %v3574_v39 = vpop.f32.mrf.mxu2  ;;  %4178 = vst [vmem:[#allocation24_spill] sm:$0xff] %v3576_v1  ;;  %v3578_v43 = vpop.f32.mrf.mxu0 }
 0x187   : > { %4177 = vst [vmem:[#allocation23_spill] sm:$0xff] %v3574_v39  ;;  %v3580_v14 = vpop.f32.mrf.mxu1 }
 0x18d   : > { %v3584_v4 = vpop.f32.mrf.mxu3 }
 0x18e   : > { %v3582_v27 = vpop.f32.mrf.mxu2  ;;  %4180 = vst [vmem:[#allocation38_spill] sm:$0xff] %v3584_v4  ;;  %v560_v60 = vpop.f32.mrf.mxu0 }
 0x18f   : > { %4179 = vst [vmem:[#allocation37_spill] sm:$0xff] %v3582_v27  ;;  %v649_v8 = vpop.f32.mrf.mxu1 }
 0x195   : > { %v3588_v3 = vpop.f32.mrf.mxu3 }
 0x196   : > { %v563_v5 = vpop.f32.mrf.mxu0  ;;  %v3586_v13 = vpop.f32.mrf.mxu2 }
 0x197   : > { %v652_v17 = vpop.f32.mrf.mxu1 }
 0x19d   : > { %v3592_v9 = vpop.f32.mrf.mxu3 }
 0x19e   : > { %v565_v2 = vpop.f32.mrf.mxu0  ;;  %v3590_v28 = vpop.f32.mrf.mxu2 }
 0x19f   : > { %v654_v50 = vpop.f32.mrf.mxu1 }
 0x1a5   : > { %v3596_v23 = vpop.f32.mrf.mxu3 }
 0x1a6   : > { %v568_v62 = vpop.f32.mrf.mxu0  ;;  %v3594_v57 = vpop.f32.mrf.mxu2 }
 0x1a7   : > { %v657_v63 = vpop.f32.mrf.mxu1  ;;  %v1149_v52 = vmul.f32 %v4183_v12, %v568_v62  ;;  %v1146_v62 = vmul.f32 %v4186_v19, %v654_v50 }
 0x1a8   : > { %v1150_v58 = vmul.f32 %v4183_v12, %v657_v63 }
 0x1a9   : > { %v1469_v54 = vadd.f32 %v4191_v25, %v1149_v52 }
 0x1aa   : > { %v1470_v56 = vadd.f32 %v4191_v25, %v1150_v58 }
 0x1ab   : > { %v1597_v25 = vmax.f32 %v1469_v54, 0.0 }
 0x1ad   : > { %v3600_v38 = vpop.f32.mrf.mxu3 }
 0x1ae   : > { %v570_v32 = vpop.f32.mrf.mxu0  ;;  %v3598_v47 = vpop.f32.mrf.mxu2 }
 0x1af   : > { %v659_v36 = vpop.f32.mrf.mxu1  ;;  %v1153_v7 = vmul.f32 %v4182_v61, %v570_v32 }
 0x1b0   : > { %v1154_v31 = vmul.f32 %v4182_v61, %v659_v36  ;;  %v1145_v36 = vmul.f32 %v4186_v19, %v565_v2  ;;  %v4190_v2 = vld [vmem:[#allocation18_spill] sm:$0xff] }
 0x1b1   : > { %v1473_v63 = vadd.f32 %v4187_v26, %v1153_v7  ;;  %v1141_v50 = vmul.f32 %v4190_v2, %v563_v5  ;;  %v1142_v7 = vmul.f32 %v4190_v2, %v652_v17 }
 0x1b3   : > { %v1601_v30 = vmax.f32 %v1473_v63, 0.0 }
 0x1b5   : > { %v3610_v59 = vpop.f32.mrf.mxu3  ;;  %v1685_v54 = vpack.c.bf16 %v1601_v30, %v1597_v25 }
 0x1b6   : > { %v573_v15 = vpop.f32.mrf.mxu0  ;;  %v3608_v44 = vpop.f32.mrf.mxu2 }
 0x1b7   : > { %v662_v6 = vpop.f32.mrf.mxu1  ;;  %v1157_v22 = vmul.f32 %v4181_v10, %v573_v15 }
 0x1b8   : > { %v1158_v11 = vmul.f32 %v4181_v10, %v662_v6 }
 0x1b9   : > { %v1477_v35 = vadd.f32 %v4184_v34, %v1157_v22  ;;  %v2495_v22 = vld [vmem:[%s4069_s2 + $0x4] sm:$0xf0] }
 0x1ba   : > { %v1478_v15 = vadd.f32 %v4184_v34, %v1158_v11  ;;  %v1474_v11 = vadd.f32 %v4187_v26, %v1154_v31  ;;  %v3628_v51 = vor.u32 %v2495_v22, %v2410_v53  ;;  %v4192_v31 = vld [vmem:[#allocation26_spill] sm:$0xff] }
 0x1bb   : > { %v1605_v1 = vmax.f32 %v1477_v35, 0.0  ;;  %v1138_v53 = vmul.f32 %v4192_v31, %v649_v8  ;;  %v4194_v35 = vld [vmem:[#allocation16_spill] sm:$0xff]  ;;  %v1598_v8 = vmax.f32 %v1470_v56, 0.0 }
 0x1bc   : > { %4189 = vst [vmem:[#allocation41_spill] sm:$0xff] %v3628_v51  ;;  %v1606_v4 = vmax.f32 %v1478_v15, 0.0  ;;  %1879 = vmatmul.bf16.vlgmr.msrb.gmra.mxu2 %v3628_v51  ;;  %1781 = vmatmul.bf16.vlgmr.msrb.gmra.mxu0 %v3628_v51  ;;  %v1602_v58 = vmax.f32 %v1474_v11, 0.0  ;;  %v1133_v15 = vmul.f32 %v4194_v35, %v3578_v43  ;;  %v4198_v43 = vld [vmem:[#allocation28_spill] sm:$0xff] }
 0x1bd   : > { %v3656_v63 = vpop.f32.mrf.mxu3 }
 0x1be   : > { %v575_v40 = vpop.f32.mrf.mxu0  ;;  %v1686_v56 = vpack.c.bf16 %v1602_v58, %v1598_v8 }
 0x1bf   : > { %v664_v48 = vpop.f32.mrf.mxu1  ;;  %v1161_v6 = vmul.f32 %v4185_v37, %v575_v40 }
 0x1c0   : > { %v1162_v32 = vmul.f32 %v4185_v37, %v664_v48 }
 0x1c1   : > { %v1481_v40 = vadd.f32 %v4188_v18, %v1161_v6  ;;  %v1137_v6 = vmul.f32 %v4192_v31, %v560_v60 }
 0x1c2   : > { %v1482_v48 = vadd.f32 %v4188_v18, %v1162_v32  ;;  %v4193_v32 = vld [vmem:[#allocation15_spill] sm:$0xff] }
 0x1c3   : > { %v1609_v27 = vmax.f32 %v1481_v40, 0.0  ;;  %v1465_v5 = vadd.f32 %v4193_v32, %v1145_v36  ;;  %v1466_v17 = vadd.f32 %v4193_v32, %v1146_v62  ;;  %v1134_v40 = vmul.f32 %v4194_v35, %v3580_v14  ;;  %v3646_v36 = vpop.permute.xlu2 %964  ;;  %v3654_v62 = vpop.f32.mrf.mxu2 }
 0x1c4   : > { %v1610_v39 = vmax.f32 %v1482_v48, 0.0  ;;  %v4195_v48 = vld [vmem:[#allocation22_spill] sm:$0xff]  ;;  %4196 = vst [vmem:[#allocation42_spill] sm:$0xff] %v3646_v36  ;;  %v1458_v14 = vadd.f32 %v4198_v43, %v1138_v53 }
 0x1c5   : > { %v1689_v22 = vpack.c.bf16 %v1609_v27, %v1605_v1  ;;  %v1461_v51 = vadd.f32 %v4195_v48, %v1141_v50  ;;  %v1462_v60 = vadd.f32 %v4195_v48, %v1142_v7  ;;  %v1593_v11 = vmax.f32 %v1465_v5, 0.0  ;;  %v4199_v7 = vld [vmem:[#allocation30_spill] sm:$0xff]  ;;  %v4202_v5 = vld [vmem:[#allocation31_spill] sm:$0xff] }
 0x1c6   : > { %v1690_v52 = vpack.c.bf16 %v1610_v39, %v1606_v4  ;;  %v4197_v39 = vld [vmem:[#allocation25_spill] sm:$0xff]  ;;  %v1457_v4 = vadd.f32 %v4198_v43, %v1137_v6  ;;  %v1594_v50 = vmax.f32 %v1466_v17, 0.0  ;;  %v4201_v43 = vld [vmem:[#allocation35_spill] sm:$0xff] }
 0x1c7   : > { %1822 = vmatpush.bf16.msrb.mxu1 %v1689_v22  ;;  %v1129_v1 = vmul.f32 %v4197_v39, %v3570_v33  ;;  %v1130_v27 = vmul.f32 %v4197_v39, %v3572_v24  ;;  %v1125_v22 = vmul.f32 %v4199_v7, %v3558_v16  ;;  %v1126_v33 = vmul.f32 %v4199_v7, %v3560_v41 }
 0x1c8   : > { %1920 = vmatpush.bf16.msrb.mxu3 %v1690_v52  ;;  %v4200_v52 = vld [vmem:[#allocation29_spill] sm:$0xff]  ;;  %v1589_v48 = vmax.f32 %v1461_v51, 0.0  ;;  %v1590_v53 = vmax.f32 %v1462_v60, 0.0  ;;  %v1121_v30 = vmul.f32 %v4201_v43, %v3534_v0  ;;  %v1122_v25 = vmul.f32 %v4201_v43, %v3536_v49 }
 0x1c9   : > { %v1453_v24 = vadd.f32 %v4200_v52, %v1133_v15  ;;  %v1454_v6 = vadd.f32 %v4200_v52, %v1134_v40  ;;  %v1449_v17 = vadd.f32 %v4202_v5, %v1129_v1  ;;  %v1450_v16 = vadd.f32 %v4202_v5, %v1130_v27  ;;  %v4203_v40 = vld [vmem:[#allocation34_spill] sm:$0xff]  ;;  %v4205_v27 = vld [vmem:[#allocation33_spill] sm:$0xff] }
 0x1ca   : > { %v1681_v58 = vpack.c.bf16 %v1593_v11, %v1589_v48  ;;  %v1682_v41 = vpack.c.bf16 %v1594_v50, %v1590_v53  ;;  %v1585_v8 = vmax.f32 %v1457_v4, 0.0  ;;  %v1586_v15 = vmax.f32 %v1458_v14, 0.0  ;;  %v3688_v11 = vpop.permute.xlu0 %1284  ;;  %v4206_v53 = vld [vmem:[#allocation36_spill] sm:$0xff] }
 0x1cb   : > { %1823 = vmatpush.bf16.msrb.mxu1 %v1685_v54  ;;  %v1105_v51 = vmul.f32 %v3646_v36, %v3416_v29  ;;  %v1117_v60 = vmul.f32 %v4203_v40, %v3520_v45  ;;  %v1118_v0 = vmul.f32 %v4203_v40, %v3522_v55  ;;  %v4204_v54 = vld [vmem:[#allocation27_spill] sm:$0xff]  ;;  %v1581_v1 = vmax.f32 %v1453_v24, 0.0  ;;  %v2418_v45 = vld [vmem:[%s4069_s2 + $0x10] sm:$0xf] }
 0x1cc   : > { %1921 = vmatpush.bf16.msrb.mxu3 %v1686_v56  ;;  %v1445_v56 = vadd.f32 %v4204_v54, %v1125_v22  ;;  %v1446_v49 = vadd.f32 %v4204_v54, %v1126_v33  ;;  %v1582_v43 = vmax.f32 %v1454_v6, 0.0  ;;  %v1106_v48 = vmul.f32 %v3646_v36, %v3418_v20  ;;  %v2497_v55 = vld [vmem:[%s4069_s2 + $0x14] sm:$0xf0]  ;;  %v3692_v20 = vpop.permute.xlu2 %1279  ;;  %v842_v36 = vpop.f32.mrf.mxu3 }
 0x1cd   : > { %v1441_v4 = vadd.f32 %v4205_v27, %v1121_v30  ;;  %v1442_v29 = vadd.f32 %v4205_v27, %v1122_v25  ;;  %v1577_v14 = vmax.f32 %v1449_v17, 0.0  ;;  %v1677_v50 = vpack.c.bf16 %v1585_v8, %v1581_v1 }
 0x1ce   : > { %v1678_v22 = vpack.c.bf16 %v1586_v15, %v1582_v43  ;;  %v1578_v33 = vmax.f32 %v1450_v16, 0.0  ;;  %v3690_v24 = vor.u32 %v2497_v55, %v2418_v45  ;;  %v1425_v6 = vadd.f32 %v3688_v11, %v1105_v51 }
 0x1cf   : > { %1824 = vmatpush.bf16.msrb.mxu1 %v1681_v58  ;;  %v1437_v30 = vadd.f32 %v4206_v53, %v1117_v60  ;;  %v1438_v25 = vadd.f32 %v4206_v53, %v1118_v0  ;;  %v1573_v17 = vmax.f32 %v1445_v56, 0.0  ;;  %v1574_v58 = vmax.f32 %v1446_v49, 0.0 }
 0x1d0   : > { %1922 = vmatpush.bf16.msrb.mxu3 %v1682_v41  ;;  %v753_v41 = vpop.f32.mrf.mxu2  ;;  %v1421_v43 = vadd.f32 %v3692_v20, %v3406_v46  ;;  %v1426_v16 = vadd.f32 %v3688_v11, %v1106_v48  ;;  %1884 = vmatmul.bf16.gmra.mxu2 %v3690_v24  ;;  %v1569_v51 = vmax.f32 %v1441_v4, 0.0  ;;  %v1570_v60 = vmax.f32 %v1442_v29, 0.0 }
 0x1d1   : > { %1786 = vmatmul.bf16.gmra.mxu0 %v3690_v24  ;;  %v1673_v8 = vpack.c.bf16 %v1577_v14, %v1573_v17  ;;  %v1674_v15 = vpack.c.bf16 %v1578_v33, %v1574_v58  ;;  %v1163_v0 = vmul.f32 %v4185_v37, %v753_v41  ;;  %v1164_v56 = vmul.f32 %v4185_v37, %v842_v36 }
 0x1d2   : > { %v1422_v49 = vadd.f32 %v3692_v20, %v3408_v21  ;;  %v1565_v1 = vmax.f32 %v1437_v30, 0.0  ;;  %v1566_v45 = vmax.f32 %v1438_v25, 0.0  ;;  %v1553_v46 = vmax.f32 %v1425_v6, 0.0 }
 0x1d3   : > { %1825 = vmatpush.bf16.msrb.mxu1 %v1677_v50  ;;  %v1159_v48 = vmul.f32 %v4181_v10, %v3654_v62  ;;  %v1160_v14 = vmul.f32 %v4181_v10, %v3656_v63  ;;  %v1549_v4 = vmax.f32 %v1421_v43, 0.0  ;;  %v1155_v29 = vmul.f32 %v4182_v61, %v3608_v44 }
 0x1d4   : > { %1923 = vmatpush.bf16.msrb.mxu3 %v1678_v22  ;;  %v1669_v55 = vpack.c.bf16 %v1569_v51, %v1565_v1  ;;  %v1670_v37 = vpack.c.bf16 %v1570_v60, %v1566_v45  ;;  %v1554_v36 = vmax.f32 %v1426_v16, 0.0  ;;  %v1156_v21 = vmul.f32 %v4182_v61, %v3610_v59  ;;  %v4211_v45 = vld [vmem:[#allocation38_spill] sm:$0xff] }
 0x1d5   : > { %v1483_v50 = vadd.f32 %v4188_v18, %v1163_v0  ;;  %v1484_v22 = vadd.f32 %v4188_v18, %v1164_v56  ;;  %v1661_v62 = vpack.c.bf16 %v1553_v46, %v1549_v4  ;;  %v1550_v33 = vmax.f32 %v1422_v49, 0.0  ;;  %v4209_v0 = vld [vmem:[#allocation23_spill] sm:$0xff]  ;;  %v4210_v49 = vld [vmem:[#allocation37_spill] sm:$0xff] }
 0x1d6   : > { %v1151_v10 = vmul.f32 %v4183_v12, %v3598_v47  ;;  %v1152_v44 = vmul.f32 %v4183_v12, %v3600_v38  ;;  %v1479_v63 = vadd.f32 %v4184_v34, %v1159_v48  ;;  %v1480_v6 = vadd.f32 %v4184_v34, %v1160_v14 }
 0x1d7   : > { %1826 = vmatpush.bf16.msrb.mxu1 %v1673_v8  ;;  %v1147_v59 = vmul.f32 %v4186_v19, %v3594_v57  ;;  %v1148_v18 = vmul.f32 %v4186_v19, %v3596_v23  ;;  %v1475_v61 = vadd.f32 %v4187_v26, %v1155_v29  ;;  %v1662_v30 = vpack.c.bf16 %v1554_v36, %v1550_v33  ;;  %v4207_v19 = vld [vmem:[#allocation32_spill] sm:$0xff]  ;;  %v4208_v23 = vld [vmem:[#allocation10_spill] sm:$0xff] }
 0x1d8   : > { %1924 = vmatpush.bf16.msrb.mxu3 %v1674_v15  ;;  %v1139_v25 = vmul.f32 %v4192_v31, %v3586_v13  ;;  %v1476_v47 = vadd.f32 %v4187_v26, %v1156_v21  ;;  %v1611_v17 = vmax.f32 %v1483_v50, 0.0  ;;  %v1612_v38 = vmax.f32 %v1484_v22, 0.0  ;;  %v2494_v13 = vld [vmem:[%s4069_s2 + $0x4] sm:$0xf]  ;;  %v2412_v26 = vld [vmem:[%s4069_s2 + $0x8] sm:$0xf0] }
 0x1d9   : > { %v1140_v12 = vmul.f32 %v4192_v31, %v3588_v3  ;;  %v1143_v34 = vmul.f32 %v4190_v2, %v3590_v28  ;;  %v1144_v57 = vmul.f32 %v4190_v2, %v3592_v9  ;;  %v1471_v3 = vadd.f32 %v4208_v23, %v1151_v10  ;;  %v2499_v9 = vld [vmem:[%s4069_s2 + $0x24] sm:$0xf0]  ;;  %v4214_v36 = vld [vmem:[#allocation28_spill] sm:$0xff] }
 0x1da   : > { %v1472_v31 = vadd.f32 %v4208_v23, %v1152_v44  ;;  %v1607_v28 = vmax.f32 %v1479_v63, 0.0  ;;  %v1608_v58 = vmax.f32 %v1480_v6, 0.0  ;;  %v1467_v2 = vadd.f32 %v4193_v32, %v1147_v59  ;;  %v4215_v10 = vld [vmem:[#allocation20_spill] sm:$0xff] }
 0x1db   : > { %1827 = vmatpush.bf16.msrb.mxu1 %v1669_v55  ;;  %v1468_v41 = vadd.f32 %v4193_v32, %v1148_v18  ;;  %v1603_v43 = vmax.f32 %v1475_v61, 0.0  ;;  %v1604_v8 = vmax.f32 %v1476_v47, 0.0  ;;  %v3756_v60 = vor.u32 %v2494_v13, %v2412_v26  ;;  %v4212_v32 = vld [vmem:[#allocation22_spill] sm:$0xff]  ;;  %v4213_v55 = vld [vmem:[#allocation24_spill] sm:$0xff]  ;;  %v4220_v26 = vld [vmem:[#allocation51_spill] sm:$0xff] }
 0x1dc   : > { %1925 = vmatpush.bf16.msrb.mxu3 %v1670_v37  ;;  %v1691_v15 = vpack.c.bf16 %v1611_v17, %v1607_v28  ;;  %v1692_v51 = vpack.c.bf16 %v1612_v38, %v1608_v58  ;;  %v1131_v56 = vmul.f32 %v4197_v39, %v4209_v0  ;;  %v1135_v1 = vmul.f32 %v4194_v35, %v4210_v49  ;;  %v4219_v17 = vld [vmem:[#allocation40_spill] sm:$0xff] }
 0x1dd   : > { %v1136_v46 = vmul.f32 %v4194_v35, %v4211_v45  ;;  %v1463_v48 = vadd.f32 %v4212_v32, %v1143_v34  ;;  %v1464_v14 = vadd.f32 %v4212_v32, %v1144_v57  ;;  %v1599_v4 = vmax.f32 %v1471_v3, 0.0  ;;  %v4221_v23 = vld [vmem:[#allocation52_spill] sm:$0xff]  ;;  %v4223_v45 = vld [vmem:[#allocation42_spill] sm:$0xff] }
 0x1de   : > { %v1600_v29 = vmax.f32 %v1472_v31, 0.0  ;;  %v1132_v37 = vmul.f32 %v4197_v39, %v4213_v55  ;;  %v1459_v21 = vadd.f32 %v4214_v36, %v1139_v25  ;;  %v1460_v50 = vadd.f32 %v4214_v36, %v1140_v12  ;;  %v4216_v39 = vld [vmem:[#allocation21_spill] sm:$0xff]  ;;  %v4218_v25 = vld [vmem:[#allocation35_spill] sm:$0xff]  ;;  %v4224_v32 = vld [vmem:[#allocation50_spill] sm:$0xff] }
 0x1df   : > { %1828 = vmatpush.bf16.msrb.mxu1 %v3514_v42  ;;  %v2426_v42 = vld [vmem:[%s4069_s2 + $0x20] sm:$0xf]  ;;  %v1595_v35 = vmax.f32 %v1467_v2, 0.0  ;;  %v1596_v22 = vmax.f32 %v1468_v41, 0.0  ;;  %v1127_v44 = vmul.f32 %v4199_v7, %v4215_v10  ;;  %v1128_v63 = vmul.f32 %v4199_v7, %v4216_v39 }
 0x1e0   : > { %1926 = vmatpush.bf16.msrb.mxu3 %v4207_v19  ;;  %v3754_v16 = vor.u32 %v2499_v9, %v2426_v42  ;;  %v1688_v33 = vpack.c.bf16 %v1604_v8, %v1600_v29  ;;  %v1455_v6 = vadd.f32 %v4200_v52, %v1135_v1  ;;  %v1456_v59 = vadd.f32 %v4200_v52, %v1136_v46  ;;  %v4222_v1 = vld [vmem:[#allocation49_spill] sm:$0xff] }
 0x1e1   : > { %v1591_v18 = vmax.f32 %v1463_v48, 0.0  ;;  %v1592_v61 = vmax.f32 %v1464_v14, 0.0  ;;  %v1124_v38 = vmul.f32 %v4218_v25, %v4219_v17  ;;  %v1451_v12 = vadd.f32 %v4202_v5, %v1131_v56  ;;  %v2498_v17 = vld [vmem:[%s4069_s2 + $0x24] sm:$0xf] }
 0x1e2   : > { %1889 = vmatmul.bf16.gmra.mxu2 %v3754_v16  ;;  %1791 = vmatmul.bf16.gmra.mxu0 %v3754_v16  ;;  %v1452_v34 = vadd.f32 %v4202_v5, %v1132_v37  ;;  %v1587_v57 = vmax.f32 %v1459_v21, 0.0  ;;  %v1588_v7 = vmax.f32 %v1460_v50, 0.0  ;;  %v1119_v52 = vmul.f32 %v4203_v40, %v4220_v26 }
 0x1e3   : > { %1829 = vmatpush.bf16.msrb.mxu1 %v1661_v62  ;;  %v1687_v62 = vpack.c.bf16 %v1603_v43, %v1599_v4  ;;  %v1683_v19 = vpack.c.bf16 %v1595_v35, %v1591_v18  ;;  %v1684_v13 = vpack.c.bf16 %v1596_v22, %v1592_v61  ;;  %v1120_v3 = vmul.f32 %v4203_v40, %v4221_v23  ;;  %v2434_v40 = vld [vmem:[%s4069_s2 + $0x30] sm:$0xf]  ;;  %v4227_v61 = vld [vmem:[#allocation43_spill] sm:$0xff]  ;;  %v2458_v23 = vld [vmem:[%s4069_s2 + $0x60] sm:$0xf] }
 0x1e4   : > { %1927 = vmatpush.bf16.msrb.mxu3 %v1662_v30  ;;  %v4217_v30 = vld [vmem:[#allocation39_spill] sm:$0xff]  ;;  %v1447_v31 = vadd.f32 %v4204_v54, %v1127_v44  ;;  %v1448_v28 = vadd.f32 %v4204_v54, %v1128_v63  ;;  %v1583_v58 = vmax.f32 %v1455_v6, 0.0  ;;  %v1584_v42 = vmax.f32 %v1456_v59, 0.0  ;;  %v4226_v44 = vld [vmem:[#allocation48_spill] sm:$0xff] }
 0x1e5   : > { %v1123_v47 = vmul.f32 %v4218_v25, %v4217_v30  ;;  %v1444_v9 = vadd.f32 %v4205_v27, %v1124_v38  ;;  %v1579_v2 = vmax.f32 %v1451_v12, 0.0  ;;  %v1580_v41 = vmax.f32 %v1452_v34, 0.0  ;;  %v2501_v54 = vld [vmem:[%s4069_s2 + $0x34] sm:$0xf0]  ;;  %v2428_v38 = vld [vmem:[%s4069_s2 + $0x28] sm:$0xf0] }
 0x1e6   : > { %1830 = vmatmul.bf16.vlgmr.msrb.gmra.mxu1 %v3756_v60  ;;  %v1679_v43 = vpack.c.bf16 %v1587_v57, %v1583_v58  ;;  %v1680_v8 = vpack.c.bf16 %v1588_v7, %v1584_v42  ;;  %v1440_v0 = vadd.f32 %v4206_v53, %v1120_v3  ;;  %v1575_v56 = vmax.f32 %v1447_v31, 0.0  ;;  %v2450_v57 = vld [vmem:[%s4069_s2 + $0x50] sm:$0xf]  ;;  %v2505_v7 = vld [vmem:[%s4069_s2 + $0x54] sm:$0xf0] }
 0x1e7   : > { %2018 = vmatpush.bf16.msra.mxu1 %v1691_v15  ;;  %1928 = vmatmul.bf16.vlgmr.msrb.gmra.mxu3 %v3756_v60  ;;  %v1443_v5 = vadd.f32 %v4205_v27, %v1123_v47  ;;  %v2496_v15 = vld [vmem:[%s4069_s2 + $0x14] sm:$0xf]  ;;  %v2420_v27 = vld [vmem:[%s4069_s2 + $0x18] sm:$0xf0]  ;;  %v1576_v49 = vmax.f32 %v1448_v28, 0.0  ;;  %v1107_v46 = vmul.f32 %v4223_v45, %v4222_v1  ;;  %v1108_v48 = vmul.f32 %v4223_v45, %v4224_v32 }
 0x1e8   : > { %2116 = vmatpush.bf16.msra.mxu3 %v1692_v51  ;;  %v1439_v51 = vadd.f32 %v4206_v53, %v1119_v52  ;;  %v3812_v4 = vor.u32 %v2501_v54, %v2434_v40  ;;  %v1572_v29 = vmax.f32 %v1444_v9, 0.0  ;;  %v1675_v55 = vpack.c.bf16 %v1579_v2, %v1575_v56  ;;  %v2442_v47 = vld [vmem:[%s4069_s2 + $0x40] sm:$0xf]  ;;  %v2507_v3 = vld [vmem:[%s4069_s2 + $0x64] sm:$0xf0] }
 0x1e9   : > { %v1571_v14 = vmax.f32 %v1443_v5, 0.0  ;;  %v1676_v37 = vpack.c.bf16 %v1580_v41, %v1576_v49  ;;  %v3814_v36 = vor.u32 %v2496_v15, %v2420_v27  ;;  %v1568_v53 = vmax.f32 %v1440_v0, 0.0  ;;  %v2502_v31 = vld [vmem:[%s4069_s2 + $0x44] sm:$0xf]  ;;  %v2444_v28 = vld [vmem:[%s4069_s2 + $0x48] sm:$0xf0] }
 0x1ea   : > { %v1567_v21 = vmax.f32 %v1439_v51, 0.0  ;;  %v1427_v50 = vadd.f32 %v3688_v11, %v1107_v46  ;;  %v1428_v35 = vadd.f32 %v3688_v11, %v1108_v48  ;;  %v1424_v39 = vadd.f32 %v3692_v20, %v4226_v44  ;;  %v4228_v11 = vld [vmem:[#allocation46_spill] sm:$0xff]  ;;  %v2509_v9 = vld [vmem:[%s4069_s2 + $0x74] sm:$0xf0]  ;;  %v2452_v41 = vld [vmem:[%s4069_s2 + $0x58] sm:$0xf0] }
 0x1eb   : > { %2019 = vmatpush.bf16.msra.mxu1 %v1687_v62  ;;  %v1672_v62 = vpack.c.bf16 %v1572_v29, %v1568_v53  ;;  %v3842_v34 = vor.u32 %v2498_v17, %v2428_v38  ;;  %v3860_v26 = vor.u32 %v2505_v7, %v2450_v57  ;;  %v3880_v58 = vor.u32 %v2507_v3, %v2458_v23  ;;  %v2466_v5 = vld [vmem:[%s4069_s2 + $0x70] sm:$0xf]  ;;  %v2504_v2 = vld [vmem:[%s4069_s2 + $0x54] sm:$0xf]  ;;  %v2506_v40 = vld [vmem:[%s4069_s2 + $0x64] sm:$0xf] }
 0x1ec   : > { %2117 = vmatpush.bf16.msra.mxu3 %v1688_v33  ;;  %v1671_v22 = vpack.c.bf16 %v1571_v14, %v1567_v21  ;;  %v4225_v33 = vld [vmem:[#allocation47_spill] sm:$0xff]  ;;  %v1555_v63 = vmax.f32 %v1427_v50, 0.0  ;;  %v1556_v6 = vmax.f32 %v1428_v35, 0.0  ;;  %v1552_v18 = vmax.f32 %v1424_v39, 0.0  ;;  %v2460_v54 = vld [vmem:[%s4069_s2 + $0x68] sm:$0xf0] }
 0x1ed   : > { %v1423_v10 = vadd.f32 %v3692_v20, %v4225_v33  ;;  %v2503_v20 = vld [vmem:[%s4069_s2 + $0x44] sm:$0xf0]  ;;  %v3882_v42 = vor.u32 %v2502_v31, %v2444_v28  ;;  %v3914_v15 = vor.u32 %v2506_v40, %v2460_v54  ;;  %v2508_v1 = vld [vmem:[%s4069_s2 + $0x74] sm:$0xf]  ;;  %v2468_v45 = vld [vmem:[%s4069_s2 + $0x78] sm:$0xf0] }
 0x1ee   : > { %v1664_v25 = vpack.c.bf16 %v1556_v6, %v1552_v18  ;;  %v3840_v12 = vor.u32 %v2503_v20, %v2442_v47  ;;  %v4229_v27 = vld [vmem:[#allocation41_spill] sm:$0xff]  ;;  %v3926_v46 = vor.u32 %v2508_v1, %v2468_v45 }
 0x1ef   : > { %2020 = vmatpush.bf16.msra.mxu1 %v1683_v19  ;;  %v1551_v59 = vmax.f32 %v1423_v10, 0.0  ;;  %v2500_v19 = vld [vmem:[%s4069_s2 + $0x34] sm:$0xf] }
 0x1f0   : > { %2118 = vmatpush.bf16.msra.mxu3 %v1684_v13  ;;  %v2436_v13 = vld [vmem:[%s4069_s2 + $0x38] sm:$0xf0] }
 0x1f1   : > { %v1663_v30 = vpack.c.bf16 %v1555_v63, %v1551_v59  ;;  %v3862_v52 = vor.u32 %v2500_v19, %v2436_v13 }
 0x1f2   : > { %1894 = vmatmul.bf16.gmra.mxu2 %v3812_v4  ;;  %1796 = vmatmul.bf16.gmra.mxu0 %v3812_v4 }
 0x1f3   : > { %2021 = vmatpush.bf16.msra.mxu1 %v1679_v43  ;;  %v3900_v43 = vor.u32 %v2509_v9, %v2466_v5 }
 0x1f4   : > { %2119 = vmatpush.bf16.msra.mxu3 %v1680_v8  ;;  %v3902_v8 = vor.u32 %v2504_v2, %v2452_v41 }
 0x1f6   : > { %1835 = vmatmul.bf16.gmra.mxu1 %v3814_v36 }
 0x1f7   : > { %2022 = vmatpush.bf16.msra.mxu1 %v1675_v55  ;;  %1933 = vmatmul.bf16.gmra.mxu3 %v3814_v36 }
 0x1f8   : > { %2120 = vmatpush.bf16.msra.mxu3 %v1676_v37 }
 0x1fb   : > { %2023 = vmatpush.bf16.msra.mxu1 %v1671_v22 }
 0x1fc   : > { %2121 = vmatpush.bf16.msra.mxu3 %v1672_v62 }
 0x1ff   : > { %2024 = vmatpush.bf16.msra.mxu1 %v4227_v61 }
 0x200   : > { %2122 = vmatpush.bf16.msra.mxu3 %v4228_v11 }
 0x202   : > { %1899 = vmatmul.bf16.gmra.mxu2 %v3840_v12  ;;  %1801 = vmatmul.bf16.gmra.mxu0 %v3840_v12 }
 0x203   : > { %2025 = vmatpush.bf16.msra.mxu1 %v1663_v30 }
 0x204   : > { %2123 = vmatpush.bf16.msra.mxu3 %v1664_v25 }
 0x206   : > { %1840 = vmatmul.bf16.gmra.mxu1 %v3842_v34 }
 0x207   : > { %1938 = vmatmul.bf16.gmra.mxu3 %v3842_v34 }
 0x212   : > { %1904 = vmatmul.bf16.gmra.mxu2 %v3860_v26  ;;  %1806 = vmatmul.bf16.gmra.mxu0 %v3860_v26 }
 0x216   : > { %1845 = vmatmul.bf16.gmra.mxu1 %v3862_v52 }
 0x217   : > { %1943 = vmatmul.bf16.gmra.mxu3 %v3862_v52 }
 0x222   : > { %1909 = vmatmul.bf16.gmra.mxu2 %v3880_v58  ;;  %1811 = vmatmul.bf16.gmra.mxu0 %v3880_v58 }
 0x226   : > { %1850 = vmatmul.bf16.gmra.mxu1 %v3882_v42 }
 0x227   : > { %1948 = vmatmul.bf16.gmra.mxu3 %v3882_v42 }
 0x232   : > { %1914 = vmatmul.bf16.gmra.mxu2 %v3900_v43  ;;  %1816 = vmatmul.bf16.gmra.mxu0 %v3900_v43 }
 0x236   : > { %1855 = vmatmul.bf16.gmra.mxu1 %v3902_v8 }
 0x237   : > { %1953 = vmatmul.bf16.gmra.mxu3 %v3902_v8 }
 0x239   : > { %v1782_v51 = vpop.f32.mrf.mxu0 }
 0x23f   : > { %v1880_v0 = vpop.f32.mrf.mxu2 }
 0x241   : > { %v1784_v56 = vpop.f32.mrf.mxu0 }
 0x242   : > { %2075 = vmatmul.bf16.vlgmr.msra.gmra.mxu2 %v4229_v27  ;;  %1977 = vmatmul.bf16.vlgmr.msra.gmra.mxu0 %v4229_v27 }
 0x246   : > { %1860 = vmatmul.bf16.gmra.mxu1 %v3914_v15 }
 0x247   : > { %1958 = vmatmul.bf16.gmra.mxu3 %v3914_v15  ;;  %v1882_v49 = vpop.f32.mrf.mxu2 }
 0x24e   : > { %v1787_v32 = vpop.f32.mrf.mxu0 }
 0x252   : > { %2080 = vmatmul.bf16.gmra.mxu2 %v3690_v24  ;;  %1982 = vmatmul.bf16.gmra.mxu0 %v3690_v24 }
 0x253   : > { %v1885_v48 = vpop.f32.mrf.mxu2 }
 0x256   : > { %1865 = vmatmul.bf16.gmra.mxu1 %v3926_v46  ;;  %v1789_v14 = vpop.f32.mrf.mxu0 }
 0x257   : > { %1963 = vmatmul.bf16.gmra.mxu3 %v3926_v46 }
 0x25b   : > { %v1887_v29 = vpop.f32.mrf.mxu2 }
 0x25f   : > { %v1792_v24 = vpop.f32.mrf.mxu0 }
 0x262   : > { %2085 = vmatmul.bf16.gmra.mxu2 %v3754_v16  ;;  %1987 = vmatmul.bf16.gmra.mxu0 %v3754_v16 }
 0x263   : > { %v1831_v55 = vpop.f32.mrf.mxu1 }
 0x264   : > { %v1832_v37 = vadd.f32 %v1831_v55, %v1782_v51 }
 0x265   : > { %v1890_v21 = vpop.f32.mrf.mxu2 }
 0x266   : > { %2165 = vst [vmem:[%s3937_s15] sm:$0xff] %v1832_v37  ;;  %2026 = vmatmul.bf16.vlgmr.msra.gmra.mxu1 %v3756_v60 }
 0x267   : > { %2124 = vmatmul.bf16.vlgmr.msra.gmra.mxu3 %v3756_v60  ;;  %v1794_v22 = vpop.f32.mrf.mxu0 }
 0x26a   : > { %v1929_v53 = vpop.f32.mrf.mxu3 }
 0x26b   : > { %v1930_v50 = vadd.f32 %v1929_v53, %v1880_v0  ;;  %v1833_v35 = vpop.f32.mrf.mxu1 }
 0x26c   : > { %v1834_v16 = vadd.f32 %v1833_v35, %v1784_v56 }
 0x26d   : > { %2166 = vst [vmem:[%s3937_s15 + $0x8] sm:$0xff] %v1930_v50  ;;  %v1892_v62 = vpop.f32.mrf.mxu2 }
 0x26e   : > { %2169 = vst [vmem:[%s3937_s15 + $0x20] sm:$0xff] %v1834_v16 }
 0x26f   : > { %v1797_v60 = vpop.f32.mrf.mxu0 }
 0x272   : > { %v1931_v33 = vpop.f32.mrf.mxu3  ;;  %2090 = vmatmul.bf16.gmra.mxu2 %v3812_v4  ;;  %1992 = vmatmul.bf16.gmra.mxu0 %v3812_v4 }
 0x273   : > { %v1932_v10 = vadd.f32 %v1931_v33, %v1882_v49  ;;  %v1836_v44 = vpop.f32.mrf.mxu1 }
 0x274   : > { %v1837_v39 = vadd.f32 %v1836_v44, %v1787_v32 }
 0x275   : > { %2170 = vst [vmem:[%s3937_s15 + $0x28] sm:$0xff] %v1932_v10  ;;  %v1895_v63 = vpop.f32.mrf.mxu2 }
 0x276   : > { %2173 = vst [vmem:[%s3937_s15 + $0x40] sm:$0xff] %v1837_v39  ;;  %2031 = vmatmul.bf16.gmra.mxu1 %v3814_v36 }
 0x277   : > { %2129 = vmatmul.bf16.gmra.mxu3 %v3814_v36  ;;  %v1799_v11 = vpop.f32.mrf.mxu0 }
 0x27a   : > { %v1934_v6 = vpop.f32.mrf.mxu3 }
 0x27b   : > { %v1935_v59 = vadd.f32 %v1934_v6, %v1885_v48  ;;  %v1838_v18 = vpop.f32.mrf.mxu1 }
 0x27c   : > { %v1839_v61 = vadd.f32 %v1838_v18, %v1789_v14 }
 0x27d   : > { %2174 = vst [vmem:[%s3937_s15 + $0x48] sm:$0xff] %v1935_v59  ;;  %v1897_v30 = vpop.f32.mrf.mxu2 }
 0x27e   : > { %2177 = vst [vmem:[%s3937_s15 + $0x60] sm:$0xff] %v1839_v61 }
 0x27f   : > { %v1802_v36 = vpop.f32.mrf.mxu0 }
 0x282   : > { %v1936_v25 = vpop.f32.mrf.mxu3  ;;  %2095 = vmatmul.bf16.gmra.mxu2 %v3840_v12  ;;  %1997 = vmatmul.bf16.gmra.mxu0 %v3840_v12 }
 0x283   : > { %v1937_v4 = vadd.f32 %v1936_v25, %v1887_v29  ;;  %v1841_v47 = vpop.f32.mrf.mxu1 }
 0x284   : > { %v1842_v20 = vadd.f32 %v1841_v47, %v1792_v24 }
 0x285   : > { %2178 = vst [vmem:[%s3937_s15 + $0x68] sm:$0xff] %v1937_v4  ;;  %v1900_v17 = vpop.f32.mrf.mxu2 }
 0x286   : > { %2181 = vst [vmem:[%s3937_s15 + $0x80] sm:$0xff] %v1842_v20  ;;  %2036 = vmatmul.bf16.gmra.mxu1 %v3842_v34 }
 0x287   : > { %2134 = vmatmul.bf16.gmra.mxu3 %v3842_v34  ;;  %v1804_v13 = vpop.f32.mrf.mxu0 }
 0x28a   : > { %v1939_v38 = vpop.f32.mrf.mxu3 }
 0x28b   : > { %v1940_v57 = vadd.f32 %v1939_v38, %v1890_v21  ;;  %v1843_v7 = vpop.f32.mrf.mxu1 }
 0x28c   : > { %v1844_v19 = vadd.f32 %v1843_v7, %v1794_v22 }
 0x28d   : > { %2182 = vst [vmem:[%s3937_s15 + $0x88] sm:$0xff] %v1940_v57  ;;  %v1902_v23 = vpop.f32.mrf.mxu2 }
 0x28e   : > { %2185 = vst [vmem:[%s3937_s15 + $0xa0] sm:$0xff] %v1844_v19 }
 0x28f   : > { %v1807_v34 = vpop.f32.mrf.mxu0 }
 0x292   : > { %v1941_v3 = vpop.f32.mrf.mxu3  ;;  %2100 = vmatmul.bf16.gmra.mxu2 %v3860_v26  ;;  %2002 = vmatmul.bf16.gmra.mxu0 %v3860_v26 }
 0x293   : > { %v1942_v12 = vadd.f32 %v1941_v3, %v1892_v62  ;;  %v1846_v31 = vpop.f32.mrf.mxu1 }
 0x294   : > { %v1847_v28 = vadd.f32 %v1846_v31, %v1797_v60 }
 0x295   : > { %2186 = vst [vmem:[%s3937_s15 + $0xa8] sm:$0xff] %v1942_v12  ;;  %v1905_v5 = vpop.f32.mrf.mxu2 }
 0x296   : > { %2189 = vst [vmem:[%s3937_s15 + $0xc0] sm:$0xff] %v1847_v28  ;;  %2041 = vmatmul.bf16.gmra.mxu1 %v3862_v52 }
 0x297   : > { %2139 = vmatmul.bf16.gmra.mxu3 %v3862_v52  ;;  %v1809_v54 = vpop.f32.mrf.mxu0 }
 0x29a   : > { %v1944_v9 = vpop.f32.mrf.mxu3 }
 0x29b   : > { %v1945_v2 = vadd.f32 %v1944_v9, %v1895_v63  ;;  %v1848_v41 = vpop.f32.mrf.mxu1 }
 0x29c   : > { %v1849_v40 = vadd.f32 %v1848_v41, %v1799_v11 }
 0x29d   : > { %2190 = vst [vmem:[%s3937_s15 + $0xc8] sm:$0xff] %v1945_v2  ;;  %v1907_v27 = vpop.f32.mrf.mxu2 }
 0x29e   : > { %2193 = vst [vmem:[%s3937_s15 + $0xe0] sm:$0xff] %v1849_v40 }
 0x29f   : > { %v1812_v52 = vpop.f32.mrf.mxu0 }
 0x2a2   : > { %v1946_v51 = vpop.f32.mrf.mxu3  ;;  %2105 = vmatmul.bf16.gmra.mxu2 %v3880_v58  ;;  %2007 = vmatmul.bf16.gmra.mxu0 %v3880_v58 }
 0x2a3   : > { %v1947_v26 = vadd.f32 %v1946_v51, %v1897_v30  ;;  %v1851_v0 = vpop.f32.mrf.mxu1 }
 0x2a4   : > { %v1852_v56 = vadd.f32 %v1851_v0, %v1802_v36 }
 0x2a5   : > { %2194 = vst [vmem:[%s3937_s15 + $0xe8] sm:$0xff] %v1947_v26  ;;  %v1910_v49 = vpop.f32.mrf.mxu2 }
 0x2a6   : > { %2197 = vst [vmem:[%s3937_s15 + $0x100] sm:$0xff] %v1852_v56  ;;  %2046 = vmatmul.bf16.gmra.mxu1 %v3882_v42 }
 0x2a7   : > { %2144 = vmatmul.bf16.gmra.mxu3 %v3882_v42  ;;  %v1814_v14 = vpop.f32.mrf.mxu0 }
 0x2aa   : > { %v1949_v1 = vpop.f32.mrf.mxu3 }
 0x2ab   : > { %v1950_v45 = vadd.f32 %v1949_v1, %v1900_v17  ;;  %v1853_v32 = vpop.f32.mrf.mxu1 }
 0x2ac   : > { %v1854_v48 = vadd.f32 %v1853_v32, %v1804_v13 }
 0x2ad   : > { %2198 = vst [vmem:[%s3937_s15 + $0x108] sm:$0xff] %v1950_v45  ;;  %v1912_v29 = vpop.f32.mrf.mxu2 }
 0x2ae   : > { %2201 = vst [vmem:[%s3937_s15 + $0x120] sm:$0xff] %v1854_v48 }
 0x2af   : > { %v1817_v42 = vpop.f32.mrf.mxu0 }
 0x2b2   : > { %v1951_v55 = vpop.f32.mrf.mxu3  ;;  %2110 = vmatmul.bf16.gmra.mxu2 %v3900_v43  ;;  %2012 = vmatmul.bf16.gmra.mxu0 %v3900_v43 }
 0x2b3   : > { %v1952_v58 = vadd.f32 %v1951_v55, %v1902_v23  ;;  %v1856_v37 = vpop.f32.mrf.mxu1 }
 0x2b4   : > { %v1857_v24 = vadd.f32 %v1856_v37, %v1807_v34 }
 0x2b5   : > { %2202 = vst [vmem:[%s3937_s15 + $0x128] sm:$0xff] %v1952_v58  ;;  %v1915_v21 = vpop.f32.mrf.mxu2 }
 0x2b6   : > { %2205 = vst [vmem:[%s3937_s15 + $0x140] sm:$0xff] %v1857_v24  ;;  %2051 = vmatmul.bf16.gmra.mxu1 %v3902_v8 }
 0x2b7   : > { %2149 = vmatmul.bf16.gmra.mxu3 %v3902_v8  ;;  %v1819_v22 = vpop.f32.mrf.mxu0 }
 0x2ba   : > { %v1954_v53 = vpop.f32.mrf.mxu3 }
 0x2bb   : > { %v1955_v50 = vadd.f32 %v1954_v53, %v1905_v5  ;;  %v1858_v35 = vpop.f32.mrf.mxu1 }
 0x2bc   : > { %v1859_v16 = vadd.f32 %v1858_v35, %v1809_v54 }
 0x2bd   : > { %2206 = vst [vmem:[%s3937_s15 + $0x148] sm:$0xff] %v1955_v50  ;;  %v1917_v43 = vpop.f32.mrf.mxu2 }
 0x2be   : > { %2209 = vst [vmem:[%s3937_s15 + $0x160] sm:$0xff] %v1859_v16 }
 0x2bf   : > { %v1978_v8 = vpop.f32.mrf.mxu0 }
 0x2c2   : > { %v1956_v62 = vpop.f32.mrf.mxu3 }
 0x2c3   : > { %v1957_v33 = vadd.f32 %v1956_v62, %v1907_v27  ;;  %v1861_v10 = vpop.f32.mrf.mxu1 }
 0x2c4   : > { %v1862_v44 = vadd.f32 %v1861_v10, %v1812_v52 }
 0x2c5   : > { %2210 = vst [vmem:[%s3937_s15 + $0x168] sm:$0xff] %v1957_v33  ;;  %v2076_v6 = vpop.f32.mrf.mxu2 }
 0x2c6   : > { %2213 = vst [vmem:[%s3937_s15 + $0x180] sm:$0xff] %v1862_v44  ;;  %2056 = vmatmul.bf16.gmra.mxu1 %v3914_v15 }
 0x2c7   : > { %2154 = vmatmul.bf16.gmra.mxu3 %v3914_v15  ;;  %v1980_v18 = vpop.f32.mrf.mxu0 }
 0x2ca   : > { %v1959_v39 = vpop.f32.mrf.mxu3 }
 0x2cb   : > { %v1960_v60 = vadd.f32 %v1959_v39, %v1910_v49  ;;  %v1863_v63 = vpop.f32.mrf.mxu1 }
 0x2cc   : > { %v1864_v59 = vadd.f32 %v1863_v63, %v1814_v14 }
 0x2cd   : > { %2214 = vst [vmem:[%s3937_s15 + $0x188] sm:$0xff] %v1960_v60  ;;  %v2078_v4 = vpop.f32.mrf.mxu2 }
 0x2ce   : > { %2217 = vst [vmem:[%s3937_s15 + $0x1a0] sm:$0xff] %v1864_v59 }
 0x2cf   : > { %v1983_v47 = vpop.f32.mrf.mxu0 }
 0x2d2   : > { %v1961_v61 = vpop.f32.mrf.mxu3 }
 0x2d3   : > { %v1962_v11 = vadd.f32 %v1961_v61, %v1912_v29  ;;  %v1866_v30 = vpop.f32.mrf.mxu1 }
 0x2d4   : > { %v1867_v25 = vadd.f32 %v1866_v30, %v1817_v42 }
 0x2d5   : > { %2218 = vst [vmem:[%s3937_s15 + $0x1a8] sm:$0xff] %v1962_v11  ;;  %v2081_v38 = vpop.f32.mrf.mxu2 }
 0x2d6   : > { %2221 = vst [vmem:[%s3937_s15 + $0x1c0] sm:$0xff] %v1867_v25  ;;  %2061 = vmatmul.bf16.gmra.mxu1 %v3926_v46 }
 0x2d7   : > { %2159 = vmatmul.bf16.gmra.mxu3 %v3926_v46  ;;  %v1985_v13 = vpop.f32.mrf.mxu0 }
 0x2da   : > { %v1964_v15 = vpop.f32.mrf.mxu3 }
 0x2db   : > { %v1965_v20 = vadd.f32 %v1964_v15, %v1915_v21  ;;  %v1868_v36 = vpop.f32.mrf.mxu1 }
 0x2dc   : > { %v1869_v17 = vadd.f32 %v1868_v36, %v1819_v22 }
 0x2dd   : > { %2222 = vst [vmem:[%s3937_s15 + $0x1c8] sm:$0xff] %v1965_v20  ;;  %v2083_v3 = vpop.f32.mrf.mxu2 }
 0x2de   : > { %2225 = vst [vmem:[%s3937_s15 + $0x1e0] sm:$0xff] %v1869_v17 }
 0x2df   : > { %v1988_v34 = vpop.f32.mrf.mxu0 }
 0x2e2   : > { %v1966_v57 = vpop.f32.mrf.mxu3 }
 0x2e3   : > { %v1967_v7 = vadd.f32 %v1966_v57, %v1917_v43  ;;  %v2027_v19 = vpop.f32.mrf.mxu1 }
 0x2e4   : > { %v2028_v23 = vadd.f32 %v2027_v19, %v1978_v8 }
 0x2e5   : > { %2226 = vst [vmem:[%s3937_s15 + $0x1e8] sm:$0xff] %v1967_v7  ;;  %v2086_v41 = vpop.f32.mrf.mxu2 }
 0x2e6   : > { %2167 = vst [vmem:[%s3937_s15 + $0x10] sm:$0xff] %v2028_v23 }
 0x2e7   : > { %v1990_v54 = vpop.f32.mrf.mxu0 }
 0x2ea   : > { %v2125_v46 = vpop.f32.mrf.mxu3 }
 0x2eb   : > { %v2126_v12 = vadd.f32 %v2125_v46, %v2076_v6  ;;  %v2029_v31 = vpop.f32.mrf.mxu1 }
 0x2ec   : > { %v2030_v28 = vadd.f32 %v2029_v31, %v1980_v18 }
 0x2ed   : > { %2168 = vst [vmem:[%s3937_s15 + $0x18] sm:$0xff] %v2126_v12  ;;  %v2088_v56 = vpop.f32.mrf.mxu2 }
 0x2ee   : > { %2171 = vst [vmem:[%s3937_s15 + $0x30] sm:$0xff] %v2030_v28 }
 0x2ef   : > { %v1993_v49 = vpop.f32.mrf.mxu0 }
 0x2f2   : > { %v2127_v5 = vpop.f32.mrf.mxu3 }
 0x2f3   : > { %v2128_v9 = vadd.f32 %v2127_v5, %v2078_v4  ;;  %v2032_v2 = vpop.f32.mrf.mxu1 }
 0x2f4   : > { %v2033_v40 = vadd.f32 %v2032_v2, %v1983_v47 }
 0x2f5   : > { %2172 = vst [vmem:[%s3937_s15 + $0x38] sm:$0xff] %v2128_v9  ;;  %v2091_v48 = vpop.f32.mrf.mxu2 }
 0x2f6   : > { %2175 = vst [vmem:[%s3937_s15 + $0x50] sm:$0xff] %v2033_v40 }
 0x2f7   : > { %v1995_v58 = vpop.f32.mrf.mxu0 }
 0x2fa   : > { %v2130_v27 = vpop.f32.mrf.mxu3 }
 0x2fb   : > { %v2131_v51 = vadd.f32 %v2130_v27, %v2081_v38  ;;  %v2034_v26 = vpop.f32.mrf.mxu1 }
 0x2fc   : > { %v2035_v0 = vadd.f32 %v2034_v26, %v1985_v13 }
 0x2fd   : > { %2176 = vst [vmem:[%s3937_s15 + $0x58] sm:$0xff] %v2131_v51  ;;  %v2093_v42 = vpop.f32.mrf.mxu2 }
 0x2fe   : > { %2179 = vst [vmem:[%s3937_s15 + $0x70] sm:$0xff] %v2035_v0 }
 0x2ff   : > { %v1998_v35 = vpop.f32.mrf.mxu0 }
 0x302   : > { %v2132_v52 = vpop.f32.mrf.mxu3 }
 0x303   : > { %v2133_v1 = vadd.f32 %v2132_v52, %v2083_v3  ;;  %v2037_v45 = vpop.f32.mrf.mxu1 }
 0x304   : > { %v2038_v32 = vadd.f32 %v2037_v45, %v1988_v34 }
 0x305   : > { %2180 = vst [vmem:[%s3937_s15 + $0x78] sm:$0xff] %v2133_v1  ;;  %v2096_v43 = vpop.f32.mrf.mxu2 }
 0x306   : > { %2183 = vst [vmem:[%s3937_s15 + $0x90] sm:$0xff] %v2038_v32 }
 0x307   : > { %v2000_v10 = vpop.f32.mrf.mxu0 }
 0x30a   : > { %v2135_v14 = vpop.f32.mrf.mxu3 }
 0x30b   : > { %v2136_v29 = vadd.f32 %v2135_v14, %v2086_v41  ;;  %v2039_v55 = vpop.f32.mrf.mxu1 }
 0x30c   : > { %v2040_v37 = vadd.f32 %v2039_v55, %v1990_v54 }
 0x30d   : > { %2184 = vst [vmem:[%s3937_s15 + $0x98] sm:$0xff] %v2136_v29  ;;  %v2098_v63 = vpop.f32.mrf.mxu2 }
 0x30e   : > { %2187 = vst [vmem:[%s3937_s15 + $0xb0] sm:$0xff] %v2040_v37 }
 0x30f   : > { %v2003_v59 = vpop.f32.mrf.mxu0 }
 0x312   : > { %v2137_v24 = vpop.f32.mrf.mxu3 }
 0x313   : > { %v2138_v21 = vadd.f32 %v2137_v24, %v2088_v56  ;;  %v2042_v53 = vpop.f32.mrf.mxu1 }
 0x314   : > { %v2043_v50 = vadd.f32 %v2042_v53, %v1993_v49 }
 0x315   : > { %2188 = vst [vmem:[%s3937_s15 + $0xb8] sm:$0xff] %v2138_v21  ;;  %v2101_v30 = vpop.f32.mrf.mxu2 }
 0x316   : > { %2191 = vst [vmem:[%s3937_s15 + $0xd0] sm:$0xff] %v2043_v50 }
 0x317   : > { %v2005_v47 = vpop.f32.mrf.mxu0 }
 0x31a   : > { %v2140_v16 = vpop.f32.mrf.mxu3 }
 0x31b   : > { %v2141_v22 = vadd.f32 %v2140_v16, %v2091_v48  ;;  %v2044_v62 = vpop.f32.mrf.mxu1 }
 0x31c   : > { %v2045_v33 = vadd.f32 %v2044_v62, %v1995_v58 }
 0x31d   : > { %2192 = vst [vmem:[%s3937_s15 + $0xd8] sm:$0xff] %v2141_v22  ;;  %v2103_v17 = vpop.f32.mrf.mxu2 }
 0x31e   : > { %2195 = vst [vmem:[%s3937_s15 + $0xf0] sm:$0xff] %v2045_v33 }
 0x31f   : > { %v2008_v19 = vpop.f32.mrf.mxu0 }
 0x322   : > { %v2142_v44 = vpop.f32.mrf.mxu3 }
 0x323   : > { %v2143_v8 = vadd.f32 %v2142_v44, %v2093_v42  ;;  %v2047_v39 = vpop.f32.mrf.mxu1 }
 0x324   : > { %v2048_v60 = vadd.f32 %v2047_v39, %v1998_v35 }
 0x325   : > { %2196 = vst [vmem:[%s3937_s15 + $0xf8] sm:$0xff] %v2143_v8  ;;  %v2106_v3 = vpop.f32.mrf.mxu2 }
 0x326   : > { %2199 = vst [vmem:[%s3937_s15 + $0x110] sm:$0xff] %v2048_v60 }
 0x327   : > { %v2010_v31 = vpop.f32.mrf.mxu0 }
 0x32a   : > { %v2145_v6 = vpop.f32.mrf.mxu3 }
 0x32b   : > { %v2146_v18 = vadd.f32 %v2145_v6, %v2096_v43  ;;  %v2049_v61 = vpop.f32.mrf.mxu1 }
 0x32c   : > { %v2050_v11 = vadd.f32 %v2049_v61, %v2000_v10 }
 0x32d   : > { %2200 = vst [vmem:[%s3937_s15 + $0x118] sm:$0xff] %v2146_v18  ;;  %v2108_v2 = vpop.f32.mrf.mxu2 }
 0x32e   : > { %2203 = vst [vmem:[%s3937_s15 + $0x130] sm:$0xff] %v2050_v11 }
 0x32f   : > { %v2013_v40 = vpop.f32.mrf.mxu0 }
 0x332   : > { %v2147_v25 = vpop.f32.mrf.mxu3 }
 0x333   : > { %v2148_v4 = vadd.f32 %v2147_v25, %v2098_v63  ;;  %v2052_v15 = vpop.f32.mrf.mxu1 }
 0x334   : > { %v2053_v20 = vadd.f32 %v2052_v15, %v2003_v59 }
 0x335   : > { %2204 = vst [vmem:[%s3937_s15 + $0x138] sm:$0xff] %v2148_v4  ;;  %v2111_v26 = vpop.f32.mrf.mxu2 }
 0x336   : > { %2207 = vst [vmem:[%s3937_s15 + $0x150] sm:$0xff] %v2053_v20 }
 0x337   : > { %v2015_v52 = vpop.f32.mrf.mxu0 }
 0x33a   : > { %v2150_v36 = vpop.f32.mrf.mxu3 }
 0x33b   : > { %v2151_v38 = vadd.f32 %v2150_v36, %v2101_v30  ;;  %v2054_v57 = vpop.f32.mrf.mxu1 }
 0x33c   : > { %v2055_v7 = vadd.f32 %v2054_v57, %v2005_v47 }
 0x33d   : > { %2208 = vst [vmem:[%s3937_s15 + $0x158] sm:$0xff] %v2151_v38  ;;  %v2113_v45 = vpop.f32.mrf.mxu2 }
 0x33e   : > { %2211 = vst [vmem:[%s3937_s15 + $0x170] sm:$0xff] %v2055_v7 }
 0x342   : > { %v2152_v13 = vpop.f32.mrf.mxu3 }
 0x343   : > { %v2153_v23 = vadd.f32 %v2152_v13, %v2103_v17  ;;  %v2057_v46 = vpop.f32.mrf.mxu1 }
 0x344   : > { %v2058_v12 = vadd.f32 %v2057_v46, %v2008_v19 }
 0x345   : > { %2212 = vst [vmem:[%s3937_s15 + $0x178] sm:$0xff] %v2153_v23 }
 0x346   : > { %2215 = vst [vmem:[%s3937_s15 + $0x190] sm:$0xff] %v2058_v12 }
 0x34a   : > { %v2155_v28 = vpop.f32.mrf.mxu3 }
 0x34b   : > { %v2156_v34 = vadd.f32 %v2155_v28, %v2106_v3  ;;  %v2059_v5 = vpop.f32.mrf.mxu1 }
 0x34c   : > { %v2060_v9 = vadd.f32 %v2059_v5, %v2010_v31 }
 0x34d   : > { %2216 = vst [vmem:[%s3937_s15 + $0x198] sm:$0xff] %v2156_v34 }
 0x34e   : > { %2219 = vst [vmem:[%s3937_s15 + $0x1b0] sm:$0xff] %v2060_v9 }
 0x352   : > { %v2157_v41 = vpop.f32.mrf.mxu3 }
 0x353   : > { %v2158_v54 = vadd.f32 %v2157_v41, %v2108_v2  ;;  %v2062_v27 = vpop.f32.mrf.mxu1 }
 0x354   : > { %v2063_v51 = vadd.f32 %v2062_v27, %v2013_v40 }
 0x355   : > { %2220 = vst [vmem:[%s3937_s15 + $0x1b8] sm:$0xff] %v2158_v54 }
 0x356   : > { %2223 = vst [vmem:[%s3937_s15 + $0x1d0] sm:$0xff] %v2063_v51 }
 0x35a   : > { %v2160_v0 = vpop.f32.mrf.mxu3 }
 0x35b   : > { %v2161_v56 = vadd.f32 %v2160_v0, %v2111_v26  ;;  %v2064_v49 = vpop.f32.mrf.mxu1 }
 0x35c   : > { %v2065_v1 = vadd.f32 %v2064_v49, %v2015_v52 }
 0x35d   : > { %2224 = vst [vmem:[%s3937_s15 + $0x1d8] sm:$0xff] %v2161_v56 }
 0x35e   : > { %2227 = vst [vmem:[%s3937_s15 + $0x1f0] sm:$0xff] %v2065_v1 }
 0x362   : > { %v2162_v32 = vpop.f32.mrf.mxu3 }
 0x363   : > { %v2163_v48 = vadd.f32 %v2162_v32, %v2113_v45 }
 0x365   : > { %2228 = vst [vmem:[%s3937_s15 + $0x1f8] sm:$0xff] %v2163_v48 }
 0x366   : > { %2638 = shalt.err (!%p2635_p13)
}
 0x367   : > { %s2698_s29 = smov 512   ;;  %s2699_s15 = smov 32  }
 0x368   : > { %2513 = dma.vmem_to_hbm [thread:$0]  (%p2781_p9), %s2245_s24, 8192, %s2247_s25, %s2230_s21, %s2698_s29, %s2698_s29, %s2699_s15  }
 0x369 PF: > { %s2261_s10 = sand.u32 1, %s2673_s18   ;;  %p2520_p0 = pnand %p2337_p12, %p2788_p11 }
 0x36a   : > { %s2262_s28 = scalar_lea.sflag [#allocation4], %s2261_s10 }
 0x36b   : > { %p2521_p1 = pneg %p2520_p0 }
 0x36d   : > { %2668 = dma.done.wait (%p2521_p1), %s2262_s28, 8192  }
 0x36e   : > { %2670 = vsyncadd (%p2521_p1), %s2262_s28, 4294959104  ;;  %s21_s23 = sadd.s32 1, %s2693_s23   ;;  %s4230_s18 = smov %s2677_s19 }
 0x36f   : > { %p18_p2 = scmp.ge.s32.totalorder %s21_s23, 4   ;;  %s4231_s19 = smov %s2681_s20 }
 0x370   : > { %s4232_s20 = smov %s2786_s7  ;;  %s4233_s21 = smov %s2689_s22 }
 0x371   : > { %s4234_s22 = smov %s4236_s26  ;;  %20 = sbr.rel (!%p18_p2) target bundleno = 6 (0x6), region = 85 }
 0x376   :  { %2268 = vsyncpa [#allocation3], 1 }
 0x377   :  { %2270 = vsyncpa [#allocation3 + $0x1], 1 }
 0x378   :  { %2271 = vsyncpa [#allocation4], 1 }
 0x379   :  { %2273 = vsyncpa [#allocation4 + $0x1], 1 }

</bundles_post_ra>
